<compile_context>
chip_gen: v6e
topology: v6e:2x2x1
jax: 0.10.0
libtpu: 0.0.40
codegen_flags: <defaults>
</compile_context>

<pallas_src>
import math

import jax
import jax.numpy as jnp
from jax import lax
from jax.experimental import pallas as pl
from jax.experimental.pallas import tpu as pltpu

# Scaled-down hyper-parameters consistent with the module structure
# (d_model / dim_feedforward scaled down; 2 enc + 2 dec layers, 4 heads).
D_MODEL = 32
NHEAD = 4
DH = D_MODEL // NHEAD
DFF = 64
VOCAB = 10
N_ENC = 2
N_DEC = 2
EPS = 1e-5          # PyTorch LayerNorm default eps
ROWW = 3 * D_MODEL  # width of one row in the packed f32 scalar blob


# ------------------------------ fused kernel -------------------------------

def _transformer_kernel(src_ref, tgt_ref, enc_mask_ref, dec_mask_ref, cross_mask_ref,
                        e_wqkv, e_wo, e_w1, e_w2,
                        d_sa_wqkv, d_sa_wo, d_ca_wq, d_ca_wkv, d_ca_wo, d_w1, d_w2,
                        scal_ref, out_ref):
    D = D_MODEL
    bf16 = jnp.bfloat16

    scal = scal_ref[...]          # (46, 96) f32 scalar-parameter blob, read once
    cursor = [0]

    def take(width):              # static row slice of the blob -> (1, width)
        r = scal[cursor[0]:cursor[0] + 1, :width]
        cursor[0] += 1
        return r

    def mm(x, w):
        # bf16 MXU operands (weights pre-cast), f32 accumulation.
        return jnp.dot(x.astype(bf16), w, preferred_element_type=jnp.float32)

    def layer_norm(x, g, b):
        mu = jnp.mean(x, axis=-1, keepdims=True)
        xc = x - mu
        var = jnp.mean(xc * xc, axis=-1, keepdims=True)
        return xc * lax.rsqrt(var + EPS) * g + b

    def mha(q_b, k_b, v_b, wo, bo, mask):
        """q_b/k_b/v_b: (Nq/Nk, D) bf16 (Q pre-scaled by 1/sqrt(dh) at pack time).
        wo: (D, D) bf16, bo: (1, D) f32, mask: (Nq, Nk) additive f32.
        Returns (Nq, D) f32."""
        # Per-head QK^T (NT contraction, no materialized transpose), stacked on a
        # leading head axis so the softmax bookkeeping runs only once.
        s = jnp.stack([
            lax.dot_general(q_b[:, h * DH:(h + 1) * DH],
                            k_b[:, h * DH:(h + 1) * DH],
                            (((1,), (1,)), ((), ())),
                            preferred_element_type=jnp.float32)
            for h in range(NHEAD)], axis=0)                      # (H, Nq, Nk)
        s = s + mask[None, :, :]
        m = jnp.max(s, axis=-1, keepdims=True)    # finite: no fully-masked rows
        p = jnp.exp(s - m)
        denom = jnp.sum(p, axis=-1, keepdims=True)               # >= 1
        p = (p * pl.reciprocal(denom, approx=True)).astype(bf16)
        # Per-head P@V, lane-concatenated, then ONE output-projection matmul.
        o = jnp.concatenate([
            jnp.dot(p[h], v_b[:, h * DH:(h + 1) * DH],
                    preferred_element_type=jnp.float32)
            for h in range(NHEAD)], axis=-1)                     # (Nq, D) f32
        return jnp.dot(o.astype(bf16), wo, preferred_element_type=jnp.float32) + bo

    # ---------------- encoder (post-norm) + final encoder LayerNorm ----------
    x = src_ref[...]                # (B*Ss, D) f32
    enc_mask = enc_mask_ref[...]    # (B*Ss, B*Ss): block-diag + src key padding
    for l in range(N_ENC):
        bqkv = take(3 * D); bo = take(D); b1 = take(DFF); b2 = take(D)
        g1 = take(D); be1 = take(D); g2 = take(D); be2 = take(D)

        qkv = (mm(x, e_wqkv[l]) + bqkv).astype(bf16)
        sa = mha(qkv[:, :D], qkv[:, D:2 * D], qkv[:, 2 * D:],
                 e_wo[l], bo, enc_mask)
        x = layer_norm(x + sa, g1, be1)
        h1 = jnp.maximum(mm(x, e_w1[l]) + b1, 0.0)
        ff = mm(h1, e_w2[l]) + b2
        x = layer_norm(x + ff, g2, be2)
    g = take(D); b = take(D)
    memory = layer_norm(x, g, b)
    mem_b = memory.astype(bf16)

    # ---------------- decoder (self-attn, cross-attn, FFN, final norm) -------
    y = tgt_ref[...]                  # (B*St, D) f32
    dec_mask = dec_mask_ref[...]      # block-diag + causal + tgt key padding
    cross_mask = cross_mask_ref[...]  # block-diag only (memory_key_padding_mask=None)
    for l in range(N_DEC):
        sa_bqkv = take(3 * D); sa_bo = take(D)
        ca_bq = take(D); ca_bkv = take(2 * D); ca_bo = take(D)
        b1 = take(DFF); b2 = take(D)
        g1 = take(D); be1 = take(D); g2 = take(D); be2 = take(D)
        g3 = take(D); be3 = take(D)

        qkv = (mm(y, d_sa_wqkv[l]) + sa_bqkv).astype(bf16)
        sa = mha(qkv[:, :D], qkv[:, D:2 * D], qkv[:, 2 * D:],
                 d_sa_wo[l], sa_bo, dec_mask)
        y = layer_norm(y + sa, g1, be1)

        qc = (mm(y, d_ca_wq[l]) + ca_bq).astype(bf16)
        kv = (jnp.dot(mem_b, d_ca_wkv[l], preferred_element_type=jnp.float32)
              + ca_bkv).astype(bf16)
        ca = mha(qc, kv[:, :D], kv[:, D:], d_ca_wo[l], ca_bo, cross_mask)
        y = layer_norm(y + ca, g2, be2)

        h1 = jnp.maximum(mm(y, d_w1[l]) + b1, 0.0)
        ff = mm(h1, d_w2[l]) + b2
        y = layer_norm(y + ff, g3, be3)

    g = take(D); b = take(D)
    out_ref[...] = layer_norm(y, g, b)
    # NOTE: self.predictor is defined in __init__ but NOT used in forward().


def transformer_pallas(src_x, tgt_x, enc_mask, dec_mask, cross_mask, weights, scal):
    Nt = tgt_x.shape[0]
    vmem = pl.BlockSpec(memory_space=pltpu.MemorySpace.VMEM)
    n_in = 5 + len(weights) + 1
    return pl.pallas_call(
        _transformer_kernel,
        out_shape=jax.ShapeDtypeStruct((Nt, D_MODEL), jnp.float32),
        in_specs=[vmem] * n_in,
        out_specs=vmem,
    )(src_x, tgt_x, enc_mask, dec_mask, cross_mask, *weights, scal)


# ------------------------------ model wrapper -------------------------------

def generate_task_model_forward(weights, scal, embedding, pe, src_tokens, tgt_tokens):
    B, Ss = src_tokens.shape
    St = tgt_tokens.shape[1]
    neg_inf = jnp.float32(-jnp.inf)

    # get_key_padding_mask: additive float mask, -inf where token == 2 (PAD).
    src_kpm = jnp.where(src_tokens == 2, -jnp.inf, 0.0).astype(jnp.float32)  # (B, Ss)
    tgt_kpm = jnp.where(tgt_tokens == 2, -jnp.inf, 0.0).astype(jnp.float32)  # (B, St)

    # Batch-fold bookkeeping: row r of the folded activations is (b = r // S, i = r % S).
    qb_s = jnp.repeat(jnp.arange(B), Ss)
    qb_t = jnp.repeat(jnp.arange(B), St)
    pos_t = jnp.tile(jnp.arange(St), B)
    same_ss = qb_s[:, None] == qb_s[None, :]
    same_tt = qb_t[:, None] == qb_t[None, :]
    same_ts = qb_t[:, None] == qb_s[None, :]
    causal_ok = pos_t[:, None] >= pos_t[None, :]

    # Block-diagonal additive masks (cross-batch quadrants = -inf).
    enc_mask = jnp.where(same_ss, src_kpm.reshape(-1)[None, :], neg_inf)
    dec_mask = jnp.where(same_tt & causal_ok, tgt_kpm.reshape(-1)[None, :], neg_inf)
    cross_mask = jnp.where(same_ts, 0.0, neg_inf).astype(jnp.float32)

    # Embedding lookup + positional encoding (tiny gather/add; left to XLA),
    # already in folded (B*S, D) layout.
    src_x = (jnp.take(embedding, src_tokens.reshape(-1), axis=0)
             + jnp.tile(pe[:Ss], (B, 1)))
    tgt_x = (jnp.take(embedding, tgt_tokens.reshape(-1), axis=0)
             + jnp.tile(pe[:St], (B, 1)))
    # TODO(synk): dropout (p=0.1) after PE and inside layers is eval-mode identity.

    out_flat = transformer_pallas(src_x, tgt_x, enc_mask, dec_mask, cross_mask,
                                  weights, scal)
    return out_flat.reshape(B, St, D_MODEL)


# --------------------------- parameters & packing ---------------------------

def positional_encoding_table(max_len, d_model):
    pos = jnp.arange(max_len, dtype=jnp.float32)[:, None]
    div = jnp.exp(jnp.arange(0, d_model, 2, dtype=jnp.float32)
                  * -(math.log(10000.0) / d_model))
    pe = jnp.zeros((max_len, d_model), jnp.float32)
    pe = pe.at[:, 0::2].set(jnp.sin(pos * div))
    pe = pe.at[:, 1::2].set(jnp.cos(pos * div))
    return pe


def _init_linear(key, din, dout, scale=0.02):
    kw, kb = jax.random.split(key)
    return (jax.random.normal(kw, (din, dout), jnp.float32) * scale,
            jax.random.normal(kb, (dout,), jnp.float32) * scale)


def _init_mha(key, d):
    ks = jax.random.split(key, 4)
    wq, bq = _init_linear(ks[0], d, d)
    wk, bk = _init_linear(ks[1], d, d)
    wv, bv = _init_linear(ks[2], d, d)
    wo, bo = _init_linear(ks[3], d, d)
    return dict(wq=wq, bq=bq, wk=wk, bk=bk, wv=wv, bv=bv, wo=wo, bo=bo)


def _init_enc_layer(key, d, dff):
    ks = jax.random.split(key, 3)
    lp = {"self_attn": _init_mha(ks[0], d)}
    lp["w1"], lp["b1"] = _init_linear(ks[1], d, dff)
    lp["w2"], lp["b2"] = _init_linear(ks[2], dff, d)
    for n in ("norm1", "norm2"):
        lp[n + "_g"] = jnp.ones((d,), jnp.float32)
        lp[n + "_b"] = jnp.zeros((d,), jnp.float32)
    return lp


def _init_dec_layer(key, d, dff):
    ks = jax.random.split(key, 4)
    lp = {"self_attn": _init_mha(ks[0], d), "cross_attn": _init_mha(ks[1], d)}
    lp["w1"], lp["b1"] = _init_linear(ks[2], d, dff)
    lp["w2"], lp["b2"] = _init_linear(ks[3], dff, d)
    for n in ("norm1", "norm2", "norm3"):
        lp[n + "_g"] = jnp.ones((d,), jnp.float32)
        lp[n + "_b"] = jnp.zeros((d,), jnp.float32)
    return lp


def init_params(key, d_model=D_MODEL, vocab=VOCAB, dff=DFF, max_len=5000):
    keys = jax.random.split(key, 2 + N_ENC + N_DEC)
    return {
        "embedding": jax.random.normal(keys[0], (vocab, d_model), jnp.float32),
        "pe": positional_encoding_table(max_len, d_model),
        "encoder_layers": [_init_enc_layer(keys[2 + i], d_model, dff)
                           for i in range(N_ENC)],
        "decoder_layers": [_init_dec_layer(keys[2 + N_ENC + i], d_model, dff)
                           for i in range(N_DEC)],
        "enc_norm_g": jnp.ones((d_model,), jnp.float32),
        "enc_norm_b": jnp.zeros((d_model,), jnp.float32),
        "dec_norm_g": jnp.ones((d_model,), jnp.float32),
        "dec_norm_b": jnp.zeros((d_model,), jnp.float32),
    }


def pack_params(params):
    """Merge QKV weights, fold 1/sqrt(dh) into Q, stack per-layer weights (bf16),
    and pack ALL tiny f32 biases / LayerNorm params into one (46, 96) blob whose
    row order matches the static `take()` order inside the kernel."""
    scale = 1.0 / math.sqrt(DH)
    bf16 = jnp.bfloat16
    enc = params["encoder_layers"]
    dec = params["decoder_layers"]

    def qkv_w(p):
        return jnp.concatenate([p["wq"] * scale, p["wk"], p["wv"]], axis=1)

    def qkv_b(p):
        return jnp.concatenate([p["bq"] * scale, p["bk"], p["bv"]], axis=0)

    e_wqkv = jnp.stack([qkv_w(lp["self_attn"]) for lp in enc]).astype(bf16)
    e_wo = jnp.stack([lp["self_attn"]["wo"] for lp in enc]).astype(bf16)
    e_w1 = jnp.stack([lp["w1"] for lp in enc]).astype(bf16)
    e_w2 = jnp.stack([lp["w2"] for lp in enc]).astype(bf16)
    d_sa_wqkv = jnp.stack([qkv_w(lp["self_attn"]) for lp in dec]).astype(bf16)
    d_sa_wo = jnp.stack([lp["self_attn"]["wo"] for lp in dec]).astype(bf16)
    d_ca_wq = jnp.stack([lp["cross_attn"]["wq"] * scale for lp in dec]).astype(bf16)
    d_ca_wkv = jnp.stack([jnp.concatenate([lp["cross_attn"]["wk"],
                                           lp["cross_attn"]["wv"]], axis=1)
                          for lp in dec]).astype(bf16)
    d_ca_wo = jnp.stack([lp["cross_attn"]["wo"] for lp in dec]).astype(bf16)
    d_w1 = jnp.stack([lp["w1"] for lp in dec]).astype(bf16)
    d_w2 = jnp.stack([lp["w2"] for lp in dec]).astype(bf16)

    weights = (e_wqkv, e_wo, e_w1, e_w2,
               d_sa_wqkv, d_sa_wo, d_ca_wq, d_ca_wkv, d_ca_wo, d_w1, d_w2)

    rows = []

    def add(vec):
        vec = jnp.asarray(vec, jnp.float32).reshape(-1)
        rows.append(jnp.pad(vec, (0, ROWW - vec.shape[0])))

    for lp in enc:
        add(qkv_b(lp["self_attn"]))
        add(lp["self_attn"]["bo"])
        add(lp["b1"]); add(lp["b2"])
        add(lp["norm1_g"]); add(lp["norm1_b"])
        add(lp["norm2_g"]); add(lp["norm2_b"])
    add(params["enc_norm_g"]); add(params["enc_norm_b"])
    for lp in dec:
        add(qkv_b(lp["self_attn"]))
        add(lp["self_attn"]["bo"])
        add(lp["cross_attn"]["bq"] * scale)
        add(jnp.concatenate([lp["cross_attn"]["bk"], lp["cross_attn"]["bv"]]))
        add(lp["cross_attn"]["bo"])
        add(lp["b1"]); add(lp["b2"])
        add(lp["norm1_g"]); add(lp["norm1_b"])
        add(lp["norm2_g"]); add(lp["norm2_b"])
        add(lp["norm3_g"]); add(lp["norm3_b"])
    add(params["dec_norm_g"]); add(params["dec_norm_b"])

    scal = jnp.stack(rows)   # (46, 96) f32
    return weights, scal


# ----------------------------------- main -----------------------------------

if __name__ == "__main__":
    key = jax.random.PRNGKey(0)
    params = init_params(key)
    weights, scal = pack_params(params)

    # token id 2 is the PAD token (masked via key_padding_mask); pads at the end
    # so no attention row is ever fully masked (softmax denom >= 1).
    src = jnp.array([[1, 3, 4, 5, 6, 2, 2, 2],
                     [7, 8, 9, 1, 3, 4, 5, 2]], dtype=jnp.int32)   # (B=2, Ss=8)
    tgt = jnp.array([[1, 4, 5, 6, 7, 8, 2, 2],
                     [1, 3, 5, 7, 9, 2, 2, 2]], dtype=jnp.int32)   # (B=2, St=8)

    fwd = jax.jit(generate_task_model_forward)
    out = fwd(weights, scal, params["embedding"], params["pe"], src, tgt)
    out = jax.block_until_ready(out)

    assert out.shape == (2, 8, D_MODEL), out.shape
    assert bool(jnp.all(jnp.isfinite(out)))
    print("KERNEL_OK")
</pallas_src>

<mosaic_0001>
module attributes {stable_mosaic.version = 11 : i64} {
  func.func @_transformer_kernel(%arg0: memref<16x32xf32, #tpu.memory_space<vmem>>, %arg1: memref<16x32xf32, #tpu.memory_space<vmem>>, %arg2: memref<16x16xf32, #tpu.memory_space<vmem>>, %arg3: memref<16x16xf32, #tpu.memory_space<vmem>>, %arg4: memref<16x16xf32, #tpu.memory_space<vmem>>, %arg5: memref<2x32x96xbf16, #tpu.memory_space<vmem>>, %arg6: memref<2x32x32xbf16, #tpu.memory_space<vmem>>, %arg7: memref<2x32x64xbf16, #tpu.memory_space<vmem>>, %arg8: memref<2x64x32xbf16, #tpu.memory_space<vmem>>, %arg9: memref<2x32x96xbf16, #tpu.memory_space<vmem>>, %arg10: memref<2x32x32xbf16, #tpu.memory_space<vmem>>, %arg11: memref<2x32x32xbf16, #tpu.memory_space<vmem>>, %arg12: memref<2x32x64xbf16, #tpu.memory_space<vmem>>, %arg13: memref<2x32x32xbf16, #tpu.memory_space<vmem>>, %arg14: memref<2x32x64xbf16, #tpu.memory_space<vmem>>, %arg15: memref<2x64x32xbf16, #tpu.memory_space<vmem>>, %arg16: memref<46x96xf32, #tpu.memory_space<vmem>>, %arg17: memref<16x32xf32, #tpu.memory_space<vmem>>) attributes {dimension_semantics = [], scalar_prefetch = 0 : i64, scratch_operands = 0 : i64, tpu.core_type = #tpu.core_type<tc>} {
    %c0 = arith.constant 0 : index
    %c0_0 = arith.constant 0 : index
    %0 = vector.load %arg16[%c0, %c0_0] : memref<46x96xf32, #tpu.memory_space<vmem>>, vector<46x96xf32>
    %c0_1 = arith.constant 0 : index
    %c0_2 = arith.constant 0 : index
    %1 = vector.load %arg0[%c0_1, %c0_2] : memref<16x32xf32, #tpu.memory_space<vmem>>, vector<16x32xf32>
    %c0_3 = arith.constant 0 : index
    %c0_4 = arith.constant 0 : index
    %2 = vector.load %arg2[%c0_3, %c0_4] : memref<16x16xf32, #tpu.memory_space<vmem>>, vector<16x16xf32>
    %3 = vector.extract_strided_slice %0 {offsets = [0, 0], sizes = [1, 96], strides = [1, 1]} : vector<46x96xf32> to vector<1x96xf32>
    %4 = vector.extract_strided_slice %0 {offsets = [1, 0], sizes = [1, 32], strides = [1, 1]} : vector<46x96xf32> to vector<1x32xf32>
    %5 = vector.extract_strided_slice %0 {offsets = [2, 0], sizes = [1, 64], strides = [1, 1]} : vector<46x96xf32> to vector<1x64xf32>
    %6 = vector.extract_strided_slice %0 {offsets = [3, 0], sizes = [1, 32], strides = [1, 1]} : vector<46x96xf32> to vector<1x32xf32>
    %7 = vector.extract_strided_slice %0 {offsets = [4, 0], sizes = [1, 32], strides = [1, 1]} : vector<46x96xf32> to vector<1x32xf32>
    %8 = vector.extract_strided_slice %0 {offsets = [5, 0], sizes = [1, 32], strides = [1, 1]} : vector<46x96xf32> to vector<1x32xf32>
    %9 = vector.extract_strided_slice %0 {offsets = [6, 0], sizes = [1, 32], strides = [1, 1]} : vector<46x96xf32> to vector<1x32xf32>
    %10 = vector.extract_strided_slice %0 {offsets = [7, 0], sizes = [1, 32], strides = [1, 1]} : vector<46x96xf32> to vector<1x32xf32>
    %c0_5 = arith.constant 0 : index
    %c0_6 = arith.constant 0 : index
    %c0_7 = arith.constant 0 : index
    %11 = vector.load %arg5[%c0_5, %c0_6, %c0_7] : memref<2x32x96xbf16, #tpu.memory_space<vmem>>, vector<1x32x96xbf16>
    %12 = vector.shape_cast %11 : vector<1x32x96xbf16> to vector<32x96xbf16>
    %13 = arith.truncf %1 : vector<16x32xf32> to vector<16x32xbf16>
    %cst = arith.constant dense<0.000000e+00> : vector<16x96xf32>
    %14 = tpu.matmul %13, %12, %cst {dimension_numbers = #tpu.dot_dimension_numbers<[1], [0], [0], [1], [0, 0, 1, 1], [], []>} : vector<16x32xbf16>, vector<32x96xbf16>, vector<16x96xf32> -> vector<16x96xf32>
    %15 = vector.broadcast %3 : vector<1x96xf32> to vector<16x96xf32>
    %16 = arith.addf %14, %15 : vector<16x96xf32>
    %17 = arith.truncf %16 : vector<16x96xf32> to vector<16x96xbf16>
    %18 = vector.extract_strided_slice %17 {offsets = [0, 0], sizes = [16, 32], strides = [1, 1]} : vector<16x96xbf16> to vector<16x32xbf16>
    %19 = vector.extract_strided_slice %17 {offsets = [0, 32], sizes = [16, 32], strides = [1, 1]} : vector<16x96xbf16> to vector<16x32xbf16>
    %20 = vector.extract_strided_slice %17 {offsets = [0, 64], sizes = [16, 32], strides = [1, 1]} : vector<16x96xbf16> to vector<16x32xbf16>
    %c0_8 = arith.constant 0 : index
    %c0_9 = arith.constant 0 : index
    %c0_10 = arith.constant 0 : index
    %21 = vector.load %arg6[%c0_8, %c0_9, %c0_10] : memref<2x32x32xbf16, #tpu.memory_space<vmem>>, vector<1x32x32xbf16>
    %22 = vector.shape_cast %21 : vector<1x32x32xbf16> to vector<32x32xbf16>
    %23 = vector.extract_strided_slice %18 {offsets = [0, 0], sizes = [16, 8], strides = [1, 1]} : vector<16x32xbf16> to vector<16x8xbf16>
    %24 = vector.extract_strided_slice %19 {offsets = [0, 0], sizes = [16, 8], strides = [1, 1]} : vector<16x32xbf16> to vector<16x8xbf16>
    %cst_11 = arith.constant dense<0.000000e+00> : vector<16x16xf32>
    %25 = tpu.matmul %23, %24, %cst_11 {dimension_numbers = #tpu.dot_dimension_numbers<[1], [1], [0], [0], [0, 0, 1, 0], [], []>} : vector<16x8xbf16>, vector<16x8xbf16>, vector<16x16xf32> -> vector<16x16xf32>
    %26 = vector.extract_strided_slice %18 {offsets = [0, 8], sizes = [16, 8], strides = [1, 1]} : vector<16x32xbf16> to vector<16x8xbf16>
    %27 = vector.extract_strided_slice %19 {offsets = [0, 8], sizes = [16, 8], strides = [1, 1]} : vector<16x32xbf16> to vector<16x8xbf16>
    %cst_12 = arith.constant dense<0.000000e+00> : vector<16x16xf32>
    %28 = tpu.matmul %26, %27, %cst_12 {dimension_numbers = #tpu.dot_dimension_numbers<[1], [1], [0], [0], [0, 0, 1, 0], [], []>} : vector<16x8xbf16>, vector<16x8xbf16>, vector<16x16xf32> -> vector<16x16xf32>
    %29 = vector.extract_strided_slice %18 {offsets = [0, 16], sizes = [16, 8], strides = [1, 1]} : vector<16x32xbf16> to vector<16x8xbf16>
    %30 = vector.extract_strided_slice %19 {offsets = [0, 16], sizes = [16, 8], strides = [1, 1]} : vector<16x32xbf16> to vector<16x8xbf16>
    %cst_13 = arith.constant dense<0.000000e+00> : vector<16x16xf32>
    %31 = tpu.matmul %29, %30, %cst_13 {dimension_numbers = #tpu.dot_dimension_numbers<[1], [1], [0], [0], [0, 0, 1, 0], [], []>} : vector<16x8xbf16>, vector<16x8xbf16>, vector<16x16xf32> -> vector<16x16xf32>
    %32 = vector.extract_strided_slice %18 {offsets = [0, 24], sizes = [16, 8], strides = [1, 1]} : vector<16x32xbf16> to vector<16x8xbf16>
    %33 = vector.extract_strided_slice %19 {offsets = [0, 24], sizes = [16, 8], strides = [1, 1]} : vector<16x32xbf16> to vector<16x8xbf16>
    %cst_14 = arith.constant dense<0.000000e+00> : vector<16x16xf32>
    %34 = tpu.matmul %32, %33, %cst_14 {dimension_numbers = #tpu.dot_dimension_numbers<[1], [1], [0], [0], [0, 0, 1, 0], [], []>} : vector<16x8xbf16>, vector<16x8xbf16>, vector<16x16xf32> -> vector<16x16xf32>
    %35 = vector.shape_cast %25 : vector<16x16xf32> to vector<1x16x16xf32>
    %36 = vector.shape_cast %28 : vector<16x16xf32> to vector<1x16x16xf32>
    %37 = vector.shape_cast %31 : vector<16x16xf32> to vector<1x16x16xf32>
    %38 = vector.shape_cast %34 : vector<16x16xf32> to vector<1x16x16xf32>
    %39 = tpu.concatenate %35, %36, %37, %38 in 0 : vector<1x16x16xf32>, vector<1x16x16xf32>, vector<1x16x16xf32>, vector<1x16x16xf32> -> vector<4x16x16xf32>
    %40 = vector.shape_cast %2 : vector<16x16xf32> to vector<1x16x16xf32>
    %41 = vector.broadcast %40 : vector<1x16x16xf32> to vector<4x16x16xf32>
    %42 = arith.addf %39, %41 : vector<4x16x16xf32>
    %cst_15 = arith.constant dense<0xFF800000> : vector<4x16xf32>
    %43 = vector.multi_reduction <maximumf>, %42, %cst_15 [2] : vector<4x16x16xf32> to vector<4x16xf32>
    %44 = vector.shape_cast %43 : vector<4x16xf32> to vector<4x16x1xf32>
    %45 = vector.broadcast %44 : vector<4x16x1xf32> to vector<4x16x16xf32>
    %46 = arith.subf %42, %45 : vector<4x16x16xf32>
    %47 = math.exp %46 : vector<4x16x16xf32>
    %cst_16 = arith.constant dense<0.000000e+00> : vector<4x16xf32>
    %48 = vector.multi_reduction <add>, %47, %cst_16 [2] : vector<4x16x16xf32> to vector<4x16xf32>
    %49 = vector.shape_cast %48 : vector<4x16xf32> to vector<4x16x1xf32>
    %50 = tpu.reciprocal %49 {approx = true} : vector<4x16x1xf32> -> vector<4x16x1xf32>
    %51 = vector.broadcast %50 : vector<4x16x1xf32> to vector<4x16x16xf32>
    %52 = arith.mulf %47, %51 : vector<4x16x16xf32>
    %53 = arith.truncf %52 : vector<4x16x16xf32> to vector<4x16x16xbf16>
    %54 = vector.extract_strided_slice %53 {offsets = [0, 0, 0], sizes = [1, 16, 16], strides = [1, 1, 1]} : vector<4x16x16xbf16> to vector<1x16x16xbf16>
    %55 = vector.shape_cast %54 : vector<1x16x16xbf16> to vector<16x16xbf16>
    %56 = vector.extract_strided_slice %20 {offsets = [0, 0], sizes = [16, 8], strides = [1, 1]} : vector<16x32xbf16> to vector<16x8xbf16>
    %cst_17 = arith.constant dense<0.000000e+00> : vector<16x8xf32>
    %57 = tpu.matmul %55, %56, %cst_17 {dimension_numbers = #tpu.dot_dimension_numbers<[1], [0], [0], [1], [0, 0, 1, 1], [], []>} : vector<16x16xbf16>, vector<16x8xbf16>, vector<16x8xf32> -> vector<16x8xf32>
    %58 = vector.extract_strided_slice %53 {offsets = [1, 0, 0], sizes = [1, 16, 16], strides = [1, 1, 1]} : vector<4x16x16xbf16> to vector<1x16x16xbf16>
    %59 = vector.shape_cast %58 : vector<1x16x16xbf16> to vector<16x16xbf16>
    %60 = vector.extract_strided_slice %20 {offsets = [0, 8], sizes = [16, 8], strides = [1, 1]} : vector<16x32xbf16> to vector<16x8xbf16>
    %cst_18 = arith.constant dense<0.000000e+00> : vector<16x8xf32>
    %61 = tpu.matmul %59, %60, %cst_18 {dimension_numbers = #tpu.dot_dimension_numbers<[1], [0], [0], [1], [0, 0, 1, 1], [], []>} : vector<16x16xbf16>, vector<16x8xbf16>, vector<16x8xf32> -> vector<16x8xf32>
    %62 = vector.extract_strided_slice %53 {offsets = [2, 0, 0], sizes = [1, 16, 16], strides = [1, 1, 1]} : vector<4x16x16xbf16> to vector<1x16x16xbf16>
    %63 = vector.shape_cast %62 : vector<1x16x16xbf16> to vector<16x16xbf16>
    %64 = vector.extract_strided_slice %20 {offsets = [0, 16], sizes = [16, 8], strides = [1, 1]} : vector<16x32xbf16> to vector<16x8xbf16>
    %cst_19 = arith.constant dense<0.000000e+00> : vector<16x8xf32>
    %65 = tpu.matmul %63, %64, %cst_19 {dimension_numbers = #tpu.dot_dimension_numbers<[1], [0], [0], [1], [0, 0, 1, 1], [], []>} : vector<16x16xbf16>, vector<16x8xbf16>, vector<16x8xf32> -> vector<16x8xf32>
    %66 = vector.extract_strided_slice %53 {offsets = [3, 0, 0], sizes = [1, 16, 16], strides = [1, 1, 1]} : vector<4x16x16xbf16> to vector<1x16x16xbf16>
    %67 = vector.shape_cast %66 : vector<1x16x16xbf16> to vector<16x16xbf16>
    %68 = vector.extract_strided_slice %20 {offsets = [0, 24], sizes = [16, 8], strides = [1, 1]} : vector<16x32xbf16> to vector<16x8xbf16>
    %cst_20 = arith.constant dense<0.000000e+00> : vector<16x8xf32>
    %69 = tpu.matmul %67, %68, %cst_20 {dimension_numbers = #tpu.dot_dimension_numbers<[1], [0], [0], [1], [0, 0, 1, 1], [], []>} : vector<16x16xbf16>, vector<16x8xbf16>, vector<16x8xf32> -> vector<16x8xf32>
    %70 = tpu.concatenate %57, %61, %65, %69 in 1 : vector<16x8xf32>, vector<16x8xf32>, vector<16x8xf32>, vector<16x8xf32> -> vector<16x32xf32>
    %71 = arith.truncf %70 : vector<16x32xf32> to vector<16x32xbf16>
    %cst_21 = arith.constant dense<0.000000e+00> : vector<16x32xf32>
    %72 = tpu.matmul %71, %22, %cst_21 {dimension_numbers = #tpu.dot_dimension_numbers<[1], [0], [0], [1], [0, 0, 1, 1], [], []>} : vector<16x32xbf16>, vector<32x32xbf16>, vector<16x32xf32> -> vector<16x32xf32>
    %73 = vector.broadcast %4 : vector<1x32xf32> to vector<16x32xf32>
    %74 = arith.addf %72, %73 : vector<16x32xf32>
    %75 = arith.addf %1, %74 : vector<16x32xf32>
    %cst_22 = arith.constant dense<0.000000e+00> : vector<16xf32>
    %76 = vector.multi_reduction <add>, %75, %cst_22 [1] : vector<16x32xf32> to vector<16xf32>
    %77 = vector.shape_cast %76 : vector<16xf32> to vector<16x1xf32>
    %cst_23 = arith.constant 3.200000e+01 : f32
    %78 = vector.broadcast %cst_23 : f32 to vector<16x1xf32>
    %79 = arith.divf %77, %78 : vector<16x1xf32>
    %80 = vector.broadcast %79 : vector<16x1xf32> to vector<16x32xf32>
    %81 = arith.subf %75, %80 : vector<16x32xf32>
    %82 = arith.mulf %81, %81 : vector<16x32xf32>
    %cst_24 = arith.constant dense<0.000000e+00> : vector<16xf32>
    %83 = vector.multi_reduction <add>, %82, %cst_24 [1] : vector<16x32xf32> to vector<16xf32>
    %84 = vector.shape_cast %83 : vector<16xf32> to vector<16x1xf32>
    %cst_25 = arith.constant 3.200000e+01 : f32
    %85 = vector.broadcast %cst_25 : f32 to vector<16x1xf32>
    %86 = arith.divf %84, %85 : vector<16x1xf32>
    %cst_26 = arith.constant 9.99999974E-6 : f32
    %87 = vector.broadcast %cst_26 : f32 to vector<16x1xf32>
    %88 = arith.addf %86, %87 : vector<16x1xf32>
    %89 = math.rsqrt %88 : vector<16x1xf32>
    %90 = vector.broadcast %89 : vector<16x1xf32> to vector<16x32xf32>
    %91 = arith.mulf %81, %90 : vector<16x32xf32>
    %92 = vector.broadcast %7 : vector<1x32xf32> to vector<16x32xf32>
    %93 = arith.mulf %91, %92 : vector<16x32xf32>
    %94 = vector.broadcast %8 : vector<1x32xf32> to vector<16x32xf32>
    %95 = arith.addf %93, %94 : vector<16x32xf32>
    %c0_27 = arith.constant 0 : index
    %c0_28 = arith.constant 0 : index
    %c0_29 = arith.constant 0 : index
    %96 = vector.load %arg7[%c0_27, %c0_28, %c0_29] : memref<2x32x64xbf16, #tpu.memory_space<vmem>>, vector<1x32x64xbf16>
    %97 = vector.shape_cast %96 : vector<1x32x64xbf16> to vector<32x64xbf16>
    %98 = arith.truncf %95 : vector<16x32xf32> to vector<16x32xbf16>
    %cst_30 = arith.constant dense<0.000000e+00> : vector<16x64xf32>
    %99 = tpu.matmul %98, %97, %cst_30 {dimension_numbers = #tpu.dot_dimension_numbers<[1], [0], [0], [1], [0, 0, 1, 1], [], []>} : vector<16x32xbf16>, vector<32x64xbf16>, vector<16x64xf32> -> vector<16x64xf32>
    %100 = vector.broadcast %5 : vector<1x64xf32> to vector<16x64xf32>
    %101 = arith.addf %99, %100 : vector<16x64xf32>
    %cst_31 = arith.constant 0.000000e+00 : f32
    %102 = vector.broadcast %cst_31 : f32 to vector<16x64xf32>
    %103 = arith.maximumf %101, %102 : vector<16x64xf32>
    %c0_32 = arith.constant 0 : index
    %c0_33 = arith.constant 0 : index
    %c0_34 = arith.constant 0 : index
    %104 = vector.load %arg8[%c0_32, %c0_33, %c0_34] : memref<2x64x32xbf16, #tpu.memory_space<vmem>>, vector<1x64x32xbf16>
    %105 = vector.shape_cast %104 : vector<1x64x32xbf16> to vector<64x32xbf16>
    %106 = arith.truncf %103 : vector<16x64xf32> to vector<16x64xbf16>
    %cst_35 = arith.constant dense<0.000000e+00> : vector<16x32xf32>
    %107 = tpu.matmul %106, %105, %cst_35 {dimension_numbers = #tpu.dot_dimension_numbers<[1], [0], [0], [1], [0, 0, 1, 1], [], []>} : vector<16x64xbf16>, vector<64x32xbf16>, vector<16x32xf32> -> vector<16x32xf32>
    %108 = vector.broadcast %6 : vector<1x32xf32> to vector<16x32xf32>
    %109 = arith.addf %107, %108 : vector<16x32xf32>
    %110 = arith.addf %95, %109 : vector<16x32xf32>
    %cst_36 = arith.constant dense<0.000000e+00> : vector<16xf32>
    %111 = vector.multi_reduction <add>, %110, %cst_36 [1] : vector<16x32xf32> to vector<16xf32>
    %112 = vector.shape_cast %111 : vector<16xf32> to vector<16x1xf32>
    %cst_37 = arith.constant 3.200000e+01 : f32
    %113 = vector.broadcast %cst_37 : f32 to vector<16x1xf32>
    %114 = arith.divf %112, %113 : vector<16x1xf32>
    %115 = vector.broadcast %114 : vector<16x1xf32> to vector<16x32xf32>
    %116 = arith.subf %110, %115 : vector<16x32xf32>
    %117 = arith.mulf %116, %116 : vector<16x32xf32>
    %cst_38 = arith.constant dense<0.000000e+00> : vector<16xf32>
    %118 = vector.multi_reduction <add>, %117, %cst_38 [1] : vector<16x32xf32> to vector<16xf32>
    %119 = vector.shape_cast %118 : vector<16xf32> to vector<16x1xf32>
    %cst_39 = arith.constant 3.200000e+01 : f32
    %120 = vector.broadcast %cst_39 : f32 to vector<16x1xf32>
    %121 = arith.divf %119, %120 : vector<16x1xf32>
    %cst_40 = arith.constant 9.99999974E-6 : f32
    %122 = vector.broadcast %cst_40 : f32 to vector<16x1xf32>
    %123 = arith.addf %121, %122 : vector<16x1xf32>
    %124 = math.rsqrt %123 : vector<16x1xf32>
    %125 = vector.broadcast %124 : vector<16x1xf32> to vector<16x32xf32>
    %126 = arith.mulf %116, %125 : vector<16x32xf32>
    %127 = vector.broadcast %9 : vector<1x32xf32> to vector<16x32xf32>
    %128 = arith.mulf %126, %127 : vector<16x32xf32>
    %129 = vector.broadcast %10 : vector<1x32xf32> to vector<16x32xf32>
    %130 = arith.addf %128, %129 : vector<16x32xf32>
    %131 = vector.extract_strided_slice %0 {offsets = [8, 0], sizes = [1, 96], strides = [1, 1]} : vector<46x96xf32> to vector<1x96xf32>
    %132 = vector.extract_strided_slice %0 {offsets = [9, 0], sizes = [1, 32], strides = [1, 1]} : vector<46x96xf32> to vector<1x32xf32>
    %133 = vector.extract_strided_slice %0 {offsets = [10, 0], sizes = [1, 64], strides = [1, 1]} : vector<46x96xf32> to vector<1x64xf32>
    %134 = vector.extract_strided_slice %0 {offsets = [11, 0], sizes = [1, 32], strides = [1, 1]} : vector<46x96xf32> to vector<1x32xf32>
    %135 = vector.extract_strided_slice %0 {offsets = [12, 0], sizes = [1, 32], strides = [1, 1]} : vector<46x96xf32> to vector<1x32xf32>
    %136 = vector.extract_strided_slice %0 {offsets = [13, 0], sizes = [1, 32], strides = [1, 1]} : vector<46x96xf32> to vector<1x32xf32>
    %137 = vector.extract_strided_slice %0 {offsets = [14, 0], sizes = [1, 32], strides = [1, 1]} : vector<46x96xf32> to vector<1x32xf32>
    %138 = vector.extract_strided_slice %0 {offsets = [15, 0], sizes = [1, 32], strides = [1, 1]} : vector<46x96xf32> to vector<1x32xf32>
    %c1 = arith.constant 1 : index
    %c0_41 = arith.constant 0 : index
    %c0_42 = arith.constant 0 : index
    %139 = vector.load %arg5[%c1, %c0_41, %c0_42] : memref<2x32x96xbf16, #tpu.memory_space<vmem>>, vector<1x32x96xbf16>
    %140 = vector.shape_cast %139 : vector<1x32x96xbf16> to vector<32x96xbf16>
    %141 = arith.truncf %130 : vector<16x32xf32> to vector<16x32xbf16>
    %cst_43 = arith.constant dense<0.000000e+00> : vector<16x96xf32>
    %142 = tpu.matmul %141, %140, %cst_43 {dimension_numbers = #tpu.dot_dimension_numbers<[1], [0], [0], [1], [0, 0, 1, 1], [], []>} : vector<16x32xbf16>, vector<32x96xbf16>, vector<16x96xf32> -> vector<16x96xf32>
    %143 = vector.broadcast %131 : vector<1x96xf32> to vector<16x96xf32>
    %144 = arith.addf %142, %143 : vector<16x96xf32>
    %145 = arith.truncf %144 : vector<16x96xf32> to vector<16x96xbf16>
    %146 = vector.extract_strided_slice %145 {offsets = [0, 0], sizes = [16, 32], strides = [1, 1]} : vector<16x96xbf16> to vector<16x32xbf16>
    %147 = vector.extract_strided_slice %145 {offsets = [0, 32], sizes = [16, 32], strides = [1, 1]} : vector<16x96xbf16> to vector<16x32xbf16>
    %148 = vector.extract_strided_slice %145 {offsets = [0, 64], sizes = [16, 32], strides = [1, 1]} : vector<16x96xbf16> to vector<16x32xbf16>
    %c1_44 = arith.constant 1 : index
    %c0_45 = arith.constant 0 : index
    %c0_46 = arith.constant 0 : index
    %149 = vector.load %arg6[%c1_44, %c0_45, %c0_46] : memref<2x32x32xbf16, #tpu.memory_space<vmem>>, vector<1x32x32xbf16>
    %150 = vector.shape_cast %149 : vector<1x32x32xbf16> to vector<32x32xbf16>
    %151 = vector.extract_strided_slice %146 {offsets = [0, 0], sizes = [16, 8], strides = [1, 1]} : vector<16x32xbf16> to vector<16x8xbf16>
    %152 = vector.extract_strided_slice %147 {offsets = [0, 0], sizes = [16, 8], strides = [1, 1]} : vector<16x32xbf16> to vector<16x8xbf16>
    %cst_47 = arith.constant dense<0.000000e+00> : vector<16x16xf32>
    %153 = tpu.matmul %151, %152, %cst_47 {dimension_numbers = #tpu.dot_dimension_numbers<[1], [1], [0], [0], [0, 0, 1, 0], [], []>} : vector<16x8xbf16>, vector<16x8xbf16>, vector<16x16xf32> -> vector<16x16xf32>
    %154 = vector.extract_strided_slice %146 {offsets = [0, 8], sizes = [16, 8], strides = [1, 1]} : vector<16x32xbf16> to vector<16x8xbf16>
    %155 = vector.extract_strided_slice %147 {offsets = [0, 8], sizes = [16, 8], strides = [1, 1]} : vector<16x32xbf16> to vector<16x8xbf16>
    %cst_48 = arith.constant dense<0.000000e+00> : vector<16x16xf32>
    %156 = tpu.matmul %154, %155, %cst_48 {dimension_numbers = #tpu.dot_dimension_numbers<[1], [1], [0], [0], [0, 0, 1, 0], [], []>} : vector<16x8xbf16>, vector<16x8xbf16>, vector<16x16xf32> -> vector<16x16xf32>
    %157 = vector.extract_strided_slice %146 {offsets = [0, 16], sizes = [16, 8], strides = [1, 1]} : vector<16x32xbf16> to vector<16x8xbf16>
    %158 = vector.extract_strided_slice %147 {offsets = [0, 16], sizes = [16, 8], strides = [1, 1]} : vector<16x32xbf16> to vector<16x8xbf16>
    %cst_49 = arith.constant dense<0.000000e+00> : vector<16x16xf32>
    %159 = tpu.matmul %157, %158, %cst_49 {dimension_numbers = #tpu.dot_dimension_numbers<[1], [1], [0], [0], [0, 0, 1, 0], [], []>} : vector<16x8xbf16>, vector<16x8xbf16>, vector<16x16xf32> -> vector<16x16xf32>
    %160 = vector.extract_strided_slice %146 {offsets = [0, 24], sizes = [16, 8], strides = [1, 1]} : vector<16x32xbf16> to vector<16x8xbf16>
    %161 = vector.extract_strided_slice %147 {offsets = [0, 24], sizes = [16, 8], strides = [1, 1]} : vector<16x32xbf16> to vector<16x8xbf16>
    %cst_50 = arith.constant dense<0.000000e+00> : vector<16x16xf32>
    %162 = tpu.matmul %160, %161, %cst_50 {dimension_numbers = #tpu.dot_dimension_numbers<[1], [1], [0], [0], [0, 0, 1, 0], [], []>} : vector<16x8xbf16>, vector<16x8xbf16>, vector<16x16xf32> -> vector<16x16xf32>
    %163 = vector.shape_cast %153 : vector<16x16xf32> to vector<1x16x16xf32>
    %164 = vector.shape_cast %156 : vector<16x16xf32> to vector<1x16x16xf32>
    %165 = vector.shape_cast %159 : vector<16x16xf32> to vector<1x16x16xf32>
    %166 = vector.shape_cast %162 : vector<16x16xf32> to vector<1x16x16xf32>
    %167 = tpu.concatenate %163, %164, %165, %166 in 0 : vector<1x16x16xf32>, vector<1x16x16xf32>, vector<1x16x16xf32>, vector<1x16x16xf32> -> vector<4x16x16xf32>
    %168 = vector.shape_cast %2 : vector<16x16xf32> to vector<1x16x16xf32>
    %169 = vector.broadcast %168 : vector<1x16x16xf32> to vector<4x16x16xf32>
    %170 = arith.addf %167, %169 : vector<4x16x16xf32>
    %cst_51 = arith.constant dense<0xFF800000> : vector<4x16xf32>
    %171 = vector.multi_reduction <maximumf>, %170, %cst_51 [2] : vector<4x16x16xf32> to vector<4x16xf32>
    %172 = vector.shape_cast %171 : vector<4x16xf32> to vector<4x16x1xf32>
    %173 = vector.broadcast %172 : vector<4x16x1xf32> to vector<4x16x16xf32>
    %174 = arith.subf %170, %173 : vector<4x16x16xf32>
    %175 = math.exp %174 : vector<4x16x16xf32>
    %cst_52 = arith.constant dense<0.000000e+00> : vector<4x16xf32>
    %176 = vector.multi_reduction <add>, %175, %cst_52 [2] : vector<4x16x16xf32> to vector<4x16xf32>
    %177 = vector.shape_cast %176 : vector<4x16xf32> to vector<4x16x1xf32>
    %178 = tpu.reciprocal %177 {approx = true} : vector<4x16x1xf32> -> vector<4x16x1xf32>
    %179 = vector.broadcast %178 : vector<4x16x1xf32> to vector<4x16x16xf32>
    %180 = arith.mulf %175, %179 : vector<4x16x16xf32>
    %181 = arith.truncf %180 : vector<4x16x16xf32> to vector<4x16x16xbf16>
    %182 = vector.extract_strided_slice %181 {offsets = [0, 0, 0], sizes = [1, 16, 16], strides = [1, 1, 1]} : vector<4x16x16xbf16> to vector<1x16x16xbf16>
    %183 = vector.shape_cast %182 : vector<1x16x16xbf16> to vector<16x16xbf16>
    %184 = vector.extract_strided_slice %148 {offsets = [0, 0], sizes = [16, 8], strides = [1, 1]} : vector<16x32xbf16> to vector<16x8xbf16>
    %cst_53 = arith.constant dense<0.000000e+00> : vector<16x8xf32>
    %185 = tpu.matmul %183, %184, %cst_53 {dimension_numbers = #tpu.dot_dimension_numbers<[1], [0], [0], [1], [0, 0, 1, 1], [], []>} : vector<16x16xbf16>, vector<16x8xbf16>, vector<16x8xf32> -> vector<16x8xf32>
    %186 = vector.extract_strided_slice %181 {offsets = [1, 0, 0], sizes = [1, 16, 16], strides = [1, 1, 1]} : vector<4x16x16xbf16> to vector<1x16x16xbf16>
    %187 = vector.shape_cast %186 : vector<1x16x16xbf16> to vector<16x16xbf16>
    %188 = vector.extract_strided_slice %148 {offsets = [0, 8], sizes = [16, 8], strides = [1, 1]} : vector<16x32xbf16> to vector<16x8xbf16>
    %cst_54 = arith.constant dense<0.000000e+00> : vector<16x8xf32>
    %189 = tpu.matmul %187, %188, %cst_54 {dimension_numbers = #tpu.dot_dimension_numbers<[1], [0], [0], [1], [0, 0, 1, 1], [], []>} : vector<16x16xbf16>, vector<16x8xbf16>, vector<16x8xf32> -> vector<16x8xf32>
    %190 = vector.extract_strided_slice %181 {offsets = [2, 0, 0], sizes = [1, 16, 16], strides = [1, 1, 1]} : vector<4x16x16xbf16> to vector<1x16x16xbf16>
    %191 = vector.shape_cast %190 : vector<1x16x16xbf16> to vector<16x16xbf16>
    %192 = vector.extract_strided_slice %148 {offsets = [0, 16], sizes = [16, 8], strides = [1, 1]} : vector<16x32xbf16> to vector<16x8xbf16>
    %cst_55 = arith.constant dense<0.000000e+00> : vector<16x8xf32>
    %193 = tpu.matmul %191, %192, %cst_55 {dimension_numbers = #tpu.dot_dimension_numbers<[1], [0], [0], [1], [0, 0, 1, 1], [], []>} : vector<16x16xbf16>, vector<16x8xbf16>, vector<16x8xf32> -> vector<16x8xf32>
    %194 = vector.extract_strided_slice %181 {offsets = [3, 0, 0], sizes = [1, 16, 16], strides = [1, 1, 1]} : vector<4x16x16xbf16> to vector<1x16x16xbf16>
    %195 = vector.shape_cast %194 : vector<1x16x16xbf16> to vector<16x16xbf16>
    %196 = vector.extract_strided_slice %148 {offsets = [0, 24], sizes = [16, 8], strides = [1, 1]} : vector<16x32xbf16> to vector<16x8xbf16>
    %cst_56 = arith.constant dense<0.000000e+00> : vector<16x8xf32>
    %197 = tpu.matmul %195, %196, %cst_56 {dimension_numbers = #tpu.dot_dimension_numbers<[1], [0], [0], [1], [0, 0, 1, 1], [], []>} : vector<16x16xbf16>, vector<16x8xbf16>, vector<16x8xf32> -> vector<16x8xf32>
    %198 = tpu.concatenate %185, %189, %193, %197 in 1 : vector<16x8xf32>, vector<16x8xf32>, vector<16x8xf32>, vector<16x8xf32> -> vector<16x32xf32>
    %199 = arith.truncf %198 : vector<16x32xf32> to vector<16x32xbf16>
    %cst_57 = arith.constant dense<0.000000e+00> : vector<16x32xf32>
    %200 = tpu.matmul %199, %150, %cst_57 {dimension_numbers = #tpu.dot_dimension_numbers<[1], [0], [0], [1], [0, 0, 1, 1], [], []>} : vector<16x32xbf16>, vector<32x32xbf16>, vector<16x32xf32> -> vector<16x32xf32>
    %201 = vector.broadcast %132 : vector<1x32xf32> to vector<16x32xf32>
    %202 = arith.addf %200, %201 : vector<16x32xf32>
    %203 = arith.addf %130, %202 : vector<16x32xf32>
    %cst_58 = arith.constant dense<0.000000e+00> : vector<16xf32>
    %204 = vector.multi_reduction <add>, %203, %cst_58 [1] : vector<16x32xf32> to vector<16xf32>
    %205 = vector.shape_cast %204 : vector<16xf32> to vector<16x1xf32>
    %cst_59 = arith.constant 3.200000e+01 : f32
    %206 = vector.broadcast %cst_59 : f32 to vector<16x1xf32>
    %207 = arith.divf %205, %206 : vector<16x1xf32>
    %208 = vector.broadcast %207 : vector<16x1xf32> to vector<16x32xf32>
    %209 = arith.subf %203, %208 : vector<16x32xf32>
    %210 = arith.mulf %209, %209 : vector<16x32xf32>
    %cst_60 = arith.constant dense<0.000000e+00> : vector<16xf32>
    %211 = vector.multi_reduction <add>, %210, %cst_60 [1] : vector<16x32xf32> to vector<16xf32>
    %212 = vector.shape_cast %211 : vector<16xf32> to vector<16x1xf32>
    %cst_61 = arith.constant 3.200000e+01 : f32
    %213 = vector.broadcast %cst_61 : f32 to vector<16x1xf32>
    %214 = arith.divf %212, %213 : vector<16x1xf32>
    %cst_62 = arith.constant 9.99999974E-6 : f32
    %215 = vector.broadcast %cst_62 : f32 to vector<16x1xf32>
    %216 = arith.addf %214, %215 : vector<16x1xf32>
    %217 = math.rsqrt %216 : vector<16x1xf32>
    %218 = vector.broadcast %217 : vector<16x1xf32> to vector<16x32xf32>
    %219 = arith.mulf %209, %218 : vector<16x32xf32>
    %220 = vector.broadcast %135 : vector<1x32xf32> to vector<16x32xf32>
    %221 = arith.mulf %219, %220 : vector<16x32xf32>
    %222 = vector.broadcast %136 : vector<1x32xf32> to vector<16x32xf32>
    %223 = arith.addf %221, %222 : vector<16x32xf32>
    %c1_63 = arith.constant 1 : index
    %c0_64 = arith.constant 0 : index
    %c0_65 = arith.constant 0 : index
    %224 = vector.load %arg7[%c1_63, %c0_64, %c0_65] : memref<2x32x64xbf16, #tpu.memory_space<vmem>>, vector<1x32x64xbf16>
    %225 = vector.shape_cast %224 : vector<1x32x64xbf16> to vector<32x64xbf16>
    %226 = arith.truncf %223 : vector<16x32xf32> to vector<16x32xbf16>
    %cst_66 = arith.constant dense<0.000000e+00> : vector<16x64xf32>
    %227 = tpu.matmul %226, %225, %cst_66 {dimension_numbers = #tpu.dot_dimension_numbers<[1], [0], [0], [1], [0, 0, 1, 1], [], []>} : vector<16x32xbf16>, vector<32x64xbf16>, vector<16x64xf32> -> vector<16x64xf32>
    %228 = vector.broadcast %133 : vector<1x64xf32> to vector<16x64xf32>
    %229 = arith.addf %227, %228 : vector<16x64xf32>
    %cst_67 = arith.constant 0.000000e+00 : f32
    %230 = vector.broadcast %cst_67 : f32 to vector<16x64xf32>
    %231 = arith.maximumf %229, %230 : vector<16x64xf32>
    %c1_68 = arith.constant 1 : index
    %c0_69 = arith.constant 0 : index
    %c0_70 = arith.constant 0 : index
    %232 = vector.load %arg8[%c1_68, %c0_69, %c0_70] : memref<2x64x32xbf16, #tpu.memory_space<vmem>>, vector<1x64x32xbf16>
    %233 = vector.shape_cast %232 : vector<1x64x32xbf16> to vector<64x32xbf16>
    %234 = arith.truncf %231 : vector<16x64xf32> to vector<16x64xbf16>
    %cst_71 = arith.constant dense<0.000000e+00> : vector<16x32xf32>
    %235 = tpu.matmul %234, %233, %cst_71 {dimension_numbers = #tpu.dot_dimension_numbers<[1], [0], [0], [1], [0, 0, 1, 1], [], []>} : vector<16x64xbf16>, vector<64x32xbf16>, vector<16x32xf32> -> vector<16x32xf32>
    %236 = vector.broadcast %134 : vector<1x32xf32> to vector<16x32xf32>
    %237 = arith.addf %235, %236 : vector<16x32xf32>
    %238 = arith.addf %223, %237 : vector<16x32xf32>
    %cst_72 = arith.constant dense<0.000000e+00> : vector<16xf32>
    %239 = vector.multi_reduction <add>, %238, %cst_72 [1] : vector<16x32xf32> to vector<16xf32>
    %240 = vector.shape_cast %239 : vector<16xf32> to vector<16x1xf32>
    %cst_73 = arith.constant 3.200000e+01 : f32
    %241 = vector.broadcast %cst_73 : f32 to vector<16x1xf32>
    %242 = arith.divf %240, %241 : vector<16x1xf32>
    %243 = vector.broadcast %242 : vector<16x1xf32> to vector<16x32xf32>
    %244 = arith.subf %238, %243 : vector<16x32xf32>
    %245 = arith.mulf %244, %244 : vector<16x32xf32>
    %cst_74 = arith.constant dense<0.000000e+00> : vector<16xf32>
    %246 = vector.multi_reduction <add>, %245, %cst_74 [1] : vector<16x32xf32> to vector<16xf32>
    %247 = vector.shape_cast %246 : vector<16xf32> to vector<16x1xf32>
    %cst_75 = arith.constant 3.200000e+01 : f32
    %248 = vector.broadcast %cst_75 : f32 to vector<16x1xf32>
    %249 = arith.divf %247, %248 : vector<16x1xf32>
    %cst_76 = arith.constant 9.99999974E-6 : f32
    %250 = vector.broadcast %cst_76 : f32 to vector<16x1xf32>
    %251 = arith.addf %249, %250 : vector<16x1xf32>
    %252 = math.rsqrt %251 : vector<16x1xf32>
    %253 = vector.broadcast %252 : vector<16x1xf32> to vector<16x32xf32>
    %254 = arith.mulf %244, %253 : vector<16x32xf32>
    %255 = vector.broadcast %137 : vector<1x32xf32> to vector<16x32xf32>
    %256 = arith.mulf %254, %255 : vector<16x32xf32>
    %257 = vector.broadcast %138 : vector<1x32xf32> to vector<16x32xf32>
    %258 = arith.addf %256, %257 : vector<16x32xf32>
    %259 = vector.extract_strided_slice %0 {offsets = [16, 0], sizes = [1, 32], strides = [1, 1]} : vector<46x96xf32> to vector<1x32xf32>
    %260 = vector.extract_strided_slice %0 {offsets = [17, 0], sizes = [1, 32], strides = [1, 1]} : vector<46x96xf32> to vector<1x32xf32>
    %cst_77 = arith.constant dense<0.000000e+00> : vector<16xf32>
    %261 = vector.multi_reduction <add>, %258, %cst_77 [1] : vector<16x32xf32> to vector<16xf32>
    %262 = vector.shape_cast %261 : vector<16xf32> to vector<16x1xf32>
    %cst_78 = arith.constant 3.200000e+01 : f32
    %263 = vector.broadcast %cst_78 : f32 to vector<16x1xf32>
    %264 = arith.divf %262, %263 : vector<16x1xf32>
    %265 = vector.broadcast %264 : vector<16x1xf32> to vector<16x32xf32>
    %266 = arith.subf %258, %265 : vector<16x32xf32>
    %267 = arith.mulf %266, %266 : vector<16x32xf32>
    %cst_79 = arith.constant dense<0.000000e+00> : vector<16xf32>
    %268 = vector.multi_reduction <add>, %267, %cst_79 [1] : vector<16x32xf32> to vector<16xf32>
    %269 = vector.shape_cast %268 : vector<16xf32> to vector<16x1xf32>
    %cst_80 = arith.constant 3.200000e+01 : f32
    %270 = vector.broadcast %cst_80 : f32 to vector<16x1xf32>
    %271 = arith.divf %269, %270 : vector<16x1xf32>
    %cst_81 = arith.constant 9.99999974E-6 : f32
    %272 = vector.broadcast %cst_81 : f32 to vector<16x1xf32>
    %273 = arith.addf %271, %272 : vector<16x1xf32>
    %274 = math.rsqrt %273 : vector<16x1xf32>
    %275 = vector.broadcast %274 : vector<16x1xf32> to vector<16x32xf32>
    %276 = arith.mulf %266, %275 : vector<16x32xf32>
    %277 = vector.broadcast %259 : vector<1x32xf32> to vector<16x32xf32>
    %278 = arith.mulf %276, %277 : vector<16x32xf32>
    %279 = vector.broadcast %260 : vector<1x32xf32> to vector<16x32xf32>
    %280 = arith.addf %278, %279 : vector<16x32xf32>
    %281 = arith.truncf %280 : vector<16x32xf32> to vector<16x32xbf16>
    %c0_82 = arith.constant 0 : index
    %c0_83 = arith.constant 0 : index
    %282 = vector.load %arg1[%c0_82, %c0_83] : memref<16x32xf32, #tpu.memory_space<vmem>>, vector<16x32xf32>
    %c0_84 = arith.constant 0 : index
    %c0_85 = arith.constant 0 : index
    %283 = vector.load %arg3[%c0_84, %c0_85] : memref<16x16xf32, #tpu.memory_space<vmem>>, vector<16x16xf32>
    %c0_86 = arith.constant 0 : index
    %c0_87 = arith.constant 0 : index
    %284 = vector.load %arg4[%c0_86, %c0_87] : memref<16x16xf32, #tpu.memory_space<vmem>>, vector<16x16xf32>
    %285 = vector.extract_strided_slice %0 {offsets = [18, 0], sizes = [1, 96], strides = [1, 1]} : vector<46x96xf32> to vector<1x96xf32>
    %286 = vector.extract_strided_slice %0 {offsets = [19, 0], sizes = [1, 32], strides = [1, 1]} : vector<46x96xf32> to vector<1x32xf32>
    %287 = vector.extract_strided_slice %0 {offsets = [20, 0], sizes = [1, 32], strides = [1, 1]} : vector<46x96xf32> to vector<1x32xf32>
    %288 = vector.extract_strided_slice %0 {offsets = [21, 0], sizes = [1, 64], strides = [1, 1]} : vector<46x96xf32> to vector<1x64xf32>
    %289 = vector.extract_strided_slice %0 {offsets = [22, 0], sizes = [1, 32], strides = [1, 1]} : vector<46x96xf32> to vector<1x32xf32>
    %290 = vector.extract_strided_slice %0 {offsets = [23, 0], sizes = [1, 64], strides = [1, 1]} : vector<46x96xf32> to vector<1x64xf32>
    %291 = vector.extract_strided_slice %0 {offsets = [24, 0], sizes = [1, 32], strides = [1, 1]} : vector<46x96xf32> to vector<1x32xf32>
    %292 = vector.extract_strided_slice %0 {offsets = [25, 0], sizes = [1, 32], strides = [1, 1]} : vector<46x96xf32> to vector<1x32xf32>
    %293 = vector.extract_strided_slice %0 {offsets = [26, 0], sizes = [1, 32], strides = [1, 1]} : vector<46x96xf32> to vector<1x32xf32>
    %294 = vector.extract_strided_slice %0 {offsets = [27, 0], sizes = [1, 32], strides = [1, 1]} : vector<46x96xf32> to vector<1x32xf32>
    %295 = vector.extract_strided_slice %0 {offsets = [28, 0], sizes = [1, 32], strides = [1, 1]} : vector<46x96xf32> to vector<1x32xf32>
    %296 = vector.extract_strided_slice %0 {offsets = [29, 0], sizes = [1, 32], strides = [1, 1]} : vector<46x96xf32> to vector<1x32xf32>
    %297 = vector.extract_strided_slice %0 {offsets = [30, 0], sizes = [1, 32], strides = [1, 1]} : vector<46x96xf32> to vector<1x32xf32>
    %c0_88 = arith.constant 0 : index
    %c0_89 = arith.constant 0 : index
    %c0_90 = arith.constant 0 : index
    %298 = vector.load %arg9[%c0_88, %c0_89, %c0_90] : memref<2x32x96xbf16, #tpu.memory_space<vmem>>, vector<1x32x96xbf16>
    %299 = vector.shape_cast %298 : vector<1x32x96xbf16> to vector<32x96xbf16>
    %300 = arith.truncf %282 : vector<16x32xf32> to vector<16x32xbf16>
    %cst_91 = arith.constant dense<0.000000e+00> : vector<16x96xf32>
    %301 = tpu.matmul %300, %299, %cst_91 {dimension_numbers = #tpu.dot_dimension_numbers<[1], [0], [0], [1], [0, 0, 1, 1], [], []>} : vector<16x32xbf16>, vector<32x96xbf16>, vector<16x96xf32> -> vector<16x96xf32>
    %302 = vector.broadcast %285 : vector<1x96xf32> to vector<16x96xf32>
    %303 = arith.addf %301, %302 : vector<16x96xf32>
    %304 = arith.truncf %303 : vector<16x96xf32> to vector<16x96xbf16>
    %305 = vector.extract_strided_slice %304 {offsets = [0, 0], sizes = [16, 32], strides = [1, 1]} : vector<16x96xbf16> to vector<16x32xbf16>
    %306 = vector.extract_strided_slice %304 {offsets = [0, 32], sizes = [16, 32], strides = [1, 1]} : vector<16x96xbf16> to vector<16x32xbf16>
    %307 = vector.extract_strided_slice %304 {offsets = [0, 64], sizes = [16, 32], strides = [1, 1]} : vector<16x96xbf16> to vector<16x32xbf16>
    %c0_92 = arith.constant 0 : index
    %c0_93 = arith.constant 0 : index
    %c0_94 = arith.constant 0 : index
    %308 = vector.load %arg10[%c0_92, %c0_93, %c0_94] : memref<2x32x32xbf16, #tpu.memory_space<vmem>>, vector<1x32x32xbf16>
    %309 = vector.shape_cast %308 : vector<1x32x32xbf16> to vector<32x32xbf16>
    %310 = vector.extract_strided_slice %305 {offsets = [0, 0], sizes = [16, 8], strides = [1, 1]} : vector<16x32xbf16> to vector<16x8xbf16>
    %311 = vector.extract_strided_slice %306 {offsets = [0, 0], sizes = [16, 8], strides = [1, 1]} : vector<16x32xbf16> to vector<16x8xbf16>
    %cst_95 = arith.constant dense<0.000000e+00> : vector<16x16xf32>
    %312 = tpu.matmul %310, %311, %cst_95 {dimension_numbers = #tpu.dot_dimension_numbers<[1], [1], [0], [0], [0, 0, 1, 0], [], []>} : vector<16x8xbf16>, vector<16x8xbf16>, vector<16x16xf32> -> vector<16x16xf32>
    %313 = vector.extract_strided_slice %305 {offsets = [0, 8], sizes = [16, 8], strides = [1, 1]} : vector<16x32xbf16> to vector<16x8xbf16>
    %314 = vector.extract_strided_slice %306 {offsets = [0, 8], sizes = [16, 8], strides = [1, 1]} : vector<16x32xbf16> to vector<16x8xbf16>
    %cst_96 = arith.constant dense<0.000000e+00> : vector<16x16xf32>
    %315 = tpu.matmul %313, %314, %cst_96 {dimension_numbers = #tpu.dot_dimension_numbers<[1], [1], [0], [0], [0, 0, 1, 0], [], []>} : vector<16x8xbf16>, vector<16x8xbf16>, vector<16x16xf32> -> vector<16x16xf32>
    %316 = vector.extract_strided_slice %305 {offsets = [0, 16], sizes = [16, 8], strides = [1, 1]} : vector<16x32xbf16> to vector<16x8xbf16>
    %317 = vector.extract_strided_slice %306 {offsets = [0, 16], sizes = [16, 8], strides = [1, 1]} : vector<16x32xbf16> to vector<16x8xbf16>
    %cst_97 = arith.constant dense<0.000000e+00> : vector<16x16xf32>
    %318 = tpu.matmul %316, %317, %cst_97 {dimension_numbers = #tpu.dot_dimension_numbers<[1], [1], [0], [0], [0, 0, 1, 0], [], []>} : vector<16x8xbf16>, vector<16x8xbf16>, vector<16x16xf32> -> vector<16x16xf32>
    %319 = vector.extract_strided_slice %305 {offsets = [0, 24], sizes = [16, 8], strides = [1, 1]} : vector<16x32xbf16> to vector<16x8xbf16>
    %320 = vector.extract_strided_slice %306 {offsets = [0, 24], sizes = [16, 8], strides = [1, 1]} : vector<16x32xbf16> to vector<16x8xbf16>
    %cst_98 = arith.constant dense<0.000000e+00> : vector<16x16xf32>
    %321 = tpu.matmul %319, %320, %cst_98 {dimension_numbers = #tpu.dot_dimension_numbers<[1], [1], [0], [0], [0, 0, 1, 0], [], []>} : vector<16x8xbf16>, vector<16x8xbf16>, vector<16x16xf32> -> vector<16x16xf32>
    %322 = vector.shape_cast %312 : vector<16x16xf32> to vector<1x16x16xf32>
    %323 = vector.shape_cast %315 : vector<16x16xf32> to vector<1x16x16xf32>
    %324 = vector.shape_cast %318 : vector<16x16xf32> to vector<1x16x16xf32>
    %325 = vector.shape_cast %321 : vector<16x16xf32> to vector<1x16x16xf32>
    %326 = tpu.concatenate %322, %323, %324, %325 in 0 : vector<1x16x16xf32>, vector<1x16x16xf32>, vector<1x16x16xf32>, vector<1x16x16xf32> -> vector<4x16x16xf32>
    %327 = vector.shape_cast %283 : vector<16x16xf32> to vector<1x16x16xf32>
    %328 = vector.broadcast %327 : vector<1x16x16xf32> to vector<4x16x16xf32>
    %329 = arith.addf %326, %328 : vector<4x16x16xf32>
    %cst_99 = arith.constant dense<0xFF800000> : vector<4x16xf32>
    %330 = vector.multi_reduction <maximumf>, %329, %cst_99 [2] : vector<4x16x16xf32> to vector<4x16xf32>
    %331 = vector.shape_cast %330 : vector<4x16xf32> to vector<4x16x1xf32>
    %332 = vector.broadcast %331 : vector<4x16x1xf32> to vector<4x16x16xf32>
    %333 = arith.subf %329, %332 : vector<4x16x16xf32>
    %334 = math.exp %333 : vector<4x16x16xf32>
    %cst_100 = arith.constant dense<0.000000e+00> : vector<4x16xf32>
    %335 = vector.multi_reduction <add>, %334, %cst_100 [2] : vector<4x16x16xf32> to vector<4x16xf32>
    %336 = vector.shape_cast %335 : vector<4x16xf32> to vector<4x16x1xf32>
    %337 = tpu.reciprocal %336 {approx = true} : vector<4x16x1xf32> -> vector<4x16x1xf32>
    %338 = vector.broadcast %337 : vector<4x16x1xf32> to vector<4x16x16xf32>
    %339 = arith.mulf %334, %338 : vector<4x16x16xf32>
    %340 = arith.truncf %339 : vector<4x16x16xf32> to vector<4x16x16xbf16>
    %341 = vector.extract_strided_slice %340 {offsets = [0, 0, 0], sizes = [1, 16, 16], strides = [1, 1, 1]} : vector<4x16x16xbf16> to vector<1x16x16xbf16>
    %342 = vector.shape_cast %341 : vector<1x16x16xbf16> to vector<16x16xbf16>
    %343 = vector.extract_strided_slice %307 {offsets = [0, 0], sizes = [16, 8], strides = [1, 1]} : vector<16x32xbf16> to vector<16x8xbf16>
    %cst_101 = arith.constant dense<0.000000e+00> : vector<16x8xf32>
    %344 = tpu.matmul %342, %343, %cst_101 {dimension_numbers = #tpu.dot_dimension_numbers<[1], [0], [0], [1], [0, 0, 1, 1], [], []>} : vector<16x16xbf16>, vector<16x8xbf16>, vector<16x8xf32> -> vector<16x8xf32>
    %345 = vector.extract_strided_slice %340 {offsets = [1, 0, 0], sizes = [1, 16, 16], strides = [1, 1, 1]} : vector<4x16x16xbf16> to vector<1x16x16xbf16>
    %346 = vector.shape_cast %345 : vector<1x16x16xbf16> to vector<16x16xbf16>
    %347 = vector.extract_strided_slice %307 {offsets = [0, 8], sizes = [16, 8], strides = [1, 1]} : vector<16x32xbf16> to vector<16x8xbf16>
    %cst_102 = arith.constant dense<0.000000e+00> : vector<16x8xf32>
    %348 = tpu.matmul %346, %347, %cst_102 {dimension_numbers = #tpu.dot_dimension_numbers<[1], [0], [0], [1], [0, 0, 1, 1], [], []>} : vector<16x16xbf16>, vector<16x8xbf16>, vector<16x8xf32> -> vector<16x8xf32>
    %349 = vector.extract_strided_slice %340 {offsets = [2, 0, 0], sizes = [1, 16, 16], strides = [1, 1, 1]} : vector<4x16x16xbf16> to vector<1x16x16xbf16>
    %350 = vector.shape_cast %349 : vector<1x16x16xbf16> to vector<16x16xbf16>
    %351 = vector.extract_strided_slice %307 {offsets = [0, 16], sizes = [16, 8], strides = [1, 1]} : vector<16x32xbf16> to vector<16x8xbf16>
    %cst_103 = arith.constant dense<0.000000e+00> : vector<16x8xf32>
    %352 = tpu.matmul %350, %351, %cst_103 {dimension_numbers = #tpu.dot_dimension_numbers<[1], [0], [0], [1], [0, 0, 1, 1], [], []>} : vector<16x16xbf16>, vector<16x8xbf16>, vector<16x8xf32> -> vector<16x8xf32>
    %353 = vector.extract_strided_slice %340 {offsets = [3, 0, 0], sizes = [1, 16, 16], strides = [1, 1, 1]} : vector<4x16x16xbf16> to vector<1x16x16xbf16>
    %354 = vector.shape_cast %353 : vector<1x16x16xbf16> to vector<16x16xbf16>
    %355 = vector.extract_strided_slice %307 {offsets = [0, 24], sizes = [16, 8], strides = [1, 1]} : vector<16x32xbf16> to vector<16x8xbf16>
    %cst_104 = arith.constant dense<0.000000e+00> : vector<16x8xf32>
    %356 = tpu.matmul %354, %355, %cst_104 {dimension_numbers = #tpu.dot_dimension_numbers<[1], [0], [0], [1], [0, 0, 1, 1], [], []>} : vector<16x16xbf16>, vector<16x8xbf16>, vector<16x8xf32> -> vector<16x8xf32>
    %357 = tpu.concatenate %344, %348, %352, %356 in 1 : vector<16x8xf32>, vector<16x8xf32>, vector<16x8xf32>, vector<16x8xf32> -> vector<16x32xf32>
    %358 = arith.truncf %357 : vector<16x32xf32> to vector<16x32xbf16>
    %cst_105 = arith.constant dense<0.000000e+00> : vector<16x32xf32>
    %359 = tpu.matmul %358, %309, %cst_105 {dimension_numbers = #tpu.dot_dimension_numbers<[1], [0], [0], [1], [0, 0, 1, 1], [], []>} : vector<16x32xbf16>, vector<32x32xbf16>, vector<16x32xf32> -> vector<16x32xf32>
    %360 = vector.broadcast %286 : vector<1x32xf32> to vector<16x32xf32>
    %361 = arith.addf %359, %360 : vector<16x32xf32>
    %362 = arith.addf %282, %361 : vector<16x32xf32>
    %cst_106 = arith.constant dense<0.000000e+00> : vector<16xf32>
    %363 = vector.multi_reduction <add>, %362, %cst_106 [1] : vector<16x32xf32> to vector<16xf32>
    %364 = vector.shape_cast %363 : vector<16xf32> to vector<16x1xf32>
    %cst_107 = arith.constant 3.200000e+01 : f32
    %365 = vector.broadcast %cst_107 : f32 to vector<16x1xf32>
    %366 = arith.divf %364, %365 : vector<16x1xf32>
    %367 = vector.broadcast %366 : vector<16x1xf32> to vector<16x32xf32>
    %368 = arith.subf %362, %367 : vector<16x32xf32>
    %369 = arith.mulf %368, %368 : vector<16x32xf32>
    %cst_108 = arith.constant dense<0.000000e+00> : vector<16xf32>
    %370 = vector.multi_reduction <add>, %369, %cst_108 [1] : vector<16x32xf32> to vector<16xf32>
    %371 = vector.shape_cast %370 : vector<16xf32> to vector<16x1xf32>
    %cst_109 = arith.constant 3.200000e+01 : f32
    %372 = vector.broadcast %cst_109 : f32 to vector<16x1xf32>
    %373 = arith.divf %371, %372 : vector<16x1xf32>
    %cst_110 = arith.constant 9.99999974E-6 : f32
    %374 = vector.broadcast %cst_110 : f32 to vector<16x1xf32>
    %375 = arith.addf %373, %374 : vector<16x1xf32>
    %376 = math.rsqrt %375 : vector<16x1xf32>
    %377 = vector.broadcast %376 : vector<16x1xf32> to vector<16x32xf32>
    %378 = arith.mulf %368, %377 : vector<16x32xf32>
    %379 = vector.broadcast %292 : vector<1x32xf32> to vector<16x32xf32>
    %380 = arith.mulf %378, %379 : vector<16x32xf32>
    %381 = vector.broadcast %293 : vector<1x32xf32> to vector<16x32xf32>
    %382 = arith.addf %380, %381 : vector<16x32xf32>
    %c0_111 = arith.constant 0 : index
    %c0_112 = arith.constant 0 : index
    %c0_113 = arith.constant 0 : index
    %383 = vector.load %arg11[%c0_111, %c0_112, %c0_113] : memref<2x32x32xbf16, #tpu.memory_space<vmem>>, vector<1x32x32xbf16>
    %384 = vector.shape_cast %383 : vector<1x32x32xbf16> to vector<32x32xbf16>
    %385 = arith.truncf %382 : vector<16x32xf32> to vector<16x32xbf16>
    %cst_114 = arith.constant dense<0.000000e+00> : vector<16x32xf32>
    %386 = tpu.matmul %385, %384, %cst_114 {dimension_numbers = #tpu.dot_dimension_numbers<[1], [0], [0], [1], [0, 0, 1, 1], [], []>} : vector<16x32xbf16>, vector<32x32xbf16>, vector<16x32xf32> -> vector<16x32xf32>
    %387 = vector.broadcast %287 : vector<1x32xf32> to vector<16x32xf32>
    %388 = arith.addf %386, %387 : vector<16x32xf32>
    %389 = arith.truncf %388 : vector<16x32xf32> to vector<16x32xbf16>
    %c0_115 = arith.constant 0 : index
    %c0_116 = arith.constant 0 : index
    %c0_117 = arith.constant 0 : index
    %390 = vector.load %arg12[%c0_115, %c0_116, %c0_117] : memref<2x32x64xbf16, #tpu.memory_space<vmem>>, vector<1x32x64xbf16>
    %391 = vector.shape_cast %390 : vector<1x32x64xbf16> to vector<32x64xbf16>
    %cst_118 = arith.constant dense<0.000000e+00> : vector<16x64xf32>
    %392 = tpu.matmul %281, %391, %cst_118 {dimension_numbers = #tpu.dot_dimension_numbers<[1], [0], [0], [1], [0, 0, 1, 1], [], []>} : vector<16x32xbf16>, vector<32x64xbf16>, vector<16x64xf32> -> vector<16x64xf32>
    %393 = vector.broadcast %288 : vector<1x64xf32> to vector<16x64xf32>
    %394 = arith.addf %392, %393 : vector<16x64xf32>
    %395 = arith.truncf %394 : vector<16x64xf32> to vector<16x64xbf16>
    %396 = vector.extract_strided_slice %395 {offsets = [0, 0], sizes = [16, 32], strides = [1, 1]} : vector<16x64xbf16> to vector<16x32xbf16>
    %397 = vector.extract_strided_slice %395 {offsets = [0, 32], sizes = [16, 32], strides = [1, 1]} : vector<16x64xbf16> to vector<16x32xbf16>
    %c0_119 = arith.constant 0 : index
    %c0_120 = arith.constant 0 : index
    %c0_121 = arith.constant 0 : index
    %398 = vector.load %arg13[%c0_119, %c0_120, %c0_121] : memref<2x32x32xbf16, #tpu.memory_space<vmem>>, vector<1x32x32xbf16>
    %399 = vector.shape_cast %398 : vector<1x32x32xbf16> to vector<32x32xbf16>
    %400 = vector.extract_strided_slice %389 {offsets = [0, 0], sizes = [16, 8], strides = [1, 1]} : vector<16x32xbf16> to vector<16x8xbf16>
    %401 = vector.extract_strided_slice %396 {offsets = [0, 0], sizes = [16, 8], strides = [1, 1]} : vector<16x32xbf16> to vector<16x8xbf16>
    %cst_122 = arith.constant dense<0.000000e+00> : vector<16x16xf32>
    %402 = tpu.matmul %400, %401, %cst_122 {dimension_numbers = #tpu.dot_dimension_numbers<[1], [1], [0], [0], [0, 0, 1, 0], [], []>} : vector<16x8xbf16>, vector<16x8xbf16>, vector<16x16xf32> -> vector<16x16xf32>
    %403 = vector.extract_strided_slice %389 {offsets = [0, 8], sizes = [16, 8], strides = [1, 1]} : vector<16x32xbf16> to vector<16x8xbf16>
    %404 = vector.extract_strided_slice %396 {offsets = [0, 8], sizes = [16, 8], strides = [1, 1]} : vector<16x32xbf16> to vector<16x8xbf16>
    %cst_123 = arith.constant dense<0.000000e+00> : vector<16x16xf32>
    %405 = tpu.matmul %403, %404, %cst_123 {dimension_numbers = #tpu.dot_dimension_numbers<[1], [1], [0], [0], [0, 0, 1, 0], [], []>} : vector<16x8xbf16>, vector<16x8xbf16>, vector<16x16xf32> -> vector<16x16xf32>
    %406 = vector.extract_strided_slice %389 {offsets = [0, 16], sizes = [16, 8], strides = [1, 1]} : vector<16x32xbf16> to vector<16x8xbf16>
    %407 = vector.extract_strided_slice %396 {offsets = [0, 16], sizes = [16, 8], strides = [1, 1]} : vector<16x32xbf16> to vector<16x8xbf16>
    %cst_124 = arith.constant dense<0.000000e+00> : vector<16x16xf32>
    %408 = tpu.matmul %406, %407, %cst_124 {dimension_numbers = #tpu.dot_dimension_numbers<[1], [1], [0], [0], [0, 0, 1, 0], [], []>} : vector<16x8xbf16>, vector<16x8xbf16>, vector<16x16xf32> -> vector<16x16xf32>
    %409 = vector.extract_strided_slice %389 {offsets = [0, 24], sizes = [16, 8], strides = [1, 1]} : vector<16x32xbf16> to vector<16x8xbf16>
    %410 = vector.extract_strided_slice %396 {offsets = [0, 24], sizes = [16, 8], strides = [1, 1]} : vector<16x32xbf16> to vector<16x8xbf16>
    %cst_125 = arith.constant dense<0.000000e+00> : vector<16x16xf32>
    %411 = tpu.matmul %409, %410, %cst_125 {dimension_numbers = #tpu.dot_dimension_numbers<[1], [1], [0], [0], [0, 0, 1, 0], [], []>} : vector<16x8xbf16>, vector<16x8xbf16>, vector<16x16xf32> -> vector<16x16xf32>
    %412 = vector.shape_cast %402 : vector<16x16xf32> to vector<1x16x16xf32>
    %413 = vector.shape_cast %405 : vector<16x16xf32> to vector<1x16x16xf32>
    %414 = vector.shape_cast %408 : vector<16x16xf32> to vector<1x16x16xf32>
    %415 = vector.shape_cast %411 : vector<16x16xf32> to vector<1x16x16xf32>
    %416 = tpu.concatenate %412, %413, %414, %415 in 0 : vector<1x16x16xf32>, vector<1x16x16xf32>, vector<1x16x16xf32>, vector<1x16x16xf32> -> vector<4x16x16xf32>
    %417 = vector.shape_cast %284 : vector<16x16xf32> to vector<1x16x16xf32>
    %418 = vector.broadcast %417 : vector<1x16x16xf32> to vector<4x16x16xf32>
    %419 = arith.addf %416, %418 : vector<4x16x16xf32>
    %cst_126 = arith.constant dense<0xFF800000> : vector<4x16xf32>
    %420 = vector.multi_reduction <maximumf>, %419, %cst_126 [2] : vector<4x16x16xf32> to vector<4x16xf32>
    %421 = vector.shape_cast %420 : vector<4x16xf32> to vector<4x16x1xf32>
    %422 = vector.broadcast %421 : vector<4x16x1xf32> to vector<4x16x16xf32>
    %423 = arith.subf %419, %422 : vector<4x16x16xf32>
    %424 = math.exp %423 : vector<4x16x16xf32>
    %cst_127 = arith.constant dense<0.000000e+00> : vector<4x16xf32>
    %425 = vector.multi_reduction <add>, %424, %cst_127 [2] : vector<4x16x16xf32> to vector<4x16xf32>
    %426 = vector.shape_cast %425 : vector<4x16xf32> to vector<4x16x1xf32>
    %427 = tpu.reciprocal %426 {approx = true} : vector<4x16x1xf32> -> vector<4x16x1xf32>
    %428 = vector.broadcast %427 : vector<4x16x1xf32> to vector<4x16x16xf32>
    %429 = arith.mulf %424, %428 : vector<4x16x16xf32>
    %430 = arith.truncf %429 : vector<4x16x16xf32> to vector<4x16x16xbf16>
    %431 = vector.extract_strided_slice %430 {offsets = [0, 0, 0], sizes = [1, 16, 16], strides = [1, 1, 1]} : vector<4x16x16xbf16> to vector<1x16x16xbf16>
    %432 = vector.shape_cast %431 : vector<1x16x16xbf16> to vector<16x16xbf16>
    %433 = vector.extract_strided_slice %397 {offsets = [0, 0], sizes = [16, 8], strides = [1, 1]} : vector<16x32xbf16> to vector<16x8xbf16>
    %cst_128 = arith.constant dense<0.000000e+00> : vector<16x8xf32>
    %434 = tpu.matmul %432, %433, %cst_128 {dimension_numbers = #tpu.dot_dimension_numbers<[1], [0], [0], [1], [0, 0, 1, 1], [], []>} : vector<16x16xbf16>, vector<16x8xbf16>, vector<16x8xf32> -> vector<16x8xf32>
    %435 = vector.extract_strided_slice %430 {offsets = [1, 0, 0], sizes = [1, 16, 16], strides = [1, 1, 1]} : vector<4x16x16xbf16> to vector<1x16x16xbf16>
    %436 = vector.shape_cast %435 : vector<1x16x16xbf16> to vector<16x16xbf16>
    %437 = vector.extract_strided_slice %397 {offsets = [0, 8], sizes = [16, 8], strides = [1, 1]} : vector<16x32xbf16> to vector<16x8xbf16>
    %cst_129 = arith.constant dense<0.000000e+00> : vector<16x8xf32>
    %438 = tpu.matmul %436, %437, %cst_129 {dimension_numbers = #tpu.dot_dimension_numbers<[1], [0], [0], [1], [0, 0, 1, 1], [], []>} : vector<16x16xbf16>, vector<16x8xbf16>, vector<16x8xf32> -> vector<16x8xf32>
    %439 = vector.extract_strided_slice %430 {offsets = [2, 0, 0], sizes = [1, 16, 16], strides = [1, 1, 1]} : vector<4x16x16xbf16> to vector<1x16x16xbf16>
    %440 = vector.shape_cast %439 : vector<1x16x16xbf16> to vector<16x16xbf16>
    %441 = vector.extract_strided_slice %397 {offsets = [0, 16], sizes = [16, 8], strides = [1, 1]} : vector<16x32xbf16> to vector<16x8xbf16>
    %cst_130 = arith.constant dense<0.000000e+00> : vector<16x8xf32>
    %442 = tpu.matmul %440, %441, %cst_130 {dimension_numbers = #tpu.dot_dimension_numbers<[1], [0], [0], [1], [0, 0, 1, 1], [], []>} : vector<16x16xbf16>, vector<16x8xbf16>, vector<16x8xf32> -> vector<16x8xf32>
    %443 = vector.extract_strided_slice %430 {offsets = [3, 0, 0], sizes = [1, 16, 16], strides = [1, 1, 1]} : vector<4x16x16xbf16> to vector<1x16x16xbf16>
    %444 = vector.shape_cast %443 : vector<1x16x16xbf16> to vector<16x16xbf16>
    %445 = vector.extract_strided_slice %397 {offsets = [0, 24], sizes = [16, 8], strides = [1, 1]} : vector<16x32xbf16> to vector<16x8xbf16>
    %cst_131 = arith.constant dense<0.000000e+00> : vector<16x8xf32>
    %446 = tpu.matmul %444, %445, %cst_131 {dimension_numbers = #tpu.dot_dimension_numbers<[1], [0], [0], [1], [0, 0, 1, 1], [], []>} : vector<16x16xbf16>, vector<16x8xbf16>, vector<16x8xf32> -> vector<16x8xf32>
    %447 = tpu.concatenate %434, %438, %442, %446 in 1 : vector<16x8xf32>, vector<16x8xf32>, vector<16x8xf32>, vector<16x8xf32> -> vector<16x32xf32>
    %448 = arith.truncf %447 : vector<16x32xf32> to vector<16x32xbf16>
    %cst_132 = arith.constant dense<0.000000e+00> : vector<16x32xf32>
    %449 = tpu.matmul %448, %399, %cst_132 {dimension_numbers = #tpu.dot_dimension_numbers<[1], [0], [0], [1], [0, 0, 1, 1], [], []>} : vector<16x32xbf16>, vector<32x32xbf16>, vector<16x32xf32> -> vector<16x32xf32>
    %450 = vector.broadcast %289 : vector<1x32xf32> to vector<16x32xf32>
    %451 = arith.addf %449, %450 : vector<16x32xf32>
    %452 = arith.addf %382, %451 : vector<16x32xf32>
    %cst_133 = arith.constant dense<0.000000e+00> : vector<16xf32>
    %453 = vector.multi_reduction <add>, %452, %cst_133 [1] : vector<16x32xf32> to vector<16xf32>
    %454 = vector.shape_cast %453 : vector<16xf32> to vector<16x1xf32>
    %cst_134 = arith.constant 3.200000e+01 : f32
    %455 = vector.broadcast %cst_134 : f32 to vector<16x1xf32>
    %456 = arith.divf %454, %455 : vector<16x1xf32>
    %457 = vector.broadcast %456 : vector<16x1xf32> to vector<16x32xf32>
    %458 = arith.subf %452, %457 : vector<16x32xf32>
    %459 = arith.mulf %458, %458 : vector<16x32xf32>
    %cst_135 = arith.constant dense<0.000000e+00> : vector<16xf32>
    %460 = vector.multi_reduction <add>, %459, %cst_135 [1] : vector<16x32xf32> to vector<16xf32>
    %461 = vector.shape_cast %460 : vector<16xf32> to vector<16x1xf32>
    %cst_136 = arith.constant 3.200000e+01 : f32
    %462 = vector.broadcast %cst_136 : f32 to vector<16x1xf32>
    %463 = arith.divf %461, %462 : vector<16x1xf32>
    %cst_137 = arith.constant 9.99999974E-6 : f32
    %464 = vector.broadcast %cst_137 : f32 to vector<16x1xf32>
    %465 = arith.addf %463, %464 : vector<16x1xf32>
    %466 = math.rsqrt %465 : vector<16x1xf32>
    %467 = vector.broadcast %466 : vector<16x1xf32> to vector<16x32xf32>
    %468 = arith.mulf %458, %467 : vector<16x32xf32>
    %469 = vector.broadcast %294 : vector<1x32xf32> to vector<16x32xf32>
    %470 = arith.mulf %468, %469 : vector<16x32xf32>
    %471 = vector.broadcast %295 : vector<1x32xf32> to vector<16x32xf32>
    %472 = arith.addf %470, %471 : vector<16x32xf32>
    %c0_138 = arith.constant 0 : index
    %c0_139 = arith.constant 0 : index
    %c0_140 = arith.constant 0 : index
    %473 = vector.load %arg14[%c0_138, %c0_139, %c0_140] : memref<2x32x64xbf16, #tpu.memory_space<vmem>>, vector<1x32x64xbf16>
    %474 = vector.shape_cast %473 : vector<1x32x64xbf16> to vector<32x64xbf16>
    %475 = arith.truncf %472 : vector<16x32xf32> to vector<16x32xbf16>
    %cst_141 = arith.constant dense<0.000000e+00> : vector<16x64xf32>
    %476 = tpu.matmul %475, %474, %cst_141 {dimension_numbers = #tpu.dot_dimension_numbers<[1], [0], [0], [1], [0, 0, 1, 1], [], []>} : vector<16x32xbf16>, vector<32x64xbf16>, vector<16x64xf32> -> vector<16x64xf32>
    %477 = vector.broadcast %290 : vector<1x64xf32> to vector<16x64xf32>
    %478 = arith.addf %476, %477 : vector<16x64xf32>
    %cst_142 = arith.constant 0.000000e+00 : f32
    %479 = vector.broadcast %cst_142 : f32 to vector<16x64xf32>
    %480 = arith.maximumf %478, %479 : vector<16x64xf32>
    %c0_143 = arith.constant 0 : index
    %c0_144 = arith.constant 0 : index
    %c0_145 = arith.constant 0 : index
    %481 = vector.load %arg15[%c0_143, %c0_144, %c0_145] : memref<2x64x32xbf16, #tpu.memory_space<vmem>>, vector<1x64x32xbf16>
    %482 = vector.shape_cast %481 : vector<1x64x32xbf16> to vector<64x32xbf16>
    %483 = arith.truncf %480 : vector<16x64xf32> to vector<16x64xbf16>
    %cst_146 = arith.constant dense<0.000000e+00> : vector<16x32xf32>
    %484 = tpu.matmul %483, %482, %cst_146 {dimension_numbers = #tpu.dot_dimension_numbers<[1], [0], [0], [1], [0, 0, 1, 1], [], []>} : vector<16x64xbf16>, vector<64x32xbf16>, vector<16x32xf32> -> vector<16x32xf32>
    %485 = vector.broadcast %291 : vector<1x32xf32> to vector<16x32xf32>
    %486 = arith.addf %484, %485 : vector<16x32xf32>
    %487 = arith.addf %472, %486 : vector<16x32xf32>
    %cst_147 = arith.constant dense<0.000000e+00> : vector<16xf32>
    %488 = vector.multi_reduction <add>, %487, %cst_147 [1] : vector<16x32xf32> to vector<16xf32>
    %489 = vector.shape_cast %488 : vector<16xf32> to vector<16x1xf32>
    %cst_148 = arith.constant 3.200000e+01 : f32
    %490 = vector.broadcast %cst_148 : f32 to vector<16x1xf32>
    %491 = arith.divf %489, %490 : vector<16x1xf32>
    %492 = vector.broadcast %491 : vector<16x1xf32> to vector<16x32xf32>
    %493 = arith.subf %487, %492 : vector<16x32xf32>
    %494 = arith.mulf %493, %493 : vector<16x32xf32>
    %cst_149 = arith.constant dense<0.000000e+00> : vector<16xf32>
    %495 = vector.multi_reduction <add>, %494, %cst_149 [1] : vector<16x32xf32> to vector<16xf32>
    %496 = vector.shape_cast %495 : vector<16xf32> to vector<16x1xf32>
    %cst_150 = arith.constant 3.200000e+01 : f32
    %497 = vector.broadcast %cst_150 : f32 to vector<16x1xf32>
    %498 = arith.divf %496, %497 : vector<16x1xf32>
    %cst_151 = arith.constant 9.99999974E-6 : f32
    %499 = vector.broadcast %cst_151 : f32 to vector<16x1xf32>
    %500 = arith.addf %498, %499 : vector<16x1xf32>
    %501 = math.rsqrt %500 : vector<16x1xf32>
    %502 = vector.broadcast %501 : vector<16x1xf32> to vector<16x32xf32>
    %503 = arith.mulf %493, %502 : vector<16x32xf32>
    %504 = vector.broadcast %296 : vector<1x32xf32> to vector<16x32xf32>
    %505 = arith.mulf %503, %504 : vector<16x32xf32>
    %506 = vector.broadcast %297 : vector<1x32xf32> to vector<16x32xf32>
    %507 = arith.addf %505, %506 : vector<16x32xf32>
    %508 = vector.extract_strided_slice %0 {offsets = [31, 0], sizes = [1, 96], strides = [1, 1]} : vector<46x96xf32> to vector<1x96xf32>
    %509 = vector.extract_strided_slice %0 {offsets = [32, 0], sizes = [1, 32], strides = [1, 1]} : vector<46x96xf32> to vector<1x32xf32>
    %510 = vector.extract_strided_slice %0 {offsets = [33, 0], sizes = [1, 32], strides = [1, 1]} : vector<46x96xf32> to vector<1x32xf32>
    %511 = vector.extract_strided_slice %0 {offsets = [34, 0], sizes = [1, 64], strides = [1, 1]} : vector<46x96xf32> to vector<1x64xf32>
    %512 = vector.extract_strided_slice %0 {offsets = [35, 0], sizes = [1, 32], strides = [1, 1]} : vector<46x96xf32> to vector<1x32xf32>
    %513 = vector.extract_strided_slice %0 {offsets = [36, 0], sizes = [1, 64], strides = [1, 1]} : vector<46x96xf32> to vector<1x64xf32>
    %514 = vector.extract_strided_slice %0 {offsets = [37, 0], sizes = [1, 32], strides = [1, 1]} : vector<46x96xf32> to vector<1x32xf32>
    %515 = vector.extract_strided_slice %0 {offsets = [38, 0], sizes = [1, 32], strides = [1, 1]} : vector<46x96xf32> to vector<1x32xf32>
    %516 = vector.extract_strided_slice %0 {offsets = [39, 0], sizes = [1, 32], strides = [1, 1]} : vector<46x96xf32> to vector<1x32xf32>
    %517 = vector.extract_strided_slice %0 {offsets = [40, 0], sizes = [1, 32], strides = [1, 1]} : vector<46x96xf32> to vector<1x32xf32>
    %518 = vector.extract_strided_slice %0 {offsets = [41, 0], sizes = [1, 32], strides = [1, 1]} : vector<46x96xf32> to vector<1x32xf32>
    %519 = vector.extract_strided_slice %0 {offsets = [42, 0], sizes = [1, 32], strides = [1, 1]} : vector<46x96xf32> to vector<1x32xf32>
    %520 = vector.extract_strided_slice %0 {offsets = [43, 0], sizes = [1, 32], strides = [1, 1]} : vector<46x96xf32> to vector<1x32xf32>
    %c1_152 = arith.constant 1 : index
    %c0_153 = arith.constant 0 : index
    %c0_154 = arith.constant 0 : index
    %521 = vector.load %arg9[%c1_152, %c0_153, %c0_154] : memref<2x32x96xbf16, #tpu.memory_space<vmem>>, vector<1x32x96xbf16>
    %522 = vector.shape_cast %521 : vector<1x32x96xbf16> to vector<32x96xbf16>
    %523 = arith.truncf %507 : vector<16x32xf32> to vector<16x32xbf16>
    %cst_155 = arith.constant dense<0.000000e+00> : vector<16x96xf32>
    %524 = tpu.matmul %523, %522, %cst_155 {dimension_numbers = #tpu.dot_dimension_numbers<[1], [0], [0], [1], [0, 0, 1, 1], [], []>} : vector<16x32xbf16>, vector<32x96xbf16>, vector<16x96xf32> -> vector<16x96xf32>
    %525 = vector.broadcast %508 : vector<1x96xf32> to vector<16x96xf32>
    %526 = arith.addf %524, %525 : vector<16x96xf32>
    %527 = arith.truncf %526 : vector<16x96xf32> to vector<16x96xbf16>
    %528 = vector.extract_strided_slice %527 {offsets = [0, 0], sizes = [16, 32], strides = [1, 1]} : vector<16x96xbf16> to vector<16x32xbf16>
    %529 = vector.extract_strided_slice %527 {offsets = [0, 32], sizes = [16, 32], strides = [1, 1]} : vector<16x96xbf16> to vector<16x32xbf16>
    %530 = vector.extract_strided_slice %527 {offsets = [0, 64], sizes = [16, 32], strides = [1, 1]} : vector<16x96xbf16> to vector<16x32xbf16>
    %c1_156 = arith.constant 1 : index
    %c0_157 = arith.constant 0 : index
    %c0_158 = arith.constant 0 : index
    %531 = vector.load %arg10[%c1_156, %c0_157, %c0_158] : memref<2x32x32xbf16, #tpu.memory_space<vmem>>, vector<1x32x32xbf16>
    %532 = vector.shape_cast %531 : vector<1x32x32xbf16> to vector<32x32xbf16>
    %533 = vector.extract_strided_slice %528 {offsets = [0, 0], sizes = [16, 8], strides = [1, 1]} : vector<16x32xbf16> to vector<16x8xbf16>
    %534 = vector.extract_strided_slice %529 {offsets = [0, 0], sizes = [16, 8], strides = [1, 1]} : vector<16x32xbf16> to vector<16x8xbf16>
    %cst_159 = arith.constant dense<0.000000e+00> : vector<16x16xf32>
    %535 = tpu.matmul %533, %534, %cst_159 {dimension_numbers = #tpu.dot_dimension_numbers<[1], [1], [0], [0], [0, 0, 1, 0], [], []>} : vector<16x8xbf16>, vector<16x8xbf16>, vector<16x16xf32> -> vector<16x16xf32>
    %536 = vector.extract_strided_slice %528 {offsets = [0, 8], sizes = [16, 8], strides = [1, 1]} : vector<16x32xbf16> to vector<16x8xbf16>
    %537 = vector.extract_strided_slice %529 {offsets = [0, 8], sizes = [16, 8], strides = [1, 1]} : vector<16x32xbf16> to vector<16x8xbf16>
    %cst_160 = arith.constant dense<0.000000e+00> : vector<16x16xf32>
    %538 = tpu.matmul %536, %537, %cst_160 {dimension_numbers = #tpu.dot_dimension_numbers<[1], [1], [0], [0], [0, 0, 1, 0], [], []>} : vector<16x8xbf16>, vector<16x8xbf16>, vector<16x16xf32> -> vector<16x16xf32>
    %539 = vector.extract_strided_slice %528 {offsets = [0, 16], sizes = [16, 8], strides = [1, 1]} : vector<16x32xbf16> to vector<16x8xbf16>
    %540 = vector.extract_strided_slice %529 {offsets = [0, 16], sizes = [16, 8], strides = [1, 1]} : vector<16x32xbf16> to vector<16x8xbf16>
    %cst_161 = arith.constant dense<0.000000e+00> : vector<16x16xf32>
    %541 = tpu.matmul %539, %540, %cst_161 {dimension_numbers = #tpu.dot_dimension_numbers<[1], [1], [0], [0], [0, 0, 1, 0], [], []>} : vector<16x8xbf16>, vector<16x8xbf16>, vector<16x16xf32> -> vector<16x16xf32>
    %542 = vector.extract_strided_slice %528 {offsets = [0, 24], sizes = [16, 8], strides = [1, 1]} : vector<16x32xbf16> to vector<16x8xbf16>
    %543 = vector.extract_strided_slice %529 {offsets = [0, 24], sizes = [16, 8], strides = [1, 1]} : vector<16x32xbf16> to vector<16x8xbf16>
    %cst_162 = arith.constant dense<0.000000e+00> : vector<16x16xf32>
    %544 = tpu.matmul %542, %543, %cst_162 {dimension_numbers = #tpu.dot_dimension_numbers<[1], [1], [0], [0], [0, 0, 1, 0], [], []>} : vector<16x8xbf16>, vector<16x8xbf16>, vector<16x16xf32> -> vector<16x16xf32>
    %545 = vector.shape_cast %535 : vector<16x16xf32> to vector<1x16x16xf32>
    %546 = vector.shape_cast %538 : vector<16x16xf32> to vector<1x16x16xf32>
    %547 = vector.shape_cast %541 : vector<16x16xf32> to vector<1x16x16xf32>
    %548 = vector.shape_cast %544 : vector<16x16xf32> to vector<1x16x16xf32>
    %549 = tpu.concatenate %545, %546, %547, %548 in 0 : vector<1x16x16xf32>, vector<1x16x16xf32>, vector<1x16x16xf32>, vector<1x16x16xf32> -> vector<4x16x16xf32>
    %550 = vector.shape_cast %283 : vector<16x16xf32> to vector<1x16x16xf32>
    %551 = vector.broadcast %550 : vector<1x16x16xf32> to vector<4x16x16xf32>
    %552 = arith.addf %549, %551 : vector<4x16x16xf32>
    %cst_163 = arith.constant dense<0xFF800000> : vector<4x16xf32>
    %553 = vector.multi_reduction <maximumf>, %552, %cst_163 [2] : vector<4x16x16xf32> to vector<4x16xf32>
    %554 = vector.shape_cast %553 : vector<4x16xf32> to vector<4x16x1xf32>
    %555 = vector.broadcast %554 : vector<4x16x1xf32> to vector<4x16x16xf32>
    %556 = arith.subf %552, %555 : vector<4x16x16xf32>
    %557 = math.exp %556 : vector<4x16x16xf32>
    %cst_164 = arith.constant dense<0.000000e+00> : vector<4x16xf32>
    %558 = vector.multi_reduction <add>, %557, %cst_164 [2] : vector<4x16x16xf32> to vector<4x16xf32>
    %559 = vector.shape_cast %558 : vector<4x16xf32> to vector<4x16x1xf32>
    %560 = tpu.reciprocal %559 {approx = true} : vector<4x16x1xf32> -> vector<4x16x1xf32>
    %561 = vector.broadcast %560 : vector<4x16x1xf32> to vector<4x16x16xf32>
    %562 = arith.mulf %557, %561 : vector<4x16x16xf32>
    %563 = arith.truncf %562 : vector<4x16x16xf32> to vector<4x16x16xbf16>
    %564 = vector.extract_strided_slice %563 {offsets = [0, 0, 0], sizes = [1, 16, 16], strides = [1, 1, 1]} : vector<4x16x16xbf16> to vector<1x16x16xbf16>
    %565 = vector.shape_cast %564 : vector<1x16x16xbf16> to vector<16x16xbf16>
    %566 = vector.extract_strided_slice %530 {offsets = [0, 0], sizes = [16, 8], strides = [1, 1]} : vector<16x32xbf16> to vector<16x8xbf16>
    %cst_165 = arith.constant dense<0.000000e+00> : vector<16x8xf32>
    %567 = tpu.matmul %565, %566, %cst_165 {dimension_numbers = #tpu.dot_dimension_numbers<[1], [0], [0], [1], [0, 0, 1, 1], [], []>} : vector<16x16xbf16>, vector<16x8xbf16>, vector<16x8xf32> -> vector<16x8xf32>
    %568 = vector.extract_strided_slice %563 {offsets = [1, 0, 0], sizes = [1, 16, 16], strides = [1, 1, 1]} : vector<4x16x16xbf16> to vector<1x16x16xbf16>
    %569 = vector.shape_cast %568 : vector<1x16x16xbf16> to vector<16x16xbf16>
    %570 = vector.extract_strided_slice %530 {offsets = [0, 8], sizes = [16, 8], strides = [1, 1]} : vector<16x32xbf16> to vector<16x8xbf16>
    %cst_166 = arith.constant dense<0.000000e+00> : vector<16x8xf32>
    %571 = tpu.matmul %569, %570, %cst_166 {dimension_numbers = #tpu.dot_dimension_numbers<[1], [0], [0], [1], [0, 0, 1, 1], [], []>} : vector<16x16xbf16>, vector<16x8xbf16>, vector<16x8xf32> -> vector<16x8xf32>
    %572 = vector.extract_strided_slice %563 {offsets = [2, 0, 0], sizes = [1, 16, 16], strides = [1, 1, 1]} : vector<4x16x16xbf16> to vector<1x16x16xbf16>
    %573 = vector.shape_cast %572 : vector<1x16x16xbf16> to vector<16x16xbf16>
    %574 = vector.extract_strided_slice %530 {offsets = [0, 16], sizes = [16, 8], strides = [1, 1]} : vector<16x32xbf16> to vector<16x8xbf16>
    %cst_167 = arith.constant dense<0.000000e+00> : vector<16x8xf32>
    %575 = tpu.matmul %573, %574, %cst_167 {dimension_numbers = #tpu.dot_dimension_numbers<[1], [0], [0], [1], [0, 0, 1, 1], [], []>} : vector<16x16xbf16>, vector<16x8xbf16>, vector<16x8xf32> -> vector<16x8xf32>
    %576 = vector.extract_strided_slice %563 {offsets = [3, 0, 0], sizes = [1, 16, 16], strides = [1, 1, 1]} : vector<4x16x16xbf16> to vector<1x16x16xbf16>
    %577 = vector.shape_cast %576 : vector<1x16x16xbf16> to vector<16x16xbf16>
    %578 = vector.extract_strided_slice %530 {offsets = [0, 24], sizes = [16, 8], strides = [1, 1]} : vector<16x32xbf16> to vector<16x8xbf16>
    %cst_168 = arith.constant dense<0.000000e+00> : vector<16x8xf32>
    %579 = tpu.matmul %577, %578, %cst_168 {dimension_numbers = #tpu.dot_dimension_numbers<[1], [0], [0], [1], [0, 0, 1, 1], [], []>} : vector<16x16xbf16>, vector<16x8xbf16>, vector<16x8xf32> -> vector<16x8xf32>
    %580 = tpu.concatenate %567, %571, %575, %579 in 1 : vector<16x8xf32>, vector<16x8xf32>, vector<16x8xf32>, vector<16x8xf32> -> vector<16x32xf32>
    %581 = arith.truncf %580 : vector<16x32xf32> to vector<16x32xbf16>
    %cst_169 = arith.constant dense<0.000000e+00> : vector<16x32xf32>
    %582 = tpu.matmul %581, %532, %cst_169 {dimension_numbers = #tpu.dot_dimension_numbers<[1], [0], [0], [1], [0, 0, 1, 1], [], []>} : vector<16x32xbf16>, vector<32x32xbf16>, vector<16x32xf32> -> vector<16x32xf32>
    %583 = vector.broadcast %509 : vector<1x32xf32> to vector<16x32xf32>
    %584 = arith.addf %582, %583 : vector<16x32xf32>
    %585 = arith.addf %507, %584 : vector<16x32xf32>
    %cst_170 = arith.constant dense<0.000000e+00> : vector<16xf32>
    %586 = vector.multi_reduction <add>, %585, %cst_170 [1] : vector<16x32xf32> to vector<16xf32>
    %587 = vector.shape_cast %586 : vector<16xf32> to vector<16x1xf32>
    %cst_171 = arith.constant 3.200000e+01 : f32
    %588 = vector.broadcast %cst_171 : f32 to vector<16x1xf32>
    %589 = arith.divf %587, %588 : vector<16x1xf32>
    %590 = vector.broadcast %589 : vector<16x1xf32> to vector<16x32xf32>
    %591 = arith.subf %585, %590 : vector<16x32xf32>
    %592 = arith.mulf %591, %591 : vector<16x32xf32>
    %cst_172 = arith.constant dense<0.000000e+00> : vector<16xf32>
    %593 = vector.multi_reduction <add>, %592, %cst_172 [1] : vector<16x32xf32> to vector<16xf32>
    %594 = vector.shape_cast %593 : vector<16xf32> to vector<16x1xf32>
    %cst_173 = arith.constant 3.200000e+01 : f32
    %595 = vector.broadcast %cst_173 : f32 to vector<16x1xf32>
    %596 = arith.divf %594, %595 : vector<16x1xf32>
    %cst_174 = arith.constant 9.99999974E-6 : f32
    %597 = vector.broadcast %cst_174 : f32 to vector<16x1xf32>
    %598 = arith.addf %596, %597 : vector<16x1xf32>
    %599 = math.rsqrt %598 : vector<16x1xf32>
    %600 = vector.broadcast %599 : vector<16x1xf32> to vector<16x32xf32>
    %601 = arith.mulf %591, %600 : vector<16x32xf32>
    %602 = vector.broadcast %515 : vector<1x32xf32> to vector<16x32xf32>
    %603 = arith.mulf %601, %602 : vector<16x32xf32>
    %604 = vector.broadcast %516 : vector<1x32xf32> to vector<16x32xf32>
    %605 = arith.addf %603, %604 : vector<16x32xf32>
    %c1_175 = arith.constant 1 : index
    %c0_176 = arith.constant 0 : index
    %c0_177 = arith.constant 0 : index
    %606 = vector.load %arg11[%c1_175, %c0_176, %c0_177] : memref<2x32x32xbf16, #tpu.memory_space<vmem>>, vector<1x32x32xbf16>
    %607 = vector.shape_cast %606 : vector<1x32x32xbf16> to vector<32x32xbf16>
    %608 = arith.truncf %605 : vector<16x32xf32> to vector<16x32xbf16>
    %cst_178 = arith.constant dense<0.000000e+00> : vector<16x32xf32>
    %609 = tpu.matmul %608, %607, %cst_178 {dimension_numbers = #tpu.dot_dimension_numbers<[1], [0], [0], [1], [0, 0, 1, 1], [], []>} : vector<16x32xbf16>, vector<32x32xbf16>, vector<16x32xf32> -> vector<16x32xf32>
    %610 = vector.broadcast %510 : vector<1x32xf32> to vector<16x32xf32>
    %611 = arith.addf %609, %610 : vector<16x32xf32>
    %612 = arith.truncf %611 : vector<16x32xf32> to vector<16x32xbf16>
    %c1_179 = arith.constant 1 : index
    %c0_180 = arith.constant 0 : index
    %c0_181 = arith.constant 0 : index
    %613 = vector.load %arg12[%c1_179, %c0_180, %c0_181] : memref<2x32x64xbf16, #tpu.memory_space<vmem>>, vector<1x32x64xbf16>
    %614 = vector.shape_cast %613 : vector<1x32x64xbf16> to vector<32x64xbf16>
    %cst_182 = arith.constant dense<0.000000e+00> : vector<16x64xf32>
    %615 = tpu.matmul %281, %614, %cst_182 {dimension_numbers = #tpu.dot_dimension_numbers<[1], [0], [0], [1], [0, 0, 1, 1], [], []>} : vector<16x32xbf16>, vector<32x64xbf16>, vector<16x64xf32> -> vector<16x64xf32>
    %616 = vector.broadcast %511 : vector<1x64xf32> to vector<16x64xf32>
    %617 = arith.addf %615, %616 : vector<16x64xf32>
    %618 = arith.truncf %617 : vector<16x64xf32> to vector<16x64xbf16>
    %619 = vector.extract_strided_slice %618 {offsets = [0, 0], sizes = [16, 32], strides = [1, 1]} : vector<16x64xbf16> to vector<16x32xbf16>
    %620 = vector.extract_strided_slice %618 {offsets = [0, 32], sizes = [16, 32], strides = [1, 1]} : vector<16x64xbf16> to vector<16x32xbf16>
    %c1_183 = arith.constant 1 : index
    %c0_184 = arith.constant 0 : index
    %c0_185 = arith.constant 0 : index
    %621 = vector.load %arg13[%c1_183, %c0_184, %c0_185] : memref<2x32x32xbf16, #tpu.memory_space<vmem>>, vector<1x32x32xbf16>
    %622 = vector.shape_cast %621 : vector<1x32x32xbf16> to vector<32x32xbf16>
    %623 = vector.extract_strided_slice %612 {offsets = [0, 0], sizes = [16, 8], strides = [1, 1]} : vector<16x32xbf16> to vector<16x8xbf16>
    %624 = vector.extract_strided_slice %619 {offsets = [0, 0], sizes = [16, 8], strides = [1, 1]} : vector<16x32xbf16> to vector<16x8xbf16>
    %cst_186 = arith.constant dense<0.000000e+00> : vector<16x16xf32>
    %625 = tpu.matmul %623, %624, %cst_186 {dimension_numbers = #tpu.dot_dimension_numbers<[1], [1], [0], [0], [0, 0, 1, 0], [], []>} : vector<16x8xbf16>, vector<16x8xbf16>, vector<16x16xf32> -> vector<16x16xf32>
    %626 = vector.extract_strided_slice %612 {offsets = [0, 8], sizes = [16, 8], strides = [1, 1]} : vector<16x32xbf16> to vector<16x8xbf16>
    %627 = vector.extract_strided_slice %619 {offsets = [0, 8], sizes = [16, 8], strides = [1, 1]} : vector<16x32xbf16> to vector<16x8xbf16>
    %cst_187 = arith.constant dense<0.000000e+00> : vector<16x16xf32>
    %628 = tpu.matmul %626, %627, %cst_187 {dimension_numbers = #tpu.dot_dimension_numbers<[1], [1], [0], [0], [0, 0, 1, 0], [], []>} : vector<16x8xbf16>, vector<16x8xbf16>, vector<16x16xf32> -> vector<16x16xf32>
    %629 = vector.extract_strided_slice %612 {offsets = [0, 16], sizes = [16, 8], strides = [1, 1]} : vector<16x32xbf16> to vector<16x8xbf16>
    %630 = vector.extract_strided_slice %619 {offsets = [0, 16], sizes = [16, 8], strides = [1, 1]} : vector<16x32xbf16> to vector<16x8xbf16>
    %cst_188 = arith.constant dense<0.000000e+00> : vector<16x16xf32>
    %631 = tpu.matmul %629, %630, %cst_188 {dimension_numbers = #tpu.dot_dimension_numbers<[1], [1], [0], [0], [0, 0, 1, 0], [], []>} : vector<16x8xbf16>, vector<16x8xbf16>, vector<16x16xf32> -> vector<16x16xf32>
    %632 = vector.extract_strided_slice %612 {offsets = [0, 24], sizes = [16, 8], strides = [1, 1]} : vector<16x32xbf16> to vector<16x8xbf16>
    %633 = vector.extract_strided_slice %619 {offsets = [0, 24], sizes = [16, 8], strides = [1, 1]} : vector<16x32xbf16> to vector<16x8xbf16>
    %cst_189 = arith.constant dense<0.000000e+00> : vector<16x16xf32>
    %634 = tpu.matmul %632, %633, %cst_189 {dimension_numbers = #tpu.dot_dimension_numbers<[1], [1], [0], [0], [0, 0, 1, 0], [], []>} : vector<16x8xbf16>, vector<16x8xbf16>, vector<16x16xf32> -> vector<16x16xf32>
    %635 = vector.shape_cast %625 : vector<16x16xf32> to vector<1x16x16xf32>
    %636 = vector.shape_cast %628 : vector<16x16xf32> to vector<1x16x16xf32>
    %637 = vector.shape_cast %631 : vector<16x16xf32> to vector<1x16x16xf32>
    %638 = vector.shape_cast %634 : vector<16x16xf32> to vector<1x16x16xf32>
    %639 = tpu.concatenate %635, %636, %637, %638 in 0 : vector<1x16x16xf32>, vector<1x16x16xf32>, vector<1x16x16xf32>, vector<1x16x16xf32> -> vector<4x16x16xf32>
    %640 = vector.shape_cast %284 : vector<16x16xf32> to vector<1x16x16xf32>
    %641 = vector.broadcast %640 : vector<1x16x16xf32> to vector<4x16x16xf32>
    %642 = arith.addf %639, %641 : vector<4x16x16xf32>
    %cst_190 = arith.constant dense<0xFF800000> : vector<4x16xf32>
    %643 = vector.multi_reduction <maximumf>, %642, %cst_190 [2] : vector<4x16x16xf32> to vector<4x16xf32>
    %644 = vector.shape_cast %643 : vector<4x16xf32> to vector<4x16x1xf32>
    %645 = vector.broadcast %644 : vector<4x16x1xf32> to vector<4x16x16xf32>
    %646 = arith.subf %642, %645 : vector<4x16x16xf32>
    %647 = math.exp %646 : vector<4x16x16xf32>
    %cst_191 = arith.constant dense<0.000000e+00> : vector<4x16xf32>
    %648 = vector.multi_reduction <add>, %647, %cst_191 [2] : vector<4x16x16xf32> to vector<4x16xf32>
    %649 = vector.shape_cast %648 : vector<4x16xf32> to vector<4x16x1xf32>
    %650 = tpu.reciprocal %649 {approx = true} : vector<4x16x1xf32> -> vector<4x16x1xf32>
    %651 = vector.broadcast %650 : vector<4x16x1xf32> to vector<4x16x16xf32>
    %652 = arith.mulf %647, %651 : vector<4x16x16xf32>
    %653 = arith.truncf %652 : vector<4x16x16xf32> to vector<4x16x16xbf16>
    %654 = vector.extract_strided_slice %653 {offsets = [0, 0, 0], sizes = [1, 16, 16], strides = [1, 1, 1]} : vector<4x16x16xbf16> to vector<1x16x16xbf16>
    %655 = vector.shape_cast %654 : vector<1x16x16xbf16> to vector<16x16xbf16>
    %656 = vector.extract_strided_slice %620 {offsets = [0, 0], sizes = [16, 8], strides = [1, 1]} : vector<16x32xbf16> to vector<16x8xbf16>
    %cst_192 = arith.constant dense<0.000000e+00> : vector<16x8xf32>
    %657 = tpu.matmul %655, %656, %cst_192 {dimension_numbers = #tpu.dot_dimension_numbers<[1], [0], [0], [1], [0, 0, 1, 1], [], []>} : vector<16x16xbf16>, vector<16x8xbf16>, vector<16x8xf32> -> vector<16x8xf32>
    %658 = vector.extract_strided_slice %653 {offsets = [1, 0, 0], sizes = [1, 16, 16], strides = [1, 1, 1]} : vector<4x16x16xbf16> to vector<1x16x16xbf16>
    %659 = vector.shape_cast %658 : vector<1x16x16xbf16> to vector<16x16xbf16>
    %660 = vector.extract_strided_slice %620 {offsets = [0, 8], sizes = [16, 8], strides = [1, 1]} : vector<16x32xbf16> to vector<16x8xbf16>
    %cst_193 = arith.constant dense<0.000000e+00> : vector<16x8xf32>
    %661 = tpu.matmul %659, %660, %cst_193 {dimension_numbers = #tpu.dot_dimension_numbers<[1], [0], [0], [1], [0, 0, 1, 1], [], []>} : vector<16x16xbf16>, vector<16x8xbf16>, vector<16x8xf32> -> vector<16x8xf32>
    %662 = vector.extract_strided_slice %653 {offsets = [2, 0, 0], sizes = [1, 16, 16], strides = [1, 1, 1]} : vector<4x16x16xbf16> to vector<1x16x16xbf16>
    %663 = vector.shape_cast %662 : vector<1x16x16xbf16> to vector<16x16xbf16>
    %664 = vector.extract_strided_slice %620 {offsets = [0, 16], sizes = [16, 8], strides = [1, 1]} : vector<16x32xbf16> to vector<16x8xbf16>
    %cst_194 = arith.constant dense<0.000000e+00> : vector<16x8xf32>
    %665 = tpu.matmul %663, %664, %cst_194 {dimension_numbers = #tpu.dot_dimension_numbers<[1], [0], [0], [1], [0, 0, 1, 1], [], []>} : vector<16x16xbf16>, vector<16x8xbf16>, vector<16x8xf32> -> vector<16x8xf32>
    %666 = vector.extract_strided_slice %653 {offsets = [3, 0, 0], sizes = [1, 16, 16], strides = [1, 1, 1]} : vector<4x16x16xbf16> to vector<1x16x16xbf16>
    %667 = vector.shape_cast %666 : vector<1x16x16xbf16> to vector<16x16xbf16>
    %668 = vector.extract_strided_slice %620 {offsets = [0, 24], sizes = [16, 8], strides = [1, 1]} : vector<16x32xbf16> to vector<16x8xbf16>
    %cst_195 = arith.constant dense<0.000000e+00> : vector<16x8xf32>
    %669 = tpu.matmul %667, %668, %cst_195 {dimension_numbers = #tpu.dot_dimension_numbers<[1], [0], [0], [1], [0, 0, 1, 1], [], []>} : vector<16x16xbf16>, vector<16x8xbf16>, vector<16x8xf32> -> vector<16x8xf32>
    %670 = tpu.concatenate %657, %661, %665, %669 in 1 : vector<16x8xf32>, vector<16x8xf32>, vector<16x8xf32>, vector<16x8xf32> -> vector<16x32xf32>
    %671 = arith.truncf %670 : vector<16x32xf32> to vector<16x32xbf16>
    %cst_196 = arith.constant dense<0.000000e+00> : vector<16x32xf32>
    %672 = tpu.matmul %671, %622, %cst_196 {dimension_numbers = #tpu.dot_dimension_numbers<[1], [0], [0], [1], [0, 0, 1, 1], [], []>} : vector<16x32xbf16>, vector<32x32xbf16>, vector<16x32xf32> -> vector<16x32xf32>
    %673 = vector.broadcast %512 : vector<1x32xf32> to vector<16x32xf32>
    %674 = arith.addf %672, %673 : vector<16x32xf32>
    %675 = arith.addf %605, %674 : vector<16x32xf32>
    %cst_197 = arith.constant dense<0.000000e+00> : vector<16xf32>
    %676 = vector.multi_reduction <add>, %675, %cst_197 [1] : vector<16x32xf32> to vector<16xf32>
    %677 = vector.shape_cast %676 : vector<16xf32> to vector<16x1xf32>
    %cst_198 = arith.constant 3.200000e+01 : f32
    %678 = vector.broadcast %cst_198 : f32 to vector<16x1xf32>
    %679 = arith.divf %677, %678 : vector<16x1xf32>
    %680 = vector.broadcast %679 : vector<16x1xf32> to vector<16x32xf32>
    %681 = arith.subf %675, %680 : vector<16x32xf32>
    %682 = arith.mulf %681, %681 : vector<16x32xf32>
    %cst_199 = arith.constant dense<0.000000e+00> : vector<16xf32>
    %683 = vector.multi_reduction <add>, %682, %cst_199 [1] : vector<16x32xf32> to vector<16xf32>
    %684 = vector.shape_cast %683 : vector<16xf32> to vector<16x1xf32>
    %cst_200 = arith.constant 3.200000e+01 : f32
    %685 = vector.broadcast %cst_200 : f32 to vector<16x1xf32>
    %686 = arith.divf %684, %685 : vector<16x1xf32>
    %cst_201 = arith.constant 9.99999974E-6 : f32
    %687 = vector.broadcast %cst_201 : f32 to vector<16x1xf32>
    %688 = arith.addf %686, %687 : vector<16x1xf32>
    %689 = math.rsqrt %688 : vector<16x1xf32>
    %690 = vector.broadcast %689 : vector<16x1xf32> to vector<16x32xf32>
    %691 = arith.mulf %681, %690 : vector<16x32xf32>
    %692 = vector.broadcast %517 : vector<1x32xf32> to vector<16x32xf32>
    %693 = arith.mulf %691, %692 : vector<16x32xf32>
    %694 = vector.broadcast %518 : vector<1x32xf32> to vector<16x32xf32>
    %695 = arith.addf %693, %694 : vector<16x32xf32>
    %c1_202 = arith.constant 1 : index
    %c0_203 = arith.constant 0 : index
    %c0_204 = arith.constant 0 : index
    %696 = vector.load %arg14[%c1_202, %c0_203, %c0_204] : memref<2x32x64xbf16, #tpu.memory_space<vmem>>, vector<1x32x64xbf16>
    %697 = vector.shape_cast %696 : vector<1x32x64xbf16> to vector<32x64xbf16>
    %698 = arith.truncf %695 : vector<16x32xf32> to vector<16x32xbf16>
    %cst_205 = arith.constant dense<0.000000e+00> : vector<16x64xf32>
    %699 = tpu.matmul %698, %697, %cst_205 {dimension_numbers = #tpu.dot_dimension_numbers<[1], [0], [0], [1], [0, 0, 1, 1], [], []>} : vector<16x32xbf16>, vector<32x64xbf16>, vector<16x64xf32> -> vector<16x64xf32>
    %700 = vector.broadcast %513 : vector<1x64xf32> to vector<16x64xf32>
    %701 = arith.addf %699, %700 : vector<16x64xf32>
    %cst_206 = arith.constant 0.000000e+00 : f32
    %702 = vector.broadcast %cst_206 : f32 to vector<16x64xf32>
    %703 = arith.maximumf %701, %702 : vector<16x64xf32>
    %c1_207 = arith.constant 1 : index
    %c0_208 = arith.constant 0 : index
    %c0_209 = arith.constant 0 : index
    %704 = vector.load %arg15[%c1_207, %c0_208, %c0_209] : memref<2x64x32xbf16, #tpu.memory_space<vmem>>, vector<1x64x32xbf16>
    %705 = vector.shape_cast %704 : vector<1x64x32xbf16> to vector<64x32xbf16>
    %706 = arith.truncf %703 : vector<16x64xf32> to vector<16x64xbf16>
    %cst_210 = arith.constant dense<0.000000e+00> : vector<16x32xf32>
    %707 = tpu.matmul %706, %705, %cst_210 {dimension_numbers = #tpu.dot_dimension_numbers<[1], [0], [0], [1], [0, 0, 1, 1], [], []>} : vector<16x64xbf16>, vector<64x32xbf16>, vector<16x32xf32> -> vector<16x32xf32>
    %708 = vector.broadcast %514 : vector<1x32xf32> to vector<16x32xf32>
    %709 = arith.addf %707, %708 : vector<16x32xf32>
    %710 = arith.addf %695, %709 : vector<16x32xf32>
    %cst_211 = arith.constant dense<0.000000e+00> : vector<16xf32>
    %711 = vector.multi_reduction <add>, %710, %cst_211 [1] : vector<16x32xf32> to vector<16xf32>
    %712 = vector.shape_cast %711 : vector<16xf32> to vector<16x1xf32>
    %cst_212 = arith.constant 3.200000e+01 : f32
    %713 = vector.broadcast %cst_212 : f32 to vector<16x1xf32>
    %714 = arith.divf %712, %713 : vector<16x1xf32>
    %715 = vector.broadcast %714 : vector<16x1xf32> to vector<16x32xf32>
    %716 = arith.subf %710, %715 : vector<16x32xf32>
    %717 = arith.mulf %716, %716 : vector<16x32xf32>
    %cst_213 = arith.constant dense<0.000000e+00> : vector<16xf32>
    %718 = vector.multi_reduction <add>, %717, %cst_213 [1] : vector<16x32xf32> to vector<16xf32>
    %719 = vector.shape_cast %718 : vector<16xf32> to vector<16x1xf32>
    %cst_214 = arith.constant 3.200000e+01 : f32
    %720 = vector.broadcast %cst_214 : f32 to vector<16x1xf32>
    %721 = arith.divf %719, %720 : vector<16x1xf32>
    %cst_215 = arith.constant 9.99999974E-6 : f32
    %722 = vector.broadcast %cst_215 : f32 to vector<16x1xf32>
    %723 = arith.addf %721, %722 : vector<16x1xf32>
    %724 = math.rsqrt %723 : vector<16x1xf32>
    %725 = vector.broadcast %724 : vector<16x1xf32> to vector<16x32xf32>
    %726 = arith.mulf %716, %725 : vector<16x32xf32>
    %727 = vector.broadcast %519 : vector<1x32xf32> to vector<16x32xf32>
    %728 = arith.mulf %726, %727 : vector<16x32xf32>
    %729 = vector.broadcast %520 : vector<1x32xf32> to vector<16x32xf32>
    %730 = arith.addf %728, %729 : vector<16x32xf32>
    %731 = vector.extract_strided_slice %0 {offsets = [44, 0], sizes = [1, 32], strides = [1, 1]} : vector<46x96xf32> to vector<1x32xf32>
    %732 = vector.extract_strided_slice %0 {offsets = [45, 0], sizes = [1, 32], strides = [1, 1]} : vector<46x96xf32> to vector<1x32xf32>
    %cst_216 = arith.constant dense<0.000000e+00> : vector<16xf32>
    %733 = vector.multi_reduction <add>, %730, %cst_216 [1] : vector<16x32xf32> to vector<16xf32>
    %734 = vector.shape_cast %733 : vector<16xf32> to vector<16x1xf32>
    %cst_217 = arith.constant 3.200000e+01 : f32
    %735 = vector.broadcast %cst_217 : f32 to vector<16x1xf32>
    %736 = arith.divf %734, %735 : vector<16x1xf32>
    %737 = vector.broadcast %736 : vector<16x1xf32> to vector<16x32xf32>
    %738 = arith.subf %730, %737 : vector<16x32xf32>
    %739 = arith.mulf %738, %738 : vector<16x32xf32>
    %cst_218 = arith.constant dense<0.000000e+00> : vector<16xf32>
    %740 = vector.multi_reduction <add>, %739, %cst_218 [1] : vector<16x32xf32> to vector<16xf32>
    %741 = vector.shape_cast %740 : vector<16xf32> to vector<16x1xf32>
    %cst_219 = arith.constant 3.200000e+01 : f32
    %742 = vector.broadcast %cst_219 : f32 to vector<16x1xf32>
    %743 = arith.divf %741, %742 : vector<16x1xf32>
    %cst_220 = arith.constant 9.99999974E-6 : f32
    %744 = vector.broadcast %cst_220 : f32 to vector<16x1xf32>
    %745 = arith.addf %743, %744 : vector<16x1xf32>
    %746 = math.rsqrt %745 : vector<16x1xf32>
    %747 = vector.broadcast %746 : vector<16x1xf32> to vector<16x32xf32>
    %748 = arith.mulf %738, %747 : vector<16x32xf32>
    %749 = vector.broadcast %731 : vector<1x32xf32> to vector<16x32xf32>
    %750 = arith.mulf %748, %749 : vector<16x32xf32>
    %751 = vector.broadcast %732 : vector<1x32xf32> to vector<16x32xf32>
    %752 = arith.addf %750, %751 : vector<16x32xf32>
    %c0_221 = arith.constant 0 : index
    %c0_222 = arith.constant 0 : index
    %753 = vector.load %arg17[%c0_221, %c0_222] : memref<16x32xf32, #tpu.memory_space<vmem>>, vector<16x32xf32>
    tpu.vector_store %arg17[%c0_221, %c0_222], %752 {strides = array<i32>} : memref<16x32xf32, #tpu.memory_space<vmem>>, vector<16x32xf32>,
    return
  }
}

</mosaic_0001>

<bundles_post_ra>
// kernel: generate_task_model_forward.1
= control target key start
LH: loop header
LB: loop body
LE: loop exit
PB: predicated region body
PF: predicated region fallthrough
CT: control target
= control target key end

     0   :  { %s7690_s0 = inlined_call_operand.vmem [shape: f32[16,32], index: 0, kind: input, shape index: {}]   ;;  %s7691_s1 = inlined_call_operand.vmem [shape: f32[16,32], index: 1, kind: input, shape index: {}]   ;;  %s7692_s2 = inlined_call_operand.vmem [shape: f32[16,16], index: 2, kind: input, shape index: {}]   ;;  %s7693_s3 = inlined_call_operand.vmem [shape: f32[16,16], index: 3, kind: input, shape index: {}]   ;;  %s7694_s4 = inlined_call_operand.vmem [shape: f32[16,16], index: 4, kind: input, shape index: {}]   ;;  %s7695_s5 = inlined_call_operand.vmem [shape: bf16[2,32,96], index: 5, kind: input, shape index: {}]   ;;  %s7696_s6 = inlined_call_operand.vmem [shape: bf16[2,32,32], index: 6, kind: input, shape index: {}]   ;;  %s7697_s7 = inlined_call_operand.vmem [shape: bf16[2,32,64], index: 7, kind: input, shape index: {}]   ;;  %s7698_s8 = inlined_call_operand.vmem [shape: bf16[2,64,32], index: 8, kind: input, shape index: {}]   ;;  %s7699_s9 = inlined_call_operand.vmem [shape: bf16[2,32,96], index: 9, kind: input, shape index: {}]   ;;  %s7700_s10 = inlined_call_operand.vmem [shape: bf16[2,32,32], index: 10, kind: input, shape index: {}]   ;;  %s7701_s11 = inlined_call_operand.vmem [shape: bf16[2,32,32], index: 11, kind: input, shape index: {}]   ;;  %s7702_s12 = inlined_call_operand.vmem [shape: bf16[2,32,64], index: 12, kind: input, shape index: {}]   ;;  %s7703_s13 = inlined_call_operand.vmem [shape: bf16[2,32,32], index: 13, kind: input, shape index: {}]   ;;  %s7704_s14 = inlined_call_operand.vmem [shape: bf16[2,32,64], index: 14, kind: input, shape index: {}]   ;;  %s7705_s15 = inlined_call_operand.vmem [shape: bf16[2,64,32], index: 15, kind: input, shape index: {}]   ;;  %s7706_s16 = inlined_call_operand.vmem [shape: f32[46,96], index: 16, kind: input, shape index: {}]   ;;  %s7707_s17 = inlined_call_operand.hbm [shape: f32[16,32], index: 17, kind: output, shape index: {}]  }
   0x1   :  { %7723 = sst [smem:[#allocation5_spill]] %s7690_s0 }
   0x2   :  { %7724 = sst [smem:[#allocation6_spill]] %s7691_s1 }
   0x3   :  { %v6147_v0 = vld [vmem:[%s7695_s5 + $0x8] sm:$0xff]   ;;  %v6467_v1 = vmov 0.0   ;;  %v6148_v2 = vld [vmem:[%s7695_s5] sm:$0xff]   ;;  %vm6468_vm0 = vmmov 0   ;;  %s7725_s0 = sld [smem:[#allocation5_spill]]  ;;  %vm89_vm1 = vcmask 261120  }
   0x4   :  { %5559 = vmatprep.subr.bf16.mxu1 %v6467_v1  ;;  %5573 = vmatprep.subr.bf16.mxu0 %v6467_v1 }
   0x5   :  { %5560 = vmatpush3.bf16.msra.mxu1 %v6147_v0  ;;  %5563 = vmatprep.mubr.msk.bf16.mxu1 %vm6468_vm0, %v6467_v1 }
   0x6   :  { %5561 = vmatprep.subr.bf16.mxu1 %v6467_v1  ;;  %5575 = vmatprep.mubr.msk.bf16.mxu0 %vm6468_vm0, %v6467_v1 }
   0x9   :  { %v6588_v3 = vld [vmem:[%s7725_s0] sm:$0xff]  ;;  %v6593_v4 = vld [vmem:[%s7725_s0 + $0x8] sm:$0xff]  ;;  %5562 = vmatpush3.bf16.msra.mxu1 %v6148_v2 }
   0xa   :  { %v72_v5 = vpack.c.bf16 %v6593_v4, %v6588_v3  ;;  %5567 = vmatprep.subr.bf16.mxu1 %v6467_v1 }
   0xc   :  { %5564 = vmatmul.mubr.msk.bf16.vlgmr.msra.gmra.mxu1 %vm89_vm1, %v72_v5 }
   0xd   :  { %5569 = vmatprep.mubr.msk.bf16.mxu1 %vm6468_vm0, %v6467_v1 }
   0xe   :  { %22 = vsyncpa [#allocation3], 0  ;;  %v73_v6 = vlaneseq  ;;  %v6612_v9 = vld [vmem:[%s7706_s16] sm:$0xff]  ;;  %s6469_s20 = smov 80   ;;  %s6470_s21 = smov 96   ;;  %vm142_vm2 = vcmask 64512  }
   0xf   :  { %s6471_s22 = smov 120   ;;  %s6472_s23 = smov 88   ;;  %v6656_v29 = vld [vmem:[%s7692_s2] sm:$0xff]  ;;  %vm351_vm3 = vcmask 130048   ;;  %v6662_v33 = vld [vmem:[%s7692_s2 + $0x8] sm:$0xff]  ;;  %vm660_vm4 = vcmask 195584  }
  0x10   :  { %v6604_v7 = vshrl.u32 %v73_v6, 7  ;;  %s6473_s24 = smov 112   ;;  %s6474_s25 = smov 72   ;;  %vm869_vm5 = vcmask 523264  }
  0x11   :  { %s6475_s26 = smov 104   ;;  %s7722_s2 = smov 56  }
  0x12   :  { %v6607_v8 = vsub.s32 0, %v6604_v7  ;;  %s7720_s30 = smov 64   ;;  %s7718_s18 = smov 48  }
  0x13   :  { %s7716_s19 = smov 40   ;;  %s7714_s0 = smov 8  }
  0x14   :  { %v76_v11 = vrot.slane %v6612_v9, %v6607_v8  ;;  %s7712_s1 = smov 16   ;;  %s7710_s27 = smov 24  }
  0x15   :  { %s7726_s29 = smov 40   ;;  %s7728_s28 = smov 16  }
  0xcc   :  { %v127_v10 = vpop.f32.mrf.mxu1 }
  0xcd   :  { %v128_v14 = vadd.f32 %v127_v10, %v76_v11 }
  0xce   :  { %v5565_v12 = vpop.f32.mrf.mxu1 }
  0xd0   :  { %v130_v13 = vpop.f32.mrf.mxu1 }
  0xd1   :  { %v131_v15 = vadd.f32 %v130_v13, %v76_v11 }
  0xd2   :  { %v5566_v16 = vpop.f32.mrf.mxu1 }
  0xd3   :  { %v6616_v17 = vpack.c.bf16 %v131_v15, %v128_v14 }
  0xd5   :  { %243 = vrot.lane.b32.xlu1 %v6616_v17, %s6469_s20  ;;  %140 = vrot.lane.b32.xlu0 %v6616_v17, %s6470_s21 }
  0xd9   :  { %190 = vrot.lane.b32.xlu1 %v6616_v17, %s6471_s22  ;;  %192 = vrot.lane.b32.xlu0 %v6616_v17, %s6472_s23 }
  0xdd   :  { %241 = vrot.lane.b32.xlu1 %v6616_v17, %s6473_s24  ;;  %294 = vrot.lane.b32.xlu0 %v6616_v17, %s6474_s25 }
  0xe1   :  { %292 = vrot.lane.b32.xlu0 %v6616_v17, %s6475_s26 }
 0x147   :  { %v141_v18 = vpop.permute.xlu0 %140  ;;  %v244_v20 = vpop.permute.xlu1 %243 }
 0x148   :  { %v147_v19 = vsel %vm142_vm2, %v141_v18, 0  ;;  %v249_v23 = vsel %vm142_vm2, %v244_v20, 0 }
 0x149   :  { %5568 = vmatpush3.bf16.xpose.msra.mxu1 %v147_v19 }
 0x14a   :  { %5579 = vmatprep.subr.bf16.mxu1 %v6467_v1 }
 0x14b   :  { %v193_v21 = vpop.permute.xlu0 %192  ;;  %v191_v24 = vpop.permute.xlu1 %190 }
 0x14c   :  { %v198_v22 = vsel %vm142_vm2, %v193_v21, 0 }
 0x14d   :  { %5574 = vmatpush3.bf16.xpose.msra.mxu0 %v198_v22 }
 0x14e   :  { %5585 = vmatprep.subr.bf16.mxu0 %v6467_v1 }
 0x14f   :  { %v295_v25 = vpop.permute.xlu0 %294  ;;  %v242_v27 = vpop.permute.xlu1 %241 }
 0x150   :  { %5570 = vmatmul.mubr.msk.bf16.vlgmr.msra.gmra.mxu1 %vm142_vm2, %v6616_v17  ;;  %v300_v26 = vsel %vm142_vm2, %v295_v25, 0 }
 0x151   :  { %5580 = vmatpush3.bf16.xpose.msra.mxu1 %v249_v23  ;;  %5581 = vmatprep.mubr.msk.bf16.mxu1 %vm6468_vm0, %v6467_v1 }
 0x152   :  { %5591 = vmatprep.subr.bf16.mxu1 %v6467_v1 }
 0x153   :  { %v293_v28 = vpop.permute.xlu0 %292 }
 0x154   :  { %5576 = vmatmul.mubr.msk.bf16.vlgmr.msra.gmra.mxu0 %vm142_vm2, %v191_v24 }
 0x155   :  { %5586 = vmatpush3.bf16.xpose.msra.mxu0 %v300_v26  ;;  %5587 = vmatprep.mubr.msk.bf16.mxu0 %vm6468_vm0, %v6467_v1 }
 0x156   :  { %5597 = vmatprep.subr.bf16.mxu0 %v6467_v1 }
 0x158   :  { %5582 = vmatmul.mubr.msk.bf16.vlgmr.msra.gmra.mxu1 %vm142_vm2, %v242_v27 }
 0x159   :  { %5593 = vmatprep.mubr.msk.bf16.mxu1 %vm6468_vm0, %v6467_v1 }
 0x15c   :  { %5588 = vmatmul.mubr.msk.bf16.vlgmr.msra.gmra.mxu0 %vm142_vm2, %v293_v28 }
 0x15d   :  { %5599 = vmatprep.mubr.msk.bf16.mxu0 %vm6468_vm0, %v6467_v1 }
 0x210   :  { %v183_v30 = vpop.f32.mrf.mxu1 }
 0x211   :  { %v343_v31 = vadd.f32 %v183_v30, %v6656_v29 }
 0x212   :  { %v5571_v32 = vpop.f32.mrf.mxu1 }
 0x213   :  { %v352_v34 = vsel %vm351_vm3, %v343_v31, -inf }
 0x214   :  { %353 = vmax.xlane.f32.xlu1 %v352_v34  ;;  %v186_v35 = vpop.f32.mrf.mxu1  ;;  %v234_v36 = vpop.f32.mrf.mxu0 }
 0x215   :  { %v344_v37 = vadd.f32 %v186_v35, %v6662_v33  ;;  %v345_v40 = vadd.f32 %v234_v36, %v6656_v29 }
 0x216   :  { %v5572_v38 = vpop.f32.mrf.mxu1  ;;  %v5577_v39 = vpop.f32.mrf.mxu0 }
 0x217   :  { %v355_v41 = vsel %vm351_vm3, %v344_v37, -inf  ;;  %v358_v48 = vsel %vm351_vm3, %v345_v40, -inf }
 0x218   :  { %356 = vmax.xlane.f32.xlu0 %v355_v41  ;;  %v237_v42 = vpop.f32.mrf.mxu0  ;;  %v285_v43 = vpop.f32.mrf.mxu1 }
 0x219   :  { %v346_v44 = vadd.f32 %v237_v42, %v6662_v33  ;;  %v347_v47 = vadd.f32 %v285_v43, %v6656_v29 }
 0x21a   :  { %v5578_v45 = vpop.f32.mrf.mxu0  ;;  %v5583_v46 = vpop.f32.mrf.mxu1 }
 0x21b   :  { %v361_v49 = vsel %vm351_vm3, %v346_v44, -inf  ;;  %v364_v56 = vsel %vm351_vm3, %v347_v47, -inf }
 0x21c   :  { %v288_v50 = vpop.f32.mrf.mxu1  ;;  %359 = vmax.xlane.f32.xlu0 %v358_v48  ;;  %362 = vmax.xlane.f32.xlu1 %v361_v49  ;;  %v336_v51 = vpop.f32.mrf.mxu0 }
 0x21d   :  { %v348_v52 = vadd.f32 %v288_v50, %v6662_v33  ;;  %v349_v55 = vadd.f32 %v336_v51, %v6656_v29 }
 0x21e   :  { %v5584_v53 = vpop.f32.mrf.mxu1  ;;  %v5589_v54 = vpop.f32.mrf.mxu0 }
 0x21f   :  { %v367_v57 = vsel %vm351_vm3, %v348_v52, -inf  ;;  %v370_v61 = vsel %vm351_vm3, %v349_v55, -inf }
 0x220   :  { %365 = vmax.xlane.f32.xlu0 %v364_v56  ;;  %368 = vmax.xlane.f32.xlu1 %v367_v57  ;;  %v339_v58 = vpop.f32.mrf.mxu0 }
 0x221   :  { %v350_v59 = vadd.f32 %v339_v58, %v6662_v33 }
 0x222   :  { %v5590_v60 = vpop.f32.mrf.mxu0 }
 0x223   :  { %v373_v62 = vsel %vm351_vm3, %v350_v59, -inf }
 0x224   :  { %371 = vmax.xlane.f32.xlu0 %v370_v61  ;;  %374 = vmax.xlane.f32.xlu1 %v373_v62 }
 0x235   :  { %491 = vrot.lane.b32.xlu1 %v6616_v17, %s7722_s2 }
 0x23a   :  { %444 = vrot.lane.b32.xlu0 %v6616_v17, %s7720_s30 }
 0x29d   :  { %v354_v63 = vpop.xlane.xlu1 %353 }
 0x29e   :  { %v376_v0 = vsub.f32 %v343_v31, %v354_v63 }
 0x2a0   :  { %v384_v2 = vmul.f32 1.442695, %v376_v0 }
 0x2a1   :  { %v357_v5 = vpop.xlane.xlu0 %356 }
 0x2a2   :  { %6199 = vpow2.f32 %v384_v2  ;;  %v377_v6 = vsub.f32 %v344_v37, %v357_v5 }
 0x2a4   :  { %v386_v10 = vmul.f32 1.442695, %v377_v6 }
 0x2a5   :  { %v363_v11 = vpop.xlane.xlu1 %362  ;;  %v360_v12 = vpop.xlane.xlu0 %359 }
 0x2a6   :  { %6201 = vpow2.f32 %v386_v10  ;;  %v379_v13 = vsub.f32 %v346_v44, %v363_v11  ;;  %v378_v14 = vsub.f32 %v345_v40, %v360_v12 }
 0x2a8   :  { %v390_v15 = vmul.f32 1.442695, %v379_v13  ;;  %v388_v16 = vmul.f32 1.442695, %v378_v14 }
 0x2a9   :  { %v369_v18 = vpop.xlane.xlu1 %368  ;;  %v366_v19 = vpop.xlane.xlu0 %365 }
 0x2aa   :  { %6203 = vpow2.f32 %v390_v15  ;;  %v381_v20 = vsub.f32 %v348_v52, %v369_v18  ;;  %v380_v21 = vsub.f32 %v347_v47, %v366_v19 }
 0x2ab   :  { %6205 = vpow2.f32 %v388_v16 }
 0x2ac   :  { %v394_v22 = vmul.f32 1.442695, %v381_v20  ;;  %v392_v23 = vmul.f32 1.442695, %v380_v21 }
 0x2ad   :  { %v375_v24 = vpop.xlane.xlu1 %374  ;;  %v372_v25 = vpop.xlane.xlu0 %371 }
 0x2ae   :  { %6207 = vpow2.f32 %v394_v22  ;;  %v383_v26 = vsub.f32 %v350_v59, %v375_v24  ;;  %v382_v27 = vsub.f32 %v349_v55, %v372_v25  ;;  %v6149_v25 = vld [vmem:[%s7696_s6 + $0x8] sm:$0xff]  }
 0x2af   :  { %v6200_v28 = vpop.eup %6199  ;;  %6209 = vpow2.f32 %v392_v23 }
 0x2b0   :  { %v398_v30 = vmul.f32 1.442695, %v383_v26  ;;  %v396_v31 = vmul.f32 1.442695, %v382_v27  ;;  %v400_v32 = vsel %vm351_vm3, %v6200_v28, 0.0 }
 0x2b1   :  { %401 = vadd.xlane.f32.xlu0 %v400_v32  ;;  %v492_v34 = vpop.permute.xlu1 %491  ;;  %v445_v35 = vpop.permute.xlu0 %444 }
 0x2b2   :  { %6211 = vpow2.f32 %v398_v30  ;;  %5592 = vmatpush3.bf16.msra.mxu1 %v445_v35  ;;  %5598 = vmatpush3.bf16.msra.mxu0 %v492_v34  ;;  %v6150_v30 = vld [vmem:[%s7696_s6] sm:$0xff]  }
 0x2b3   :  { %v6202_v36 = vpop.eup %6201  ;;  %6213 = vpow2.f32 %v396_v31  ;;  %5603 = vmatprep.subr.bf16.mxu1 %v6467_v1  ;;  %5609 = vmatprep.subr.bf16.mxu0 %v6467_v1 }
 0x2b4   :  { %v403_v37 = vsel %vm351_vm3, %v6202_v36, 0.0 }
 0x2b5   :  { %404 = vadd.xlane.f32.xlu1 %v403_v37 }
 0x2b7   :  { %v6204_v38 = vpop.eup %6203 }
 0x2b8   :  { %v6206_v39 = vpop.eup %6205  ;;  %v409_v40 = vsel %vm351_vm3, %v6204_v38, 0.0 }
 0x2b9   :  { %410 = vadd.xlane.f32.xlu1 %v409_v40  ;;  %v406_v41 = vsel %vm351_vm3, %v6206_v39, 0.0 }
 0x2ba   :  { %407 = vadd.xlane.f32.xlu0 %v406_v41 }
 0x2bb   :  { %v6208_v42 = vpop.eup %6207 }
 0x2bc   :  { %v6210_v43 = vpop.eup %6209  ;;  %v415_v44 = vsel %vm351_vm3, %v6208_v42, 0.0 }
 0x2bd   :  { %416 = vadd.xlane.f32.xlu1 %v415_v44  ;;  %v412_v45 = vsel %vm351_vm3, %v6210_v43, 0.0 }
 0x2be   :  { %413 = vadd.xlane.f32.xlu0 %v412_v45 }
 0x2bf   :  { %v6212_v46 = vpop.eup %6211 }
 0x2c0   :  { %v6214_v47 = vpop.eup %6213  ;;  %v421_v48 = vsel %vm351_vm3, %v6212_v46, 0.0 }
 0x2c1   :  { %422 = vadd.xlane.f32.xlu1 %v421_v48  ;;  %v418_v49 = vsel %vm351_vm3, %v6214_v47, 0.0 }
 0x2c2   :  { %419 = vadd.xlane.f32.xlu0 %v418_v49 }
 0x2d2   :  { %538 = vrot.lane.b32.xlu1 %v6616_v17, %s7718_s18 }
 0x2d8   :  { %585 = vrot.lane.b32.xlu0 %v6616_v17, %s7716_s19 }
 0x33a   :  { %v402_v50 = vpop.xlane.xlu0 %401 }
 0x33b   :  { %6215 = vrcp.f32 %v402_v50 }
 0x33e   :  { %v405_v51 = vpop.xlane.xlu1 %404 }
 0x33f   :  { %6217 = vrcp.f32 %v405_v51 }
 0x342   :  { %v411_v52 = vpop.xlane.xlu1 %410 }
 0x343   :  { %6219 = vrcp.f32 %v411_v52  ;;  %v408_v53 = vpop.xlane.xlu0 %407 }
 0x344   :  { %6221 = vrcp.f32 %v408_v53 }
 0x346   :  { %v417_v54 = vpop.xlane.xlu1 %416 }
 0x347   :  { %6223 = vrcp.f32 %v417_v54  ;;  %v414_v55 = vpop.xlane.xlu0 %413 }
 0x348   :  { %6225 = vrcp.f32 %v414_v55  ;;  %v6216_v56 = vpop.eup %6215 }
 0x349   :  { %v432_v60 = vmul.f32 %v6216_v56, %v6200_v28 }
 0x34a   :  { %v423_v57 = vpop.xlane.xlu1 %422 }
 0x34b   :  { %6227 = vrcp.f32 %v423_v57  ;;  %v420_v58 = vpop.xlane.xlu0 %419 }
 0x34c   :  { %v6218_v59 = vpop.eup %6217  ;;  %6229 = vrcp.f32 %v420_v58 }
 0x34d   :  { %v433_v17 = vmul.f32 %v6218_v59, %v6202_v36 }
 0x34e   :  { %v539_v0 = vpop.permute.xlu1 %538 }
 0x34f   :  { %v440_v61 = vpack.c.bf16 %v433_v17, %v432_v60  ;;  %v586_v13 = vpop.permute.xlu0 %585  ;;  %v6732_v17 = vsub.s32 1, %v6604_v7 }
 0x350   :  { %v6220_v62 = vpop.eup %6219 }
 0x351   :  { %v6222_v63 = vpop.eup %6221  ;;  %5594 = vmatmul.mubr.msk.bf16.vlgmr.msra.gmra.mxu1 %vm351_vm3, %v440_v61  ;;  %v435_v2 = vmul.f32 %v6220_v62, %v6204_v38  ;;  %v667_v61 = vrot.slane %v6612_v9, %v6732_v17 }
 0x352   :  { %5604 = vmatpush3.bf16.msra.mxu1 %v539_v0  ;;  %v434_v5 = vmul.f32 %v6222_v63, %v6206_v39  ;;  %5605 = vmatprep.mubr.msk.bf16.mxu1 %vm6468_vm0, %v6467_v1 }
 0x353   :  { %5615 = vmatprep.subr.bf16.mxu1 %v6467_v1 }
 0x354   :  { %v6224_v6 = vpop.eup %6223  ;;  %v441_v10 = vpack.c.bf16 %v435_v2, %v434_v5 }
 0x355   :  { %v6226_v11 = vpop.eup %6225  ;;  %v437_v12 = vmul.f32 %v6224_v6, %v6208_v42 }
 0x356   :  { %5600 = vmatmul.mubr.msk.bf16.vlgmr.msra.gmra.mxu0 %vm351_vm3, %v441_v10  ;;  %v436_v14 = vmul.f32 %v6226_v11, %v6210_v43 }
 0x357   :  { %5610 = vmatpush3.bf16.msra.mxu0 %v586_v13  ;;  %5611 = vmatprep.mubr.msk.bf16.mxu0 %vm6468_vm0, %v6467_v1 }
 0x358   :  { %v6228_v15 = vpop.eup %6227  ;;  %v442_v16 = vpack.c.bf16 %v437_v12, %v436_v14  ;;  %5623 = vmatprep.subr.bf16.mxu0 %v6467_v1 }
 0x359   :  { %v6230_v18 = vpop.eup %6229  ;;  %v439_v19 = vmul.f32 %v6228_v15, %v6212_v46 }
 0x35a   :  { %5606 = vmatmul.mubr.msk.bf16.vlgmr.msra.gmra.mxu1 %vm351_vm3, %v442_v16  ;;  %v438_v20 = vmul.f32 %v6230_v18, %v6214_v47 }
 0x35b   :  { %5619 = vmatprep.mubr.msk.bf16.mxu1 %vm6468_vm0, %v6467_v1  ;;  %5616 = vmatpush3.bf16.msra.mxu1 %v6149_v25  ;;  %v6153_v25 = vld [vmem:[%s7698_s8 + $0x18] sm:$0xff]  }
 0x35c   :  { %v443_v21 = vpack.c.bf16 %v439_v19, %v438_v20  ;;  %5617 = vmatprep.subr.bf16.mxu1 %v6467_v1 }
 0x35e   :  { %5612 = vmatmul.mubr.msk.bf16.vlgmr.msra.gmra.mxu0 %vm351_vm3, %v443_v21 }
 0x35f   :  { %5627 = vmatprep.mubr.msk.bf16.mxu0 %vm6468_vm0, %v6467_v1  ;;  %5618 = vmatpush3.bf16.msra.mxu1 %v6150_v30 }
 0x360   :  { %5631 = vmatprep.subr.bf16.mxu1 %v6467_v1 }
 0x411   :  { %v484_v22 = vpop.f32.mrf.mxu1 }
 0x413   :  { %v5595_v23 = vpop.f32.mrf.mxu1 }
 0x415   :  { %v487_v24 = vpop.f32.mrf.mxu1 }
 0x416   :  { %v531_v26 = vpop.f32.mrf.mxu0 }
 0x417   :  { %v5596_v27 = vpop.f32.mrf.mxu1 }
 0x418   :  { %v5601_v28 = vpop.f32.mrf.mxu0 }
 0x41a   :  { %v534_v31 = vpop.f32.mrf.mxu0  ;;  %v578_v32 = vpop.f32.mrf.mxu1 }
 0x41b   :  { %v6057_v34 = vpack.i.bf16 %v534_v31, %v531_v26 }
 0x41c   :  { %v5602_v35 = vpop.f32.mrf.mxu0  ;;  %v5607_v36 = vpop.f32.mrf.mxu1 }
 0x41d   :  { %6058 = vrot.lane.b32.xlu1 %v6057_v34, %s7714_s0  ;;  %v6755_v34 = vsub.s32 4, %v6604_v7 }
 0x41e   :  { %v581_v37 = vpop.f32.mrf.mxu1  ;;  %v625_v38 = vpop.f32.mrf.mxu0 }
 0x41f   :  { %v6062_v39 = vpack.i.bf16 %v581_v37, %v578_v32  ;;  %v756_v37 = vrot.slane %v6612_v9, %v6755_v34 }
 0x420   :  { %v5608_v40 = vpop.f32.mrf.mxu1  ;;  %v5613_v41 = vpop.f32.mrf.mxu0 }
 0x421   :  { %6063 = vrot.lane.b32.xlu0 %v6062_v39, %s7712_s1 }
 0x422   :  { %v628_v42 = vpop.f32.mrf.mxu0 }
 0x423   :  { %v6067_v43 = vpack.i.bf16 %v628_v42, %v625_v38  ;;  %v6760_v38 = vsub.s32 5, %v6604_v7 }
 0x424   :  { %v5614_v44 = vpop.f32.mrf.mxu0 }
 0x425   :  { %6068 = vrot.lane.b32.xlu1 %v6067_v43, %s7710_s27  ;;  %v762_v42 = vrot.slane %v6612_v9, %v6760_v38  ;;  %s7730_s27 = sld [smem:[#allocation6_spill]] }
 0x48f   :  { %v6059_v45 = vpop.permute.xlu1 %6058 }
 0x490   :  { %v6061_v47 = vunpack.i.h.bf16 %v6059_v45  ;;  %v6060_v48 = vunpack.i.l.bf16 %v6059_v45 }
 0x492   :  { %v657_v52 = vsel %vm142_vm2, %v487_v24, %v6061_v47  ;;  %v656_v53 = vsel %vm142_vm2, %v484_v22, %v6060_v48  ;;  %v6152_v24 = vld [vmem:[%s7697_s7] sm:$0xff]   ;;  %v6154_v47 = vld [vmem:[%s7698_s8 + $0x10] sm:$0xff]   ;;  %v6155_v48 = vld [vmem:[%s7698_s8 + $0x8] sm:$0xff]  }
 0x493   :  { %v6064_v46 = vpop.permute.xlu0 %6063 }
 0x494   :  { %v6066_v49 = vunpack.i.h.bf16 %v6064_v46  ;;  %v6065_v50 = vunpack.i.l.bf16 %v6064_v46 }
 0x496   :  { %v659_v56 = vsel %vm351_vm3, %v657_v52, %v6066_v49  ;;  %v658_v57 = vsel %vm351_vm3, %v656_v53, %v6065_v50  ;;  %v6156_v49 = vld [vmem:[%s7698_s8] sm:$0xff]   ;;  %v6780_v50 = vsub.s32 2, %v6604_v7 }
 0x497   :  { %v6069_v51 = vpop.permute.xlu1 %6068 }
 0x498   :  { %v6071_v54 = vunpack.i.h.bf16 %v6069_v51  ;;  %v6070_v55 = vunpack.i.l.bf16 %v6069_v51  ;;  %v773_v51 = vrot.slane %v6612_v9, %v6780_v50 }
 0x49a   :  { %v661_v58 = vsel %vm660_vm4, %v658_v57, %v6070_v55  ;;  %v662_v59 = vsel %vm660_vm4, %v659_v56, %v6071_v54 }
 0x49b   :  { %v663_v60 = vpack.c.bf16 %v662_v59, %v661_v58 }
 0x49d   :  { %5620 = vmatmul.mubr.msk.bf16.vlgmr.msra.gmra.mxu1 %vm89_vm1, %v663_v60 }
 0x49e   :  { %5639 = vmatprep.mubr.msk.bf16.mxu1 %vm6468_vm0, %v6467_v1  ;;  %5632 = vmatpush3.bf16.msra.mxu1 %v6153_v25  ;;  %v6158_v25 = vld [vmem:[%s7695_s5 + $0x10] sm:$0xff]  }
 0x49f   :  { %5633 = vmatprep.subr.bf16.mxu1 %v6467_v1 }
 0x4a2   :  { %5634 = vmatpush3.bf16.msra.mxu1 %v6154_v47 }
 0x4a3   :  { %5635 = vmatprep.subr.bf16.mxu1 %v6467_v1 }
 0x4a6   :  { %5636 = vmatpush3.bf16.msra.mxu1 %v6155_v48 }
 0x4a7   :  { %5637 = vmatprep.subr.bf16.mxu1 %v6467_v1 }
 0x4aa   :  { %5638 = vmatpush3.bf16.msra.mxu1 %v6156_v49 }
 0x4ab   :  { %5657 = vmatprep.subr.bf16.mxu1 %v6467_v1 }
 0x55d   :  { %v717_v62 = vpop.f32.mrf.mxu1 }
 0x55e   :  { %v718_v63 = vadd.f32 %v717_v62, %v667_v61 }
 0x55f   :  { %v5621_v0 = vpop.f32.mrf.mxu1 }
 0x560   :  { %v724_v2 = vadd.f32 %v718_v63, %v6588_v3 }
 0x561   :  { %v720_v5 = vpop.f32.mrf.mxu1 }
 0x562   :  { %v721_v6 = vadd.f32 %v720_v5, %v667_v61  ;;  %v726_v10 = vsel %vm89_vm1, %v724_v2, 0.0  ;;  %v6788_v61 = vsub.s32 3, %v6604_v7 }
 0x563   :  { %727 = vadd.xlane.f32.xlu0 %v726_v10  ;;  %v5622_v11 = vpop.f32.mrf.mxu1 }
 0x564   :  { %v725_v12 = vadd.f32 %v721_v6, %v6593_v4  ;;  %v6151_v4 = vld [vmem:[%s7697_s7 + $0x8] sm:$0xff]   ;;  %v844_v62 = vrot.slane %v6612_v9, %v6788_v61 }
 0x565   :  { %5624 = vmatpush3.bf16.msra.mxu0 %v6151_v4 }
 0x566   :  { %v729_v13 = vsel %vm89_vm1, %v725_v12, 0.0  ;;  %5625 = vmatprep.subr.bf16.mxu0 %v6467_v1 }
 0x567   :  { %730 = vadd.xlane.f32.xlu1 %v729_v13 }
 0x569   :  { %5626 = vmatpush3.bf16.msra.mxu0 %v6152_v24  ;;  %v6157_v24 = vld [vmem:[%s7695_s5 + $0x18] sm:$0xff]   ;;  %s7727_s5 = smov 8  }
 0x56a   :  { %5643 = vmatprep.subr.bf16.mxu0 %v6467_v1 }
 0x5ec   :  { %v728_v14 = vpop.xlane.xlu0 %727 }
 0x5ed   :  { %v733_v15 = vmul.f32 0.03125, %v728_v14 }
 0x5ef   :  { %v735_v16 = vsub.f32 %v724_v2, %v733_v15 }
 0x5f0   :  { %v731_v18 = vpop.xlane.xlu1 %730 }
 0x5f1   :  { %v734_v19 = vmul.f32 0.03125, %v731_v18  ;;  %v737_v20 = vmul.f32 %v735_v16, %v735_v16 }
 0x5f3   :  { %v736_v21 = vsub.f32 %v725_v12, %v734_v19  ;;  %v739_v3 = vsel %vm89_vm1, %v737_v20, 0.0 }
 0x5f4   :  { %740 = vadd.xlane.f32.xlu0 %v739_v3 }
 0x5f5   :  { %v738_v22 = vmul.f32 %v736_v21, %v736_v21 }
 0x5f7   :  { %v742_v23 = vsel %vm89_vm1, %v738_v22, 0.0 }
 0x5f8   :  { %743 = vadd.xlane.f32.xlu0 %v742_v23 }
 0x67d   :  { %v741_v26 = vpop.xlane.xlu0 %740 }
 0x67e   :  { %v745_v27 = vmul.f32 0.03125, %v741_v26 }
 0x680   :  { %v747_v28 = vadd.f32 1e-05, %v745_v27 }
 0x681   :  { %v744_v30 = vpop.xlane.xlu0 %743 }
 0x682   :  { %6231 = vrsqrt.f32 %v747_v28  ;;  %v746_v31 = vmul.f32 0.03125, %v744_v30 }
 0x684   :  { %v748_v32 = vadd.f32 1e-05, %v746_v31 }
 0x686   :  { %6233 = vrsqrt.f32 %v748_v32 }
 0x68f   :  { %v6232_v35 = vpop.eup %6231 }
 0x690   :  { %v751_v36 = vmul.f32 %v6232_v35, %v735_v16  ;;  %v6805_v35 = vsub.s32 6, %v6604_v7 }
 0x692   :  { %v757_v41 = vmul.f32 %v756_v37, %v751_v36 }
 0x693   :  { %v6234_v39 = vpop.eup %6233 }
 0x694   :  { %v752_v40 = vmul.f32 %v6234_v39, %v736_v21  ;;  %v763_v44 = vadd.f32 %v762_v42, %v757_v41  ;;  %v945_v39 = vrot.slane %v6612_v9, %v6805_v35 }
 0x696   :  { %v758_v43 = vmul.f32 %v756_v37, %v752_v40  ;;  %v6810_v40 = vsub.s32 7, %v6604_v7  ;;  %v6826_v7 = vld [vmem:[%s7706_s16 + $0x8] sm:$0xff] }
 0x698   :  { %v764_v45 = vadd.f32 %v762_v42, %v758_v43 }
 0x69a   :  { %v769_v46 = vpack.c.bf16 %v764_v45, %v763_v44 }
 0x69c   :  { %5628 = vmatmul.mubr.msk.bf16.vlgmr.msra.gmra.mxu0 %vm89_vm1, %v769_v46 }
 0x69d   :  { %5647 = vmatprep.mubr.msk.bf16.mxu0 %vm6468_vm0, %v6467_v1  ;;  %5644 = vmatpush3.bf16.msra.mxu0 %v6157_v24 }
 0x69e   :  { %5645 = vmatprep.subr.bf16.mxu0 %v6467_v1 }
 0x6a1   :  { %5646 = vmatpush3.bf16.msra.mxu0 %v6158_v25 }
 0x6a2   :  { %5651 = vmatprep.subr.bf16.mxu0 %v6467_v1 }
 0x75c   :  { %v823_v52 = vpop.f32.mrf.mxu0 }
 0x75d   :  { %v824_v54 = vadd.f32 %v823_v52, %v773_v51 }
 0x75e   :  { %v5629_v53 = vpop.f32.mrf.mxu0 }
 0x75f   :  { %v830_v58 = vmax.f32 %v824_v54, 0.0 }
 0x760   :  { %v826_v55 = vpop.f32.mrf.mxu0 }
 0x761   :  { %v827_v56 = vadd.f32 %v826_v55, %v773_v51 }
 0x762   :  { %v5630_v57 = vpop.f32.mrf.mxu0 }
 0x763   :  { %v831_v59 = vmax.f32 %v827_v56, 0.0 }
 0x765   :  { %v840_v60 = vpack.c.bf16 %v831_v59, %v830_v58 }
 0x767   :  { %5640 = vmatmul.mubr.msk.bf16.vlgmr.msra.gmra.mxu1 %vm869_vm5, %v840_v60 }
 0x768   :  { %5659 = vmatprep.mubr.msk.bf16.mxu1 %vm6468_vm0, %v6467_v1 }
 0x827   :  { %v907_v63 = vpop.f32.mrf.mxu1 }
 0x828   :  { %v908_v0 = vadd.f32 %v907_v63, %v844_v62 }
 0x829   :  { %v5641_v2 = vpop.f32.mrf.mxu1 }
 0x82a   :  { %v914_v5 = vadd.f32 %v908_v0, %v763_v44  ;;  %v951_v44 = vrot.slane %v6612_v9, %v6810_v40  ;;  %v963_v9 = vrot.slane %v6826_v7, %v6607_v8 }
 0x82b   :  { %v910_v6 = vpop.f32.mrf.mxu1 }
 0x82c   :  { %v911_v10 = vadd.f32 %v910_v6, %v844_v62  ;;  %v916_v11 = vsel %vm89_vm1, %v914_v5, 0.0 }
 0x82d   :  { %917 = vadd.xlane.f32.xlu1 %v916_v11  ;;  %v5642_v12 = vpop.f32.mrf.mxu1 }
 0x82e   :  { %v915_v13 = vadd.f32 %v911_v10, %v764_v45 }
 0x830   :  { %v919_v14 = vsel %vm89_vm1, %v915_v13, 0.0 }
 0x831   :  { %920 = vadd.xlane.f32.xlu0 %v919_v14 }
 0x8b6   :  { %v918_v15 = vpop.xlane.xlu1 %917 }
 0x8b7   :  { %v922_v16 = vmul.f32 0.03125, %v918_v15 }
 0x8b9   :  { %v924_v18 = vsub.f32 %v914_v5, %v922_v16 }
 0x8ba   :  { %v921_v19 = vpop.xlane.xlu0 %920 }
 0x8bb   :  { %v923_v20 = vmul.f32 0.03125, %v921_v19  ;;  %v926_v21 = vmul.f32 %v924_v18, %v924_v18 }
 0x8bd   :  { %v925_v3 = vsub.f32 %v915_v13, %v923_v20  ;;  %v928_v22 = vsel %vm89_vm1, %v926_v21, 0.0 }
 0x8be   :  { %929 = vadd.xlane.f32.xlu1 %v928_v22 }
 0x8bf   :  { %v927_v23 = vmul.f32 %v925_v3, %v925_v3 }
 0x8c1   :  { %v931_v4 = vsel %vm89_vm1, %v927_v23, 0.0 }
 0x8c2   :  { %932 = vadd.xlane.f32.xlu0 %v931_v4 }
 0x947   :  { %v930_v26 = vpop.xlane.xlu1 %929 }
 0x948   :  { %v934_v27 = vmul.f32 0.03125, %v930_v26 }
 0x94a   :  { %v936_v28 = vadd.f32 1e-05, %v934_v27 }
 0x94b   :  { %v933_v30 = vpop.xlane.xlu0 %932 }
 0x94c   :  { %6235 = vrsqrt.f32 %v936_v28  ;;  %v935_v31 = vmul.f32 0.03125, %v933_v30 }
 0x94e   :  { %v937_v32 = vadd.f32 1e-05, %v935_v31 }
 0x950   :  { %6237 = vrsqrt.f32 %v937_v32 }
 0x959   :  { %v6236_v36 = vpop.eup %6235 }
 0x95a   :  { %v940_v37 = vmul.f32 %v6236_v36, %v924_v18 }
 0x95c   :  { %v946_v43 = vmul.f32 %v945_v39, %v940_v37 }
 0x95d   :  { %v6238_v41 = vpop.eup %6237 }
 0x95e   :  { %v941_v42 = vmul.f32 %v6238_v41, %v925_v3  ;;  %v6814_v46 = vadd.f32 %v951_v44, %v946_v43 }
 0x960   :  { %v947_v45 = vmul.f32 %v945_v39, %v941_v42 }
 0x962   :  { %v6816_v47 = vadd.f32 %v951_v44, %v947_v45 }
 0x964   :  { %v959_v48 = vpack.c.bf16 %v6816_v47, %v6814_v46 }
 0x966   :  { %5648 = vmatmul.mubr.msk.bf16.vlgmr.msra.gmra.mxu0 %vm89_vm1, %v959_v48 }
 0x967   :  { %5653 = vmatprep.mubr.msk.bf16.mxu0 %vm6468_vm0, %v6467_v1 }
 0xa26   :  { %v1013_v49 = vpop.f32.mrf.mxu0 }
 0xa27   :  { %v1014_v53 = vadd.f32 %v1013_v49, %v963_v9 }
 0xa28   :  { %v5649_v51 = vpop.f32.mrf.mxu0 }
 0xa2a   :  { %v1016_v52 = vpop.f32.mrf.mxu0 }
 0xa2b   :  { %v1017_v54 = vadd.f32 %v1016_v52, %v963_v9 }
 0xa2c   :  { %v5650_v55 = vpop.f32.mrf.mxu0 }
 0xa2d   :  { %v6830_v56 = vpack.c.bf16 %v1017_v54, %v1014_v53 }
 0xa2f   :  { %1078 = vrot.lane.b32.xlu0 %v6830_v56, %s6472_s23  ;;  %1027 = vrot.lane.b32.xlu1 %v6830_v56, %s6470_s21 }
 0xa33   :  { %1180 = vrot.lane.b32.xlu0 %v6830_v56, %s6474_s25  ;;  %1129 = vrot.lane.b32.xlu1 %v6830_v56, %s6469_s20 }
 0xa37   :  { %1178 = vrot.lane.b32.xlu0 %v6830_v56, %s6475_s26  ;;  %1076 = vrot.lane.b32.xlu1 %v6830_v56, %s6471_s22 }
 0xa3b   :  { %1127 = vrot.lane.b32.xlu1 %v6830_v56, %s6473_s24 }
 0xaa1   :  { %v1079_v57 = vpop.permute.xlu0 %1078  ;;  %v1028_v58 = vpop.permute.xlu1 %1027 }
 0xaa2   :  { %v1084_v59 = vsel %vm142_vm2, %v1079_v57, 0  ;;  %v1033_v60 = vsel %vm142_vm2, %v1028_v58, 0 }
 0xaa3   :  { %5652 = vmatpush3.bf16.xpose.msra.mxu0 %v1033_v60  ;;  %5658 = vmatpush3.bf16.xpose.msra.mxu1 %v1084_v59 }
 0xaa4   :  { %5663 = vmatprep.subr.bf16.mxu0 %v6467_v1  ;;  %5669 = vmatprep.subr.bf16.mxu1 %v6467_v1 }
 0xaa5   :  { %v1130_v62 = vpop.permute.xlu1 %1129  ;;  %v1181_v63 = vpop.permute.xlu0 %1180 }
 0xaa6   :  { %v1186_v2 = vsel %vm142_vm2, %v1181_v63, 0  ;;  %v1135_v5 = vsel %vm142_vm2, %v1130_v62, 0 }
 0xaa9   :  { %v1077_v0 = vpop.permute.xlu1 %1076  ;;  %v1179_v6 = vpop.permute.xlu0 %1178 }
 0xaaa   :  { %5654 = vmatmul.mubr.msk.bf16.vlgmr.msra.gmra.mxu0 %vm142_vm2, %v6830_v56  ;;  %5660 = vmatmul.mubr.msk.bf16.vlgmr.msra.gmra.mxu1 %vm142_vm2, %v1077_v0 }
 0xaab   :  { %5664 = vmatpush3.bf16.xpose.msra.mxu0 %v1135_v5  ;;  %5670 = vmatpush3.bf16.xpose.msra.mxu1 %v1186_v2 }
 0xaac   :  { %5665 = vmatprep.mubr.msk.bf16.mxu0 %vm6468_vm0, %v6467_v1  ;;  %5671 = vmatprep.mubr.msk.bf16.mxu1 %vm6468_vm0, %v6467_v1 }
 0xaad   :  { %5675 = vmatprep.subr.bf16.mxu0 %v6467_v1  ;;  %5681 = vmatprep.subr.bf16.mxu1 %v6467_v1  ;;  %v1128_v10 = vpop.permute.xlu1 %1127 }
 0xab2   :  { %5666 = vmatmul.mubr.msk.bf16.vlgmr.msra.gmra.mxu0 %vm142_vm2, %v1128_v10  ;;  %5672 = vmatmul.mubr.msk.bf16.vlgmr.msra.gmra.mxu1 %vm142_vm2, %v1179_v6 }
 0xab3   :  { %5677 = vmatprep.mubr.msk.bf16.mxu0 %vm6468_vm0, %v6467_v1  ;;  %5683 = vmatprep.mubr.msk.bf16.mxu1 %vm6468_vm0, %v6467_v1 }
 0xb6a   :  { %v1069_v11 = vpop.f32.mrf.mxu0  ;;  %v1120_v12 = vpop.f32.mrf.mxu1 }
 0xb6b   :  { %v1229_v13 = vadd.f32 %v1069_v11, %v6656_v29  ;;  %v1231_v23 = vadd.f32 %v1120_v12, %v6656_v29 }
 0xb6c   :  { %v5655_v14 = vpop.f32.mrf.mxu0  ;;  %v5661_v15 = vpop.f32.mrf.mxu1 }
 0xb6d   :  { %v1237_v16 = vsel %vm351_vm3, %v1229_v13, -inf  ;;  %v1243_v31 = vsel %vm351_vm3, %v1231_v23, -inf }
 0xb6e   :  { %1238 = vmax.xlane.f32.xlu1 %v1237_v16  ;;  %v1072_v18 = vpop.f32.mrf.mxu0  ;;  %v1123_v19 = vpop.f32.mrf.mxu1 }
 0xb6f   :  { %v1230_v20 = vadd.f32 %v1072_v18, %v6662_v33  ;;  %v1232_v21 = vadd.f32 %v1123_v19, %v6662_v33 }
 0xb70   :  { %v5656_v3 = vpop.f32.mrf.mxu0  ;;  %v5662_v22 = vpop.f32.mrf.mxu1 }
 0xb71   :  { %v1240_v4 = vsel %vm351_vm3, %v1230_v20, -inf  ;;  %v1246_v24 = vsel %vm351_vm3, %v1232_v21, -inf }
 0xb72   :  { %1241 = vmax.xlane.f32.xlu0 %v1240_v4  ;;  %v1171_v25 = vpop.f32.mrf.mxu0  ;;  %1247 = vmax.xlane.f32.xlu1 %v1246_v24  ;;  %v1222_v26 = vpop.f32.mrf.mxu1 }
 0xb73   :  { %v1233_v30 = vadd.f32 %v1171_v25, %v6656_v29  ;;  %v1235_v42 = vadd.f32 %v1222_v26, %v6656_v29 }
 0xb74   :  { %v5667_v27 = vpop.f32.mrf.mxu0  ;;  %v5673_v28 = vpop.f32.mrf.mxu1 }
 0xb75   :  { %v1249_v44 = vsel %vm351_vm3, %v1233_v30, -inf  ;;  %v1255_v48 = vsel %vm351_vm3, %v1235_v42, -inf }
 0xb76   :  { %v1174_v32 = vpop.f32.mrf.mxu0  ;;  %1244 = vmax.xlane.f32.xlu0 %v1243_v31  ;;  %v1225_v36 = vpop.f32.mrf.mxu1 }
 0xb77   :  { %v1234_v37 = vadd.f32 %v1174_v32, %v6662_v33  ;;  %v1236_v43 = vadd.f32 %v1225_v36, %v6662_v33 }
 0xb78   :  { %v5668_v39 = vpop.f32.mrf.mxu0  ;;  %v5674_v41 = vpop.f32.mrf.mxu1 }
 0xb79   :  { %v1252_v45 = vsel %vm351_vm3, %v1234_v37, -inf  ;;  %v1258_v49 = vsel %vm351_vm3, %v1236_v43, -inf }
 0xb7a   :  { %1250 = vmax.xlane.f32.xlu0 %v1249_v44  ;;  %1253 = vmax.xlane.f32.xlu1 %v1252_v45 }
 0xb7e   :  { %1256 = vmax.xlane.f32.xlu0 %v1255_v48  ;;  %1259 = vmax.xlane.f32.xlu1 %v1258_v49 }
 0xb8f   :  { %1376 = vrot.lane.b32.xlu1 %v6830_v56, %s7722_s2 }
 0xb94   :  { %1329 = vrot.lane.b32.xlu0 %v6830_v56, %s7720_s30 }
 0xbf7   :  { %v1239_v29 = vpop.xlane.xlu1 %1238 }
 0xbf8   :  { %v1261_v33 = vsub.f32 %v1229_v13, %v1239_v29 }
 0xbfa   :  { %v1269_v9 = vmul.f32 1.442695, %v1261_v33 }
 0xbfb   :  { %v1242_v51 = vpop.xlane.xlu0 %1241  ;;  %v1248_v52 = vpop.xlane.xlu1 %1247 }
 0xbfc   :  { %6239 = vpow2.f32 %v1269_v9  ;;  %v1262_v53 = vsub.f32 %v1230_v20, %v1242_v51  ;;  %v1264_v54 = vsub.f32 %v1232_v21, %v1248_v52 }
 0xbfe   :  { %v1271_v55 = vmul.f32 1.442695, %v1262_v53  ;;  %v1275_v57 = vmul.f32 1.442695, %v1264_v54 }
 0xbff   :  { %v1245_v58 = vpop.xlane.xlu0 %1244 }
 0xc00   :  { %6241 = vpow2.f32 %v1271_v55  ;;  %v1263_v59 = vsub.f32 %v1231_v23, %v1245_v58 }
 0xc01   :  { %6243 = vpow2.f32 %v1275_v57 }
 0xc02   :  { %v1273_v60 = vmul.f32 1.442695, %v1263_v59 }
 0xc03   :  { %v1251_v62 = vpop.xlane.xlu0 %1250  ;;  %v1254_v63 = vpop.xlane.xlu1 %1253 }
 0xc04   :  { %6245 = vpow2.f32 %v1273_v60  ;;  %v1265_v0 = vsub.f32 %v1233_v30, %v1251_v62  ;;  %v1266_v2 = vsub.f32 %v1234_v37, %v1254_v63 }
 0xc06   :  { %v1277_v5 = vmul.f32 1.442695, %v1265_v0  ;;  %v1279_v6 = vmul.f32 1.442695, %v1266_v2 }
 0xc07   :  { %v1257_v10 = vpop.xlane.xlu0 %1256  ;;  %v1260_v11 = vpop.xlane.xlu1 %1259 }
 0xc08   :  { %6247 = vpow2.f32 %v1277_v5  ;;  %v1267_v12 = vsub.f32 %v1235_v42, %v1257_v10  ;;  %v1268_v13 = vsub.f32 %v1236_v43, %v1260_v11 }
 0xc09   :  { %v6240_v14 = vpop.eup %6239  ;;  %6249 = vpow2.f32 %v1279_v6 }
 0xc0a   :  { %v1281_v15 = vmul.f32 1.442695, %v1267_v12  ;;  %v1283_v16 = vmul.f32 1.442695, %v1268_v13  ;;  %v1285_v18 = vsel %vm351_vm3, %v6240_v14, 0.0 }
 0xc0b   :  { %1286 = vadd.xlane.f32.xlu0 %v1285_v18  ;;  %v1330_v19 = vpop.permute.xlu0 %1329  ;;  %v1377_v20 = vpop.permute.xlu1 %1376 }
 0xc0c   :  { %6251 = vpow2.f32 %v1281_v15  ;;  %5676 = vmatpush3.bf16.msra.mxu0 %v1330_v19  ;;  %5682 = vmatpush3.bf16.msra.mxu1 %v1377_v20  ;;  %v6159_v15 = vld [vmem:[%s7696_s6 + $0x18] sm:$0xff]   ;;  %v6160_v20 = vld [vmem:[%s7696_s6 + $0x10] sm:$0xff]   ;;  %s7729_s6 = smov 24  }
 0xc0d   :  { %v6242_v21 = vpop.eup %6241  ;;  %6253 = vpow2.f32 %v1283_v16  ;;  %5687 = vmatprep.subr.bf16.mxu0 %v6467_v1  ;;  %5693 = vmatprep.subr.bf16.mxu1 %v6467_v1 }
 0xc0e   :  { %v1288_v3 = vsel %vm351_vm3, %v6242_v21, 0.0  ;;  %v6244_v22 = vpop.eup %6243 }
 0xc0f   :  { %1289 = vadd.xlane.f32.xlu1 %v1288_v3  ;;  %v1294_v24 = vsel %vm351_vm3, %v6244_v22, 0.0 }
 0xc11   :  { %v6246_v23 = vpop.eup %6245 }
 0xc12   :  { %v1291_v4 = vsel %vm351_vm3, %v6246_v23, 0.0 }
 0xc13   :  { %1292 = vadd.xlane.f32.xlu0 %v1291_v4  ;;  %1295 = vadd.xlane.f32.xlu1 %v1294_v24 }
 0xc15   :  { %v6248_v25 = vpop.eup %6247 }
 0xc16   :  { %v6250_v26 = vpop.eup %6249  ;;  %v1297_v27 = vsel %vm351_vm3, %v6248_v25, 0.0 }
 0xc17   :  { %1298 = vadd.xlane.f32.xlu0 %v1297_v27  ;;  %v1300_v28 = vsel %vm351_vm3, %v6250_v26, 0.0 }
 0xc18   :  { %1301 = vadd.xlane.f32.xlu1 %v1300_v28 }
 0xc19   :  { %v6252_v30 = vpop.eup %6251 }
 0xc1a   :  { %v6254_v31 = vpop.eup %6253  ;;  %v1303_v32 = vsel %vm351_vm3, %v6252_v30, 0.0 }
 0xc1b   :  { %1304 = vadd.xlane.f32.xlu0 %v1303_v32  ;;  %v1306_v36 = vsel %vm351_vm3, %v6254_v31, 0.0 }
 0xc1c   :  { %1307 = vadd.xlane.f32.xlu1 %v1306_v36 }
 0xc2d   :  { %1423 = vrot.lane.b32.xlu1 %v6830_v56, %s7718_s18 }
 0xc31   :  { %1470 = vrot.lane.b32.xlu0 %v6830_v56, %s7726_s29 }
 0xc94   :  { %v1287_v37 = vpop.xlane.xlu0 %1286 }
 0xc95   :  { %6255 = vrcp.f32 %v1287_v37 }
 0xc98   :  { %v1290_v39 = vpop.xlane.xlu1 %1289 }
 0xc99   :  { %6257 = vrcp.f32 %v1290_v39 }
 0xc9c   :  { %v1293_v41 = vpop.xlane.xlu0 %1292  ;;  %v1296_v42 = vpop.xlane.xlu1 %1295 }
 0xc9d   :  { %6259 = vrcp.f32 %v1293_v41 }
 0xc9e   :  { %6261 = vrcp.f32 %v1296_v42 }
 0xca0   :  { %v1299_v43 = vpop.xlane.xlu0 %1298 }
 0xca1   :  { %6263 = vrcp.f32 %v1299_v43  ;;  %v1302_v44 = vpop.xlane.xlu1 %1301 }
 0xca2   :  { %6265 = vrcp.f32 %v1302_v44  ;;  %v6256_v45 = vpop.eup %6255 }
 0xca3   :  { %v1317_v33 = vmul.f32 %v6256_v45, %v6240_v14 }
 0xca4   :  { %v1305_v48 = vpop.xlane.xlu0 %1304 }
 0xca5   :  { %6267 = vrcp.f32 %v1305_v48  ;;  %v1308_v49 = vpop.xlane.xlu1 %1307 }
 0xca6   :  { %v6258_v29 = vpop.eup %6257  ;;  %6269 = vrcp.f32 %v1308_v49 }
 0xca7   :  { %v1318_v56 = vmul.f32 %v6258_v29, %v6242_v21 }
 0xca8   :  { %v1471_v62 = vpop.permute.xlu0 %1470 }
 0xca9   :  { %v1325_v9 = vpack.c.bf16 %v1318_v56, %v1317_v33  ;;  %v1424_v53 = vpop.permute.xlu1 %1423 }
 0xcaa   :  { %v6260_v51 = vpop.eup %6259 }
 0xcab   :  { %v6262_v52 = vpop.eup %6261  ;;  %5678 = vmatmul.mubr.msk.bf16.vlgmr.msra.gmra.mxu0 %vm351_vm3, %v1325_v9  ;;  %v1319_v54 = vmul.f32 %v6260_v51, %v6246_v23 }
 0xcac   :  { %5688 = vmatpush3.bf16.msra.mxu0 %v1424_v53  ;;  %v1320_v55 = vmul.f32 %v6262_v52, %v6244_v22  ;;  %5689 = vmatprep.mubr.msk.bf16.mxu0 %vm6468_vm0, %v6467_v1  ;;  %v1551_v53 = vrot.slane %v6826_v7, %v6732_v17 }
 0xcad   :  { %5699 = vmatprep.subr.bf16.mxu0 %v6467_v1 }
 0xcae   :  { %v6264_v57 = vpop.eup %6263  ;;  %v1326_v58 = vpack.c.bf16 %v1320_v55, %v1319_v54 }
 0xcaf   :  { %v6266_v59 = vpop.eup %6265  ;;  %v1321_v60 = vmul.f32 %v6264_v57, %v6248_v25 }
 0xcb0   :  { %5684 = vmatmul.mubr.msk.bf16.vlgmr.msra.gmra.mxu1 %vm351_vm3, %v1326_v58  ;;  %v1322_v63 = vmul.f32 %v6266_v59, %v6250_v26 }
 0xcb1   :  { %5694 = vmatpush3.bf16.msra.mxu1 %v1471_v62  ;;  %5695 = vmatprep.mubr.msk.bf16.mxu1 %vm6468_vm0, %v6467_v1 }
 0xcb2   :  { %v6268_v0 = vpop.eup %6267  ;;  %v1327_v2 = vpack.c.bf16 %v1322_v63, %v1321_v60  ;;  %5707 = vmatprep.subr.bf16.mxu1 %v6467_v1 }
 0xcb3   :  { %v6270_v5 = vpop.eup %6269  ;;  %v1323_v6 = vmul.f32 %v6268_v0, %v6252_v30 }
 0xcb4   :  { %5690 = vmatmul.mubr.msk.bf16.vlgmr.msra.gmra.mxu0 %vm351_vm3, %v1327_v2  ;;  %v1324_v10 = vmul.f32 %v6270_v5, %v6254_v31 }
 0xcb5   :  { %5703 = vmatprep.mubr.msk.bf16.mxu0 %vm6468_vm0, %v6467_v1  ;;  %5700 = vmatpush3.bf16.msra.mxu0 %v6159_v15 }
 0xcb6   :  { %v1328_v11 = vpack.c.bf16 %v1324_v10, %v1323_v6  ;;  %5701 = vmatprep.subr.bf16.mxu0 %v6467_v1 }
 0xcb8   :  { %5696 = vmatmul.mubr.msk.bf16.vlgmr.msra.gmra.mxu1 %vm351_vm3, %v1328_v11 }
 0xcb9   :  { %5711 = vmatprep.mubr.msk.bf16.mxu1 %vm6468_vm0, %v6467_v1  ;;  %5702 = vmatpush3.bf16.msra.mxu0 %v6160_v20 }
 0xcba   :  { %5715 = vmatprep.subr.bf16.mxu0 %v6467_v1 }
 0xd6b   :  { %v1369_v12 = vpop.f32.mrf.mxu0 }
 0xd6d   :  { %v5679_v13 = vpop.f32.mrf.mxu0 }
 0xd6f   :  { %v1372_v14 = vpop.f32.mrf.mxu0 }
 0xd70   :  { %v1416_v16 = vpop.f32.mrf.mxu1 }
 0xd71   :  { %v5680_v18 = vpop.f32.mrf.mxu0 }
 0xd72   :  { %v5685_v19 = vpop.f32.mrf.mxu1  ;;  %v6162_v18 = vld [vmem:[%s7697_s7 + $0x10] sm:$0xff]  }
 0xd73   :  { %v6165_v19 = vld [vmem:[%s7698_s8 + $0x38] sm:$0xff]  }
 0xd74   :  { %v1419_v21 = vpop.f32.mrf.mxu1  ;;  %v1463_v3 = vpop.f32.mrf.mxu0 }
 0xd75   :  { %v6072_v22 = vpack.i.bf16 %v1419_v21, %v1416_v16 }
 0xd76   :  { %v5686_v23 = vpop.f32.mrf.mxu1  ;;  %v5691_v4 = vpop.f32.mrf.mxu0 }
 0xd77   :  { %6073 = vrot.lane.b32.xlu1 %v6072_v22, %s7727_s5 }
 0xd78   :  { %v1466_v24 = vpop.f32.mrf.mxu0  ;;  %v1510_v25 = vpop.f32.mrf.mxu1 }
 0xd79   :  { %v6077_v26 = vpack.i.bf16 %v1466_v24, %v1463_v3 }
 0xd7a   :  { %v5692_v27 = vpop.f32.mrf.mxu0  ;;  %v5697_v28 = vpop.f32.mrf.mxu1 }
 0xd7b   :  { %6078 = vrot.lane.b32.xlu0 %v6077_v26, %s7728_s28  ;;  %v1639_v26 = vrot.slane %v6826_v7, %v6755_v34 }
 0xd7c   :  { %v1513_v30 = vpop.f32.mrf.mxu1 }
 0xd7d   :  { %v6082_v31 = vpack.i.bf16 %v1513_v30, %v1510_v25 }
 0xd7e   :  { %v5698_v32 = vpop.f32.mrf.mxu1 }
 0xd7f   :  { %6083 = vrot.lane.b32.xlu1 %v6082_v31, %s7729_s6  ;;  %v1645_v31 = vrot.slane %v6826_v7, %v6760_v38 }
 0xde9   :  { %v6074_v36 = vpop.permute.xlu1 %6073 }
 0xdea   :  { %v6076_v39 = vunpack.i.h.bf16 %v6074_v36  ;;  %v6075_v41 = vunpack.i.l.bf16 %v6074_v36 }
 0xdec   :  { %v1542_v45 = vsel %vm142_vm2, %v1372_v14, %v6076_v39  ;;  %v1541_v48 = vsel %vm142_vm2, %v1369_v12, %v6075_v41  ;;  %v6163_v39 = vld [vmem:[%s7699_s9 + $0x8] sm:$0xff]  }
 0xded   :  { %v6079_v37 = vpop.permute.xlu0 %6078 }
 0xdee   :  { %v6081_v42 = vunpack.i.h.bf16 %v6079_v37  ;;  %v6080_v43 = vunpack.i.l.bf16 %v6079_v37 }
 0xdf0   :  { %v1543_v33 = vsel %vm351_vm3, %v1541_v48, %v6080_v43  ;;  %v1544_v56 = vsel %vm351_vm3, %v1542_v45, %v6081_v42  ;;  %v6164_v42 = vld [vmem:[%s7699_s9] sm:$0xff]   ;;  %v6166_v48 = vld [vmem:[%s7698_s8 + $0x30] sm:$0xff]  }
 0xdf1   :  { %v6084_v44 = vpop.permute.xlu1 %6083  ;;  %v6977_v43 = vld [vmem:[%s7730_s27] sm:$0xff] }
 0xdf2   :  { %v6086_v49 = vunpack.i.h.bf16 %v6084_v44  ;;  %v6085_v29 = vunpack.i.l.bf16 %v6084_v44  ;;  %v6982_v44 = vld [vmem:[%s7730_s27 + $0x8] sm:$0xff]  ;;  %s7731_s27 = smov 64  }
 0xdf3   :  { %v1887_v45 = vpack.c.bf16 %v6982_v44, %v6977_v43 }
 0xdf4   :  { %v1546_v9 = vsel %vm660_vm4, %v1544_v56, %v6086_v49  ;;  %v1545_v51 = vsel %vm660_vm4, %v1543_v33, %v6085_v29  ;;  %v6167_v49 = vld [vmem:[%s7698_s8 + $0x28] sm:$0xff]   ;;  %v6168_v29 = vld [vmem:[%s7698_s8 + $0x20] sm:$0xff]   ;;  %v1657_v33 = vrot.slane %v6826_v7, %v6780_v50 }
 0xdf5   :  { %v1547_v52 = vpack.c.bf16 %v1546_v9, %v1545_v51 }
 0xdf7   :  { %5704 = vmatmul.mubr.msk.bf16.vlgmr.msra.gmra.mxu0 %vm89_vm1, %v1547_v52 }
 0xdf8   :  { %5723 = vmatprep.mubr.msk.bf16.mxu0 %vm6468_vm0, %v6467_v1  ;;  %5716 = vmatpush3.bf16.msra.mxu0 %v6165_v19 }
 0xdf9   :  { %5717 = vmatprep.subr.bf16.mxu0 %v6467_v1 }
 0xdfc   :  { %5718 = vmatpush3.bf16.msra.mxu0 %v6166_v48 }
 0xdfd   :  { %5719 = vmatprep.subr.bf16.mxu0 %v6467_v1 }
 0xe00   :  { %5720 = vmatpush3.bf16.msra.mxu0 %v6167_v49 }
 0xe01   :  { %5721 = vmatprep.subr.bf16.mxu0 %v6467_v1 }
 0xe04   :  { %5722 = vmatpush3.bf16.msra.mxu0 %v6168_v29 }
 0xe05   :  { %5741 = vmatprep.subr.bf16.mxu0 %v6467_v1 }
 0xeb7   :  { %v1601_v54 = vpop.f32.mrf.mxu0 }
 0xeb8   :  { %v1602_v55 = vadd.f32 %v1601_v54, %v1551_v53 }
 0xeb9   :  { %v5705_v57 = vpop.f32.mrf.mxu0 }
 0xeba   :  { %v1608_v58 = vadd.f32 %v1602_v55, %v6814_v46  ;;  %v7008_v55 = vld [vmem:[%s7706_s16 + $0x10] sm:$0xff] }
 0xebb   :  { %v1604_v59 = vpop.f32.mrf.mxu0 }
 0xebc   :  { %v1605_v60 = vadd.f32 %v1604_v59, %v1551_v53  ;;  %v1610_v62 = vsel %vm89_vm1, %v1608_v58, 0.0 }
 0xebd   :  { %1611 = vadd.xlane.f32.xlu0 %v1610_v62  ;;  %v5706_v63 = vpop.f32.mrf.mxu0  ;;  %v1891_v62 = vrot.slane %v7008_v55, %v6780_v50 }
 0xebe   :  { %v1609_v0 = vadd.f32 %v1605_v60, %v6816_v47  ;;  %v6161_v47 = vld [vmem:[%s7697_s7 + $0x18] sm:$0xff]   ;;  %s7732_s7 = smov 48  }
 0xebf   :  { %5708 = vmatpush3.bf16.msra.mxu1 %v6161_v47 }
 0xec0   :  { %v1613_v2 = vsel %vm89_vm1, %v1609_v0, 0.0  ;;  %5709 = vmatprep.subr.bf16.mxu1 %v6467_v1 }
 0xec1   :  { %1614 = vadd.xlane.f32.xlu1 %v1613_v2 }
 0xec3   :  { %5710 = vmatpush3.bf16.msra.mxu1 %v6162_v18 }
 0xec4   :  { %5727 = vmatprep.subr.bf16.mxu1 %v6467_v1 }
 0xf46   :  { %v1612_v5 = vpop.xlane.xlu0 %1611 }
 0xf47   :  { %v1616_v6 = vmul.f32 0.03125, %v1612_v5 }
 0xf49   :  { %v1618_v10 = vsub.f32 %v1608_v58, %v1616_v6 }
 0xf4a   :  { %v1615_v11 = vpop.xlane.xlu1 %1614 }
 0xf4b   :  { %v1617_v12 = vmul.f32 0.03125, %v1615_v11  ;;  %v1620_v13 = vmul.f32 %v1618_v10, %v1618_v10 }
 0xf4d   :  { %v1619_v14 = vsub.f32 %v1609_v0, %v1617_v12  ;;  %v1622_v46 = vsel %vm89_vm1, %v1620_v13, 0.0 }
 0xf4e   :  { %1623 = vadd.xlane.f32.xlu0 %v1622_v46 }
 0xf4f   :  { %v1621_v15 = vmul.f32 %v1619_v14, %v1619_v14 }
 0xf51   :  { %v1625_v16 = vsel %vm89_vm1, %v1621_v15, 0.0 }
 0xf52   :  { %1626 = vadd.xlane.f32.xlu0 %v1625_v16 }
 0xfd7   :  { %v1624_v20 = vpop.xlane.xlu0 %1623 }
 0xfd8   :  { %v1628_v21 = vmul.f32 0.03125, %v1624_v20 }
 0xfda   :  { %v1630_v3 = vadd.f32 1e-05, %v1628_v21 }
 0xfdb   :  { %v1627_v22 = vpop.xlane.xlu0 %1626 }
 0xfdc   :  { %6271 = vrsqrt.f32 %v1630_v3  ;;  %v1629_v23 = vmul.f32 0.03125, %v1627_v22 }
 0xfde   :  { %v1631_v4 = vadd.f32 1e-05, %v1629_v23  ;;  %v1879_v23 = vld [vmem:[%s7693_s3] sm:$0xff] }
 0xfe0   :  { %6273 = vrsqrt.f32 %v1631_v4 }
 0xfe9   :  { %v6272_v24 = vpop.eup %6271 }
 0xfea   :  { %v1634_v25 = vmul.f32 %v6272_v24, %v1618_v10 }
 0xfec   :  { %v1640_v30 = vmul.f32 %v1639_v26, %v1634_v25 }
 0xfed   :  { %v6274_v27 = vpop.eup %6273 }
 0xfee   :  { %v1635_v28 = vmul.f32 %v6274_v27, %v1619_v14  ;;  %v6959_v36 = vadd.f32 %v1645_v31, %v1640_v30 }
 0xff0   :  { %v1641_v32 = vmul.f32 %v1639_v26, %v1635_v28  ;;  %v1880_v28 = vld [vmem:[%s7693_s3 + $0x8] sm:$0xff] }
 0xff2   :  { %v6961_v37 = vadd.f32 %v1645_v31, %v1641_v32 }
 0xff4   :  { %v1653_v41 = vpack.c.bf16 %v6961_v37, %v6959_v36 }
 0xff6   :  { %5712 = vmatmul.mubr.msk.bf16.vlgmr.msra.gmra.mxu1 %vm89_vm1, %v1653_v41 }
 0xff7   :  { %5728 = vmatpush3.bf16.msra.mxu1 %v6163_v39  ;;  %5731 = vmatprep.mubr.msk.bf16.mxu1 %vm6468_vm0, %v6467_v1 }
 0xff8   :  { %5729 = vmatprep.subr.bf16.mxu1 %v6467_v1 }
 0xffb   :  { %5730 = vmatpush3.bf16.msra.mxu1 %v6164_v42 }
 0xffc   :  { %5735 = vmatprep.subr.bf16.mxu1 %v6467_v1 }
 0xffe   :  { %5732 = vmatmul.mubr.msk.bf16.vlgmr.msra.gmra.mxu1 %vm89_vm1, %v1887_v45 }
 0xfff   :  { %5737 = vmatprep.mubr.msk.bf16.mxu1 %vm6468_vm0, %v6467_v1 }
0x10b6   :  { %v1707_v56 = vpop.f32.mrf.mxu1 }
0x10b7   :  { %v1708_v51 = vadd.f32 %v1707_v56, %v1657_v33 }
0x10b8   :  { %v5713_v9 = vpop.f32.mrf.mxu1 }
0x10b9   :  { %v1714_v57 = vmax.f32 %v1708_v51, 0.0 }
0x10ba   :  { %v1710_v52 = vpop.f32.mrf.mxu1 }
0x10bb   :  { %v1711_v53 = vadd.f32 %v1710_v52, %v1657_v33 }
0x10bc   :  { %v5714_v54 = vpop.f32.mrf.mxu1 }
0x10bd   :  { %v1715_v58 = vmax.f32 %v1711_v53, 0.0 }
0x10be   :  { %v1941_v59 = vpop.f32.mrf.mxu1 }
0x10bf   :  { %v1725_v60 = vpack.c.bf16 %v1715_v58, %v1714_v57  ;;  %v1942_v0 = vadd.f32 %v1941_v59, %v1891_v62 }
0x10c0   :  { %v5733_v63 = vpop.f32.mrf.mxu1 }
0x10c1   :  { %5724 = vmatmul.mubr.msk.bf16.vlgmr.msra.gmra.mxu0 %vm869_vm5, %v1725_v60 }
0x10c2   :  { %v1944_v7 = vpop.f32.mrf.mxu1  ;;  %5743 = vmatprep.mubr.msk.bf16.mxu0 %vm6468_vm0, %v6467_v1 }
0x10c3   :  { %v1945_v2 = vadd.f32 %v1944_v7, %v1891_v62 }
0x10c4   :  { %v5734_v5 = vpop.f32.mrf.mxu1 }
0x10c5   :  { %v7015_v6 = vpack.c.bf16 %v1945_v2, %v1942_v0 }
0x10c7   :  { %2005 = vrot.lane.b32.xlu0 %v7015_v6, %s6472_s23  ;;  %1954 = vrot.lane.b32.xlu1 %v7015_v6, %s6470_s21 }
0x10cb   :  { %2107 = vrot.lane.b32.xlu0 %v7015_v6, %s6474_s25  ;;  %2056 = vrot.lane.b32.xlu1 %v7015_v6, %s6469_s20 }
0x10cf   :  { %2105 = vrot.lane.b32.xlu0 %v7015_v6, %s6475_s26  ;;  %2003 = vrot.lane.b32.xlu1 %v7015_v6, %s6471_s22 }
0x10d3   :  { %2054 = vrot.lane.b32.xlu1 %v7015_v6, %s6473_s24 }
0x1139   :  { %v2006_v10 = vpop.permute.xlu0 %2005  ;;  %v1955_v11 = vpop.permute.xlu1 %1954 }
0x113a   :  { %v2011_v12 = vsel %vm142_vm2, %v2006_v10, 0  ;;  %v1960_v13 = vsel %vm142_vm2, %v1955_v11, 0 }
0x113b   :  { %5736 = vmatpush3.bf16.xpose.msra.mxu1 %v1960_v13  ;;  %5742 = vmatpush3.bf16.xpose.msra.mxu0 %v2011_v12 }
0x113c   :  { %5747 = vmatprep.subr.bf16.mxu1 %v6467_v1  ;;  %5753 = vmatprep.subr.bf16.mxu0 %v6467_v1 }
0x113d   :  { %v2057_v14 = vpop.permute.xlu1 %2056  ;;  %v2108_v46 = vpop.permute.xlu0 %2107 }
0x113e   :  { %v2113_v16 = vsel %vm142_vm2, %v2108_v46, 0  ;;  %v2062_v47 = vsel %vm142_vm2, %v2057_v14, 0 }
0x1141   :  { %v2004_v15 = vpop.permute.xlu1 %2003  ;;  %v2106_v18 = vpop.permute.xlu0 %2105 }
0x1142   :  { %5738 = vmatmul.mubr.msk.bf16.vlgmr.msra.gmra.mxu1 %vm142_vm2, %v7015_v6  ;;  %5744 = vmatmul.mubr.msk.bf16.vlgmr.msra.gmra.mxu0 %vm142_vm2, %v2004_v15 }
0x1143   :  { %5748 = vmatpush3.bf16.xpose.msra.mxu1 %v2062_v47  ;;  %5754 = vmatpush3.bf16.xpose.msra.mxu0 %v2113_v16 }
0x1144   :  { %5749 = vmatprep.mubr.msk.bf16.mxu1 %vm6468_vm0, %v6467_v1  ;;  %5755 = vmatprep.mubr.msk.bf16.mxu0 %vm6468_vm0, %v6467_v1 }
0x1145   :  { %5759 = vmatprep.subr.bf16.mxu1 %v6467_v1  ;;  %5765 = vmatprep.subr.bf16.mxu0 %v6467_v1  ;;  %v2055_v19 = vpop.permute.xlu1 %2054 }
0x114a   :  { %5750 = vmatmul.mubr.msk.bf16.vlgmr.msra.gmra.mxu1 %vm142_vm2, %v2055_v19  ;;  %5756 = vmatmul.mubr.msk.bf16.vlgmr.msra.gmra.mxu0 %vm142_vm2, %v2106_v18 }
0x114b   :  { %5761 = vmatprep.mubr.msk.bf16.mxu1 %vm6468_vm0, %v6467_v1  ;;  %5767 = vmatprep.mubr.msk.bf16.mxu0 %vm6468_vm0, %v6467_v1 }
0x1181   :  { %v7052_v20 = vpop.f32.mrf.mxu0 }
0x1183   :  { %v5725_v21 = vpop.f32.mrf.mxu0 }
0x1185   :  { %v7054_v3 = vpop.f32.mrf.mxu0 }
0x1187   :  { %v5726_v22 = vpop.f32.mrf.mxu0 }
0x1202   :  { %v1996_v4 = vpop.f32.mrf.mxu1  ;;  %v2047_v24 = vpop.f32.mrf.mxu0 }
0x1203   :  { %v2156_v25 = vadd.f32 %v1996_v4, %v1879_v23  ;;  %v2158_v48 = vadd.f32 %v2047_v24, %v1879_v23 }
0x1204   :  { %v5739_v26 = vpop.f32.mrf.mxu1  ;;  %v5745_v27 = vpop.f32.mrf.mxu0 }
0x1205   :  { %v2164_v30 = vsel %vm351_vm3, %v2156_v25, -inf  ;;  %v2170_v53 = vsel %vm351_vm3, %v2158_v48, -inf }
0x1206   :  { %v2050_v31 = vpop.f32.mrf.mxu0  ;;  %2165 = vmax.xlane.f32.xlu1 %v2164_v30  ;;  %v1999_v32 = vpop.f32.mrf.mxu1 }
0x1207   :  { %v2159_v39 = vadd.f32 %v2050_v31, %v1880_v28  ;;  %v2157_v41 = vadd.f32 %v1999_v32, %v1880_v28 }
0x1208   :  { %v5740_v42 = vpop.f32.mrf.mxu1  ;;  %v5746_v45 = vpop.f32.mrf.mxu0 }
0x1209   :  { %v2173_v49 = vsel %vm351_vm3, %v2159_v39, -inf  ;;  %v2167_v29 = vsel %vm351_vm3, %v2157_v41, -inf }
0x120a   :  { %v2149_v33 = vpop.f32.mrf.mxu0  ;;  %2174 = vmax.xlane.f32.xlu1 %v2173_v49  ;;  %2168 = vmax.xlane.f32.xlu0 %v2167_v29  ;;  %v2098_v56 = vpop.f32.mrf.mxu1 }
0x120b   :  { %v2160_v52 = vadd.f32 %v2098_v56, %v1879_v23  ;;  %v2162_v62 = vadd.f32 %v2149_v33, %v1879_v23 }
0x120c   :  { %v5751_v9 = vpop.f32.mrf.mxu1  ;;  %v5757_v51 = vpop.f32.mrf.mxu0 }
0x120d   :  { %v2176_v7 = vsel %vm351_vm3, %v2160_v52, -inf  ;;  %v2182_v2 = vsel %vm351_vm3, %v2162_v62, -inf }
0x120e   :  { %v2152_v54 = vpop.f32.mrf.mxu0  ;;  %2171 = vmax.xlane.f32.xlu0 %v2170_v53  ;;  %v2101_v57 = vpop.f32.mrf.mxu1 }
0x120f   :  { %v2161_v58 = vadd.f32 %v2101_v57, %v1880_v28  ;;  %v2163_v63 = vadd.f32 %v2152_v54, %v1880_v28 }
0x1210   :  { %v5752_v59 = vpop.f32.mrf.mxu1  ;;  %v5758_v60 = vpop.f32.mrf.mxu0 }
0x1211   :  { %v2179_v0 = vsel %vm351_vm3, %v2161_v58, -inf  ;;  %v2185_v5 = vsel %vm351_vm3, %v2163_v63, -inf }
0x1212   :  { %2177 = vmax.xlane.f32.xlu0 %v2176_v7  ;;  %2180 = vmax.xlane.f32.xlu1 %v2179_v0 }
0x1216   :  { %2183 = vmax.xlane.f32.xlu0 %v2182_v2  ;;  %2186 = vmax.xlane.f32.xlu1 %v2185_v5 }
0x1227   :  { %2303 = vrot.lane.b32.xlu1 %v7015_v6, %s7722_s2 }
0x122c   :  { %2256 = vrot.lane.b32.xlu0 %v7015_v6, %s7731_s27 }
0x128f   :  { %v2166_v10 = vpop.xlane.xlu1 %2165 }
0x1290   :  { %v2188_v11 = vsub.f32 %v2156_v25, %v2166_v10 }
0x1292   :  { %v2196_v12 = vmul.f32 1.442695, %v2188_v11 }
0x1293   :  { %v2175_v13 = vpop.xlane.xlu1 %2174  ;;  %v2169_v14 = vpop.xlane.xlu0 %2168 }
0x1294   :  { %6275 = vpow2.f32 %v2196_v12  ;;  %v2191_v46 = vsub.f32 %v2159_v39, %v2175_v13  ;;  %v2189_v15 = vsub.f32 %v2157_v41, %v2169_v14 }
0x1296   :  { %v2198_v16 = vmul.f32 1.442695, %v2189_v15  ;;  %v2202_v47 = vmul.f32 1.442695, %v2191_v46 }
0x1297   :  { %v2172_v18 = vpop.xlane.xlu0 %2171 }
0x1298   :  { %v2190_v19 = vsub.f32 %v2158_v48, %v2172_v18  ;;  %6277 = vpow2.f32 %v2198_v16 }
0x1299   :  { %6279 = vpow2.f32 %v2202_v47 }
0x129a   :  { %v2200_v21 = vmul.f32 1.442695, %v2190_v19 }
0x129b   :  { %v2178_v22 = vpop.xlane.xlu0 %2177  ;;  %v2181_v23 = vpop.xlane.xlu1 %2180 }
0x129c   :  { %6281 = vpow2.f32 %v2200_v21  ;;  %v2192_v4 = vsub.f32 %v2160_v52, %v2178_v22  ;;  %v2193_v24 = vsub.f32 %v2161_v58, %v2181_v23 }
0x129e   :  { %v2204_v26 = vmul.f32 1.442695, %v2192_v4  ;;  %v2206_v25 = vmul.f32 1.442695, %v2193_v24 }
0x129f   :  { %v2184_v27 = vpop.xlane.xlu0 %2183  ;;  %v2187_v28 = vpop.xlane.xlu1 %2186 }
0x12a0   :  { %6283 = vpow2.f32 %v2204_v26  ;;  %v2194_v30 = vsub.f32 %v2162_v62, %v2184_v27  ;;  %v2195_v31 = vsub.f32 %v2163_v63, %v2187_v28 }
0x12a1   :  { %v6276_v32 = vpop.eup %6275  ;;  %6285 = vpow2.f32 %v2206_v25 }
0x12a2   :  { %v2208_v39 = vmul.f32 1.442695, %v2194_v30  ;;  %v2210_v41 = vmul.f32 1.442695, %v2195_v31  ;;  %v2212_v42 = vsel %vm351_vm3, %v6276_v32, 0.0 }
0x12a3   :  { %2213 = vadd.xlane.f32.xlu0 %v2212_v42  ;;  %v2257_v45 = vpop.permute.xlu0 %2256  ;;  %v2304_v48 = vpop.permute.xlu1 %2303 }
0x12a4   :  { %6287 = vpow2.f32 %v2208_v39  ;;  %5760 = vmatpush3.bf16.msra.mxu1 %v2257_v45  ;;  %5766 = vmatpush3.bf16.msra.mxu0 %v2304_v48  ;;  %v6169_v45 = vld [vmem:[%s7700_s10 + $0x8] sm:$0xff]  }
0x12a5   :  { %6289 = vpow2.f32 %v2210_v41  ;;  %5771 = vmatprep.subr.bf16.mxu1 %v6467_v1  ;;  %5777 = vmatprep.subr.bf16.mxu0 %v6467_v1  ;;  %v6278_v49 = vpop.eup %6277 }
0x12a6   :  { %v2215_v29 = vsel %vm351_vm3, %v6278_v49, 0.0  ;;  %v6280_v33 = vpop.eup %6279 }
0x12a7   :  { %2216 = vadd.xlane.f32.xlu1 %v2215_v29  ;;  %v2221_v51 = vsel %vm351_vm3, %v6280_v33, 0.0 }
0x12a9   :  { %v6282_v56 = vpop.eup %6281 }
0x12aa   :  { %v2218_v9 = vsel %vm351_vm3, %v6282_v56, 0.0 }
0x12ab   :  { %2219 = vadd.xlane.f32.xlu0 %v2218_v9  ;;  %2222 = vadd.xlane.f32.xlu1 %v2221_v51 }
0x12ad   :  { %v6284_v52 = vpop.eup %6283 }
0x12ae   :  { %v6286_v53 = vpop.eup %6285  ;;  %v2224_v54 = vsel %vm351_vm3, %v6284_v52, 0.0 }
0x12af   :  { %2225 = vadd.xlane.f32.xlu0 %v2224_v54  ;;  %v2227_v57 = vsel %vm351_vm3, %v6286_v53, 0.0 }
0x12b0   :  { %2228 = vadd.xlane.f32.xlu1 %v2227_v57 }
0x12b1   :  { %v6288_v58 = vpop.eup %6287 }
0x12b2   :  { %v6290_v59 = vpop.eup %6289  ;;  %v2230_v60 = vsel %vm351_vm3, %v6288_v58, 0.0 }
0x12b3   :  { %2231 = vadd.xlane.f32.xlu0 %v2230_v60  ;;  %v2233_v62 = vsel %vm351_vm3, %v6290_v59, 0.0 }
0x12b4   :  { %2234 = vadd.xlane.f32.xlu1 %v2233_v62 }
0x12c5   :  { %2350 = vrot.lane.b32.xlu1 %v7015_v6, %s7732_s7 }
0x12c9   :  { %2397 = vrot.lane.b32.xlu0 %v7015_v6, %s7726_s29 }
0x132c   :  { %v2214_v63 = vpop.xlane.xlu0 %2213 }
0x132d   :  { %6291 = vrcp.f32 %v2214_v63 }
0x1330   :  { %v2217_v7 = vpop.xlane.xlu1 %2216 }
0x1331   :  { %6293 = vrcp.f32 %v2217_v7 }
0x1334   :  { %v2220_v0 = vpop.xlane.xlu0 %2219  ;;  %v2223_v2 = vpop.xlane.xlu1 %2222 }
0x1335   :  { %6295 = vrcp.f32 %v2220_v0 }
0x1336   :  { %6297 = vrcp.f32 %v2223_v2  ;;  %v6439_v2 = vld [vmem:[%s7706_s16 + $0x8] sm:$0xff] }
0x1338   :  { %v2226_v5 = vpop.xlane.xlu0 %2225 }
0x1339   :  { %6299 = vrcp.f32 %v2226_v5  ;;  %v2229_v10 = vpop.xlane.xlu1 %2228  ;;  %v1729_v5 = vrot.slane %v6439_v2, %v6788_v61 }
0x133a   :  { %6301 = vrcp.f32 %v2229_v10  ;;  %v6292_v12 = vpop.eup %6291 }
0x133b   :  { %v2244_v46 = vmul.f32 %v6292_v12, %v6276_v32  ;;  %v1792_v10 = vadd.f32 %v7052_v20, %v1729_v5 }
0x133c   :  { %v2232_v11 = vpop.xlane.xlu0 %2231 }
0x133d   :  { %6303 = vrcp.f32 %v2232_v11  ;;  %v2235_v13 = vpop.xlane.xlu1 %2234  ;;  %v1798_v11 = vadd.f32 %v1792_v10, %v6959_v36 }
0x133e   :  { %6305 = vrcp.f32 %v2235_v13  ;;  %v6294_v14 = vpop.eup %6293  ;;  %v1795_v13 = vadd.f32 %v7054_v3, %v1729_v5 }
0x133f   :  { %v2245_v6 = vmul.f32 %v6294_v14, %v6278_v49  ;;  %v1800_v12 = vsel %vm89_vm1, %v1798_v11, 0.0 }
0x1340   :  { %v2398_v26 = vpop.permute.xlu0 %2397  ;;  %v1799_v14 = vadd.f32 %v1795_v13, %v6961_v37 }
0x1341   :  { %v2252_v16 = vpack.c.bf16 %v2245_v6, %v2244_v46  ;;  %v2351_v19 = vpop.permute.xlu1 %2350 }
0x1342   :  { %v6296_v15 = vpop.eup %6295  ;;  %v1803_v46 = vsel %vm89_vm1, %v1799_v14, 0.0 }
0x1343   :  { %v6298_v47 = vpop.eup %6297  ;;  %v2246_v18 = vmul.f32 %v6296_v15, %v6282_v56  ;;  %5762 = vmatmul.mubr.msk.bf16.vlgmr.msra.gmra.mxu1 %vm351_vm3, %v2252_v16  ;;  %v6170_v56 = vld [vmem:[%s7700_s10] sm:$0xff]  }
0x1344   :  { %v2247_v21 = vmul.f32 %v6298_v47, %v6280_v33  ;;  %5772 = vmatpush3.bf16.msra.mxu1 %v2351_v19  ;;  %5773 = vmatprep.mubr.msk.bf16.mxu1 %vm6468_vm0, %v6467_v1 }
0x1345   :  { %5783 = vmatprep.subr.bf16.mxu1 %v6467_v1 }
0x1346   :  { %v6300_v22 = vpop.eup %6299  ;;  %v2253_v23 = vpack.c.bf16 %v2247_v21, %v2246_v18 }
0x1347   :  { %v6302_v4 = vpop.eup %6301  ;;  %v2248_v24 = vmul.f32 %v6300_v22, %v6284_v52 }
0x1348   :  { %5768 = vmatmul.mubr.msk.bf16.vlgmr.msra.gmra.mxu0 %vm351_vm3, %v2253_v23  ;;  %v2249_v25 = vmul.f32 %v6302_v4, %v6286_v53 }
0x1349   :  { %5778 = vmatpush3.bf16.msra.mxu0 %v2398_v26  ;;  %5779 = vmatprep.mubr.msk.bf16.mxu0 %vm6468_vm0, %v6467_v1 }
0x134a   :  { %v6304_v27 = vpop.eup %6303  ;;  %v2254_v28 = vpack.c.bf16 %v2249_v25, %v2248_v24  ;;  %5791 = vmatprep.subr.bf16.mxu0 %v6467_v1 }
0x134b   :  { %v6306_v30 = vpop.eup %6305  ;;  %v2250_v31 = vmul.f32 %v6304_v27, %v6288_v58 }
0x134c   :  { %5774 = vmatmul.mubr.msk.bf16.vlgmr.msra.gmra.mxu1 %vm351_vm3, %v2254_v28  ;;  %v2251_v32 = vmul.f32 %v6306_v30, %v6290_v59 }
0x134d   :  { %5787 = vmatprep.mubr.msk.bf16.mxu1 %vm6468_vm0, %v6467_v1  ;;  %5784 = vmatpush3.bf16.msra.mxu1 %v6169_v45 }
0x134e   :  { %v2255_v39 = vpack.c.bf16 %v2251_v32, %v2250_v31  ;;  %5785 = vmatprep.subr.bf16.mxu1 %v6467_v1 }
0x1350   :  { %5780 = vmatmul.mubr.msk.bf16.vlgmr.msra.gmra.mxu0 %vm351_vm3, %v2255_v39 }
0x1351   :  { %5795 = vmatprep.mubr.msk.bf16.mxu0 %vm6468_vm0, %v6467_v1  ;;  %5786 = vmatpush3.bf16.msra.mxu1 %v6170_v56 }
0x1352   :  { %5799 = vmatprep.subr.bf16.mxu1 %v6467_v1 }
0x1403   :  { %v2296_v41 = vpop.f32.mrf.mxu1 }
0x1405   :  { %v5763_v42 = vpop.f32.mrf.mxu1 }
0x1407   :  { %v2299_v48 = vpop.f32.mrf.mxu1 }
0x1408   :  { %v2343_v49 = vpop.f32.mrf.mxu0 }
0x1409   :  { %v5764_v29 = vpop.f32.mrf.mxu1 }
0x140a   :  { %v5769_v33 = vpop.f32.mrf.mxu0 }
0x140c   :  { %v2346_v9 = vpop.f32.mrf.mxu0  ;;  %v2390_v51 = vpop.f32.mrf.mxu1 }
0x140d   :  { %v6087_v52 = vpack.i.bf16 %v2346_v9, %v2343_v49 }
0x140e   :  { %v5770_v53 = vpop.f32.mrf.mxu0  ;;  %v5775_v54 = vpop.f32.mrf.mxu1 }
0x140f   :  { %6088 = vrot.lane.b32.xlu1 %v6087_v52, %s7727_s5 }
0x1410   :  { %v2393_v57 = vpop.f32.mrf.mxu1  ;;  %v2437_v58 = vpop.f32.mrf.mxu0 }
0x1411   :  { %v6092_v59 = vpack.i.bf16 %v2393_v57, %v2390_v51  ;;  %v2478_v57 = vrot.slane %v7008_v55, %v6788_v61 }
0x1412   :  { %v5776_v60 = vpop.f32.mrf.mxu1  ;;  %v5781_v62 = vpop.f32.mrf.mxu0 }
0x1413   :  { %6093 = vrot.lane.b32.xlu0 %v6092_v59, %s7728_s28  ;;  %v1835_v62 = vrot.slane %v6439_v2, %v6810_v40 }
0x1414   :  { %v2440_v63 = vpop.f32.mrf.mxu0 }
0x1415   :  { %v6097_v7 = vpack.i.bf16 %v2440_v63, %v2437_v58  ;;  %v1829_v58 = vrot.slane %v6439_v2, %v6805_v35 }
0x1416   :  { %v5782_v0 = vpop.f32.mrf.mxu0 }
0x1417   :  { %6098 = vrot.lane.b32.xlu1 %v6097_v7, %s7729_s6 }
0x1432   :  { %1801 = vadd.xlane.f32.xlu0 %v1800_v12 }
0x143b   :  { %1804 = vadd.xlane.f32.xlu1 %v1803_v46 }
0x1481   :  { %v6089_v6 = vpop.permute.xlu1 %6088 }
0x1482   :  { %v6091_v16 = vunpack.i.h.bf16 %v6089_v6  ;;  %v6090_v47 = vunpack.i.l.bf16 %v6089_v6 }
0x1484   :  { %v2468_v20 = vsel %vm142_vm2, %v2296_v41, %v6090_v47  ;;  %v2469_v36 = vsel %vm142_vm2, %v2299_v48, %v6091_v16 }
0x1485   :  { %v6094_v15 = vpop.permute.xlu0 %6093 }
0x1486   :  { %v6096_v18 = vunpack.i.h.bf16 %v6094_v15  ;;  %v6095_v19 = vunpack.i.l.bf16 %v6094_v15 }
0x1488   :  { %v2471_v3 = vsel %vm351_vm3, %v2469_v36, %v6096_v18  ;;  %v2470_v37 = vsel %vm351_vm3, %v2468_v20, %v6095_v19 }
0x1489   :  { %v6099_v21 = vpop.permute.xlu1 %6098 }
0x148a   :  { %v6101_v22 = vunpack.i.h.bf16 %v6099_v21  ;;  %v6100_v23 = vunpack.i.l.bf16 %v6099_v21 }
0x148c   :  { %v2472_v4 = vsel %vm660_vm4, %v2470_v37, %v6100_v23  ;;  %v2473_v24 = vsel %vm660_vm4, %v2471_v3, %v6101_v22 }
0x148d   :  { %v2474_v26 = vpack.c.bf16 %v2473_v24, %v2472_v4 }
0x148f   :  { %5788 = vmatmul.mubr.msk.bf16.vlgmr.msra.gmra.mxu1 %vm89_vm1, %v2474_v26 }
0x1490   :  { %5803 = vmatprep.mubr.msk.bf16.mxu1 %vm6468_vm0, %v6467_v1 }
0x14bb   :  { %v1802_v25 = vpop.xlane.xlu0 %1801 }
0x14bc   :  { %v1806_v27 = vmul.f32 0.03125, %v1802_v25 }
0x14be   :  { %v1808_v28 = vsub.f32 %v1798_v11, %v1806_v27 }
0x14c0   :  { %v1810_v30 = vmul.f32 %v1808_v28, %v1808_v28 }
0x14c2   :  { %v1812_v31 = vsel %vm89_vm1, %v1810_v30, 0.0 }
0x14c3   :  { %1813 = vadd.xlane.f32.xlu0 %v1812_v31 }
0x14c4   :  { %v1805_v32 = vpop.xlane.xlu1 %1804 }
0x14c5   :  { %v1807_v39 = vmul.f32 0.03125, %v1805_v32  ;;  %v6171_v32 = vld [vmem:[%s7702_s12 + $0x8] sm:$0xff]  }
0x14c6   :  { %5800 = vmatpush3.bf16.msra.mxu1 %v6171_v32 }
0x14c7   :  { %v1809_v41 = vsub.f32 %v1799_v14, %v1807_v39  ;;  %5801 = vmatprep.subr.bf16.mxu1 %v6467_v1  ;;  %v6172_v39 = vld [vmem:[%s7701_s11 + $0x8] sm:$0xff]  }
0x14c8   :  { %5792 = vmatpush3.bf16.msra.mxu0 %v6172_v39 }
0x14c9   :  { %v1811_v42 = vmul.f32 %v1809_v41, %v1809_v41  ;;  %5793 = vmatprep.subr.bf16.mxu0 %v6467_v1 }
0x14cb   :  { %v1815_v45 = vsel %vm89_vm1, %v1811_v42, 0.0  ;;  %v6174_v42 = vld [vmem:[%s7701_s11] sm:$0xff]  }
0x14cc   :  { %1816 = vadd.xlane.f32.xlu0 %v1815_v45  ;;  %5794 = vmatpush3.bf16.msra.mxu0 %v6174_v42 }
0x14cd   :  { %5807 = vmatprep.subr.bf16.mxu0 %v6467_v1 }
0x154c   :  { %v1814_v48 = vpop.xlane.xlu0 %1813 }
0x154d   :  { %v1818_v49 = vmul.f32 0.03125, %v1814_v48 }
0x154f   :  { %v1820_v29 = vadd.f32 1e-05, %v1818_v49  ;;  %v2528_v33 = vpop.f32.mrf.mxu1 }
0x1550   :  { %v2529_v63 = vadd.f32 %v2528_v33, %v2478_v57 }
0x1551   :  { %6307 = vrsqrt.f32 %v1820_v29  ;;  %v5789_v56 = vpop.f32.mrf.mxu1 }
0x1552   :  { %v2535_v5 = vadd.f32 %v2529_v63, %v6977_v43  ;;  %v7169_v63 = vld [vmem:[%s7706_s16 + $0x18] sm:$0xff] }
0x1553   :  { %v2531_v9 = vpop.f32.mrf.mxu1 }
0x1554   :  { %v2537_v13 = vsel %vm89_vm1, %v2535_v5, 0.0  ;;  %v2532_v14 = vadd.f32 %v2531_v9, %v2478_v57 }
0x1555   :  { %v1817_v51 = vpop.xlane.xlu0 %1816  ;;  %v5790_v52 = vpop.f32.mrf.mxu1 }
0x1556   :  { %v1819_v53 = vmul.f32 0.03125, %v1817_v51  ;;  %v2536_v15 = vadd.f32 %v2532_v14, %v6982_v44 }
0x1558   :  { %v1821_v54 = vadd.f32 1e-05, %v1819_v53  ;;  %v2540_v16 = vsel %vm89_vm1, %v2536_v15, 0.0 }
0x155a   :  { %6309 = vrsqrt.f32 %v1821_v54 }
0x155e   :  { %v6308_v59 = vpop.eup %6307 }
0x155f   :  { %v1824_v60 = vmul.f32 %v6308_v59, %v1808_v28 }
0x1561   :  { %v1830_v7 = vmul.f32 %v1829_v58, %v1824_v60  ;;  %v1867_v60 = vrot.slane %v7008_v55, %v6607_v8 }
0x1563   :  { %v1836_v0 = vadd.f32 %v1835_v62, %v1830_v7 }
0x1565   :  { %v1838_v10 = vsel %vm89_vm1, %v1836_v0, 0.0 }
0x1566   :  { %1839 = vadd.xlane.f32.xlu1 %v1838_v10 }
0x1567   :  { %v6310_v11 = vpop.eup %6309 }
0x1568   :  { %v1825_v12 = vmul.f32 %v6310_v11, %v1809_v41  ;;  %v6173_v41 = vld [vmem:[%s7702_s12] sm:$0xff]  }
0x1569   :  { %5802 = vmatpush3.bf16.msra.mxu1 %v6173_v41 }
0x156a   :  { %2538 = vadd.xlane.f32.xlu1 %v2537_v13  ;;  %v1831_v46 = vmul.f32 %v1829_v58, %v1825_v12  ;;  %5813 = vmatprep.subr.bf16.mxu1 %v6467_v1  ;;  %v2566_v12 = vrot.slane %v7169_v63, %v6732_v17 }
0x156c   :  { %v1837_v6 = vadd.f32 %v1835_v62, %v1831_v46  ;;  %v2572_v46 = vrot.slane %v7169_v63, %v6780_v50 }
0x156e   :  { %v1841_v2 = vsel %vm89_vm1, %v1837_v6, 0.0 }
0x156f   :  { %1842 = vadd.xlane.f32.xlu0 %v1841_v2 }
0x1573   :  { %2541 = vadd.xlane.f32.xlu0 %v2540_v16 }
0x15ef   :  { %v1840_v43 = vpop.xlane.xlu1 %1839 }
0x15f0   :  { %v1844_v47 = vmul.f32 0.03125, %v1840_v43 }
0x15f2   :  { %v1846_v18 = vsub.f32 %v1836_v0, %v1844_v47  ;;  %v1873_v0 = vrot.slane %v7008_v55, %v6732_v17 }
0x15f3   :  { %v2539_v19 = vpop.xlane.xlu1 %2538 }
0x15f4   :  { %v2543_v21 = vmul.f32 0.03125, %v2539_v19  ;;  %v1848_v20 = vmul.f32 %v1846_v18, %v1846_v18 }
0x15f6   :  { %v2545_v36 = vsub.f32 %v2535_v5, %v2543_v21  ;;  %v1850_v22 = vsel %vm89_vm1, %v1848_v20, 0.0 }
0x15f7   :  { %1851 = vadd.xlane.f32.xlu1 %v1850_v22 }
0x15f8   :  { %v1843_v23 = vpop.xlane.xlu0 %1842  ;;  %v2547_v3 = vmul.f32 %v2545_v36, %v2545_v36 }
0x15f9   :  { %v1845_v37 = vmul.f32 0.03125, %v1843_v23 }
0x15fa   :  { %v2549_v44 = vsel %vm89_vm1, %v2547_v3, 0.0 }
0x15fb   :  { %v1847_v4 = vsub.f32 %v1837_v6, %v1845_v37  ;;  %2550 = vadd.xlane.f32.xlu1 %v2549_v44  ;;  %v2583_v44 = vrot.slane %v7008_v55, %v6755_v34 }
0x15fc   :  { %v2542_v24 = vpop.xlane.xlu0 %2541 }
0x15fd   :  { %v2544_v26 = vmul.f32 0.03125, %v2542_v24  ;;  %v1849_v25 = vmul.f32 %v1847_v4, %v1847_v4 }
0x15ff   :  { %v2546_v27 = vsub.f32 %v2536_v15, %v2544_v26  ;;  %v1853_v28 = vsel %vm89_vm1, %v1849_v25, 0.0 }
0x1600   :  { %1854 = vadd.xlane.f32.xlu0 %v1853_v28 }
0x1601   :  { %v2548_v30 = vmul.f32 %v2546_v27, %v2546_v27 }
0x1603   :  { %v2552_v31 = vsel %vm89_vm1, %v2548_v30, 0.0 }
0x1604   :  { %2553 = vadd.xlane.f32.xlu0 %v2552_v31 }
0x1680   :  { %v1852_v45 = vpop.xlane.xlu1 %1851 }
0x1681   :  { %v1856_v48 = vmul.f32 0.03125, %v1852_v45 }
0x1683   :  { %v1858_v49 = vadd.f32 1e-05, %v1856_v48 }
0x1684   :  { %v2551_v29 = vpop.xlane.xlu1 %2550 }
0x1685   :  { %v2555_v33 = vmul.f32 0.03125, %v2551_v29  ;;  %6311 = vrsqrt.f32 %v1858_v49 }
0x1687   :  { %v2557_v56 = vadd.f32 1e-05, %v2555_v33 }
0x1689   :  { %v1855_v9 = vpop.xlane.xlu0 %1854  ;;  %6313 = vrsqrt.f32 %v2557_v56 }
0x168a   :  { %v1857_v51 = vmul.f32 0.03125, %v1855_v9  ;;  %v1881_v9 = vld [vmem:[%s7694_s4] sm:$0xff] }
0x168c   :  { %v1859_v52 = vadd.f32 1e-05, %v1857_v51 }
0x168d   :  { %v2554_v53 = vpop.xlane.xlu0 %2553 }
0x168e   :  { %6315 = vrsqrt.f32 %v1859_v52  ;;  %v2556_v54 = vmul.f32 0.03125, %v2554_v53 }
0x1690   :  { %v2558_v57 = vadd.f32 1e-05, %v2556_v54  ;;  %v1882_v54 = vld [vmem:[%s7694_s4 + $0x8] sm:$0xff] }
0x1692   :  { %6317 = vrsqrt.f32 %v2558_v57  ;;  %v6312_v58 = vpop.eup %6311 }
0x1693   :  { %v1862_v59 = vmul.f32 %v6312_v58, %v1846_v18 }
0x1695   :  { %v1868_v11 = vmul.f32 %v1867_v60, %v1862_v59 }
0x1696   :  { %v6314_v62 = vpop.eup %6313 }
0x1697   :  { %v2561_v5 = vmul.f32 %v6314_v62, %v2545_v36  ;;  %v1874_v15 = vadd.f32 %v1873_v0, %v1868_v11  ;;  %v2648_v36 = vrot.slane %v7008_v55, %v6760_v38 }
0x1699   :  { %v2567_v16 = vmul.f32 %v2566_v12, %v2561_v5 }
0x169b   :  { %v6316_v7 = vpop.eup %6315  ;;  %v7181_v18 = vadd.f32 %v2572_v46, %v2567_v16 }
0x169c   :  { %v1863_v10 = vmul.f32 %v6316_v7, %v1847_v4 }
0x169e   :  { %v1869_v13 = vmul.f32 %v1867_v60, %v1863_v10 }
0x169f   :  { %v6318_v14 = vpop.eup %6317 }
0x16a0   :  { %v2562_v6 = vmul.f32 %v6318_v14, %v2546_v27  ;;  %v1875_v2 = vadd.f32 %v1873_v0, %v1869_v13 }
0x16a2   :  { %v7177_v43 = vpack.c.bf16 %v1875_v2, %v1874_v15  ;;  %v2568_v47 = vmul.f32 %v2566_v12, %v2562_v6 }
0x16a4   :  { %5804 = vmatmul.mubr.msk.bf16.vlgmr.msra.gmra.mxu1 %vm89_vm1, %v7177_v43  ;;  %v7183_v19 = vadd.f32 %v2572_v46, %v2568_v47 }
0x16a5   :  { %5815 = vmatprep.mubr.msk.bf16.mxu1 %vm6468_vm0, %v6467_v1 }
0x16a6   :  { %v2579_v21 = vpack.c.bf16 %v7183_v19, %v7181_v18 }
0x16a8   :  { %5796 = vmatmul.mubr.msk.bf16.vlgmr.msra.gmra.mxu0 %vm89_vm1, %v2579_v21 }
0x16a9   :  { %5809 = vmatprep.mubr.msk.bf16.mxu0 %vm6468_vm0, %v6467_v1 }
0x1764   :  { %v2698_v20 = vpop.f32.mrf.mxu1 }
0x1765   :  { %v2699_v37 = vadd.f32 %v2698_v20, %v2648_v36 }
0x1766   :  { %v5805_v22 = vpop.f32.mrf.mxu1 }
0x1768   :  { %v2633_v23 = vpop.f32.mrf.mxu0  ;;  %v2701_v3 = vpop.f32.mrf.mxu1 }
0x1769   :  { %v2702_v4 = vadd.f32 %v2701_v3, %v2648_v36  ;;  %v2634_v28 = vadd.f32 %v2633_v23, %v2583_v44 }
0x176a   :  { %v5797_v24 = vpop.f32.mrf.mxu0  ;;  %v5806_v26 = vpop.f32.mrf.mxu1 }
0x176b   :  { %v7196_v25 = vpack.c.bf16 %v2702_v4, %v2699_v37 }
0x176c   :  { %v2636_v27 = vpop.f32.mrf.mxu0 }
0x176d   :  { %v2637_v30 = vadd.f32 %v2636_v27, %v2583_v44  ;;  %2812 = vrot.lane.b32.xlu0 %v7196_v25, %s6473_s24  ;;  %2761 = vrot.lane.b32.xlu1 %v7196_v25, %s6471_s22  ;;  %v2714_v31 = vsel %vm142_vm2, %v7196_v25, 0 }
0x176e   :  { %v5798_v32 = vpop.f32.mrf.mxu0  ;;  %5808 = vmatpush3.bf16.xpose.msra.mxu0 %v2714_v31 }
0x176f   :  { %v2640_v55 = vpack.c.bf16 %v2637_v30, %v2634_v28  ;;  %5819 = vmatprep.subr.bf16.mxu0 %v6467_v1 }
0x1771   :  { %2810 = vrot.lane.b32.xlu0 %v2640_v55, %s6473_s24  ;;  %2758 = vrot.lane.b32.xlu1 %v2640_v55, %s6471_s22 }
0x1775   :  { %2863 = vrot.lane.b32.xlu1 %v7196_v25, %s6475_s26  ;;  %5810 = vmatmul.mubr.msk.bf16.vlgmr.msra.gmra.mxu0 %vm142_vm2, %v2640_v55 }
0x1776   :  { %5821 = vmatprep.mubr.msk.bf16.mxu0 %vm6468_vm0, %v6467_v1 }
0x1779   :  { %2861 = vrot.lane.b32.xlu1 %v2640_v55, %s6475_s26 }
0x17df   :  { %v2813_v39 = vpop.permute.xlu0 %2812  ;;  %v2762_v41 = vpop.permute.xlu1 %2761 }
0x17e0   :  { %v2818_v42 = vsel %vm142_vm2, %v2813_v39, 0  ;;  %v2767_v45 = vsel %vm142_vm2, %v2762_v41, 0 }
0x17e1   :  { %5814 = vmatpush3.bf16.xpose.msra.mxu1 %v2767_v45  ;;  %5820 = vmatpush3.bf16.xpose.msra.mxu0 %v2818_v42 }
0x17e2   :  { %5825 = vmatprep.subr.bf16.mxu1 %v6467_v1  ;;  %5831 = vmatprep.subr.bf16.mxu0 %v6467_v1 }
0x17e3   :  { %v2759_v48 = vpop.permute.xlu1 %2758  ;;  %v2811_v49 = vpop.permute.xlu0 %2810 }
0x17e7   :  { %v2864_v29 = vpop.permute.xlu1 %2863 }
0x17e8   :  { %v2869_v33 = vsel %vm142_vm2, %v2864_v29, 0  ;;  %5816 = vmatmul.mubr.msk.bf16.vlgmr.msra.gmra.mxu1 %vm142_vm2, %v2759_v48  ;;  %5822 = vmatmul.mubr.msk.bf16.vlgmr.msra.gmra.mxu0 %vm142_vm2, %v2811_v49 }
0x17e9   :  { %5826 = vmatpush3.bf16.xpose.msra.mxu1 %v2869_v33  ;;  %5827 = vmatprep.mubr.msk.bf16.mxu1 %vm6468_vm0, %v6467_v1 }
0x17ea   :  { %5833 = vmatprep.mubr.msk.bf16.mxu0 %vm6468_vm0, %v6467_v1  ;;  %5837 = vmatprep.subr.bf16.mxu1 %v6467_v1 }
0x17eb   :  { %v2862_v56 = vpop.permute.xlu1 %2861 }
0x17f0   :  { %5828 = vmatmul.mubr.msk.bf16.vlgmr.msra.gmra.mxu1 %vm142_vm2, %v2862_v56 }
0x17f1   :  { %5839 = vmatprep.mubr.msk.bf16.mxu1 %vm6468_vm0, %v6467_v1 }
0x1835   :  { %v2750_v51 = vpop.f32.mrf.mxu0 }
0x1836   :  { %v2912_v52 = vadd.f32 %v2750_v51, %v1881_v9 }
0x1837   :  { %v5811_v53 = vpop.f32.mrf.mxu0 }
0x1838   :  { %v2920_v57 = vsel %vm351_vm3, %v2912_v52, -inf }
0x1839   :  { %2921 = vmax.xlane.f32.xlu0 %v2920_v57  ;;  %v2753_v58 = vpop.f32.mrf.mxu0 }
0x183a   :  { %v2913_v59 = vadd.f32 %v2753_v58, %v1882_v54 }
0x183b   :  { %v5812_v60 = vpop.f32.mrf.mxu0 }
0x183c   :  { %v2923_v62 = vsel %vm351_vm3, %v2913_v59, -inf }
0x183d   :  { %2924 = vmax.xlane.f32.xlu1 %v2923_v62 }
0x18a8   :  { %v2803_v7 = vpop.f32.mrf.mxu1  ;;  %v2854_v0 = vpop.f32.mrf.mxu0 }
0x18a9   :  { %v2914_v5 = vadd.f32 %v2803_v7, %v1881_v9  ;;  %v2916_v10 = vadd.f32 %v2854_v0, %v1881_v9 }
0x18aa   :  { %v5817_v11 = vpop.f32.mrf.mxu1  ;;  %v5823_v12 = vpop.f32.mrf.mxu0 }
0x18ab   :  { %v2932_v13 = vsel %vm351_vm3, %v2916_v10, -inf  ;;  %v2926_v14 = vsel %vm351_vm3, %v2914_v5, -inf }
0x18ac   :  { %2933 = vmax.xlane.f32.xlu1 %v2932_v13  ;;  %v2857_v46 = vpop.f32.mrf.mxu0  ;;  %2927 = vmax.xlane.f32.xlu0 %v2926_v14  ;;  %v2806_v6 = vpop.f32.mrf.mxu1 }
0x18ad   :  { %v2915_v15 = vadd.f32 %v2806_v6, %v1882_v54  ;;  %v2917_v47 = vadd.f32 %v2857_v46, %v1882_v54 }
0x18ae   :  { %v5818_v2 = vpop.f32.mrf.mxu1  ;;  %v5824_v16 = vpop.f32.mrf.mxu0 }
0x18af   :  { %v2929_v21 = vsel %vm351_vm3, %v2915_v15, -inf  ;;  %v2935_v23 = vsel %vm351_vm3, %v2917_v47, -inf }
0x18b0   :  { %2930 = vmax.xlane.f32.xlu0 %v2929_v21  ;;  %v2905_v20 = vpop.f32.mrf.mxu1 }
0x18b1   :  { %v2918_v36 = vadd.f32 %v2905_v20, %v1881_v9 }
0x18b2   :  { %v5829_v22 = vpop.f32.mrf.mxu1 }
0x18b3   :  { %v2938_v3 = vsel %vm351_vm3, %v2918_v36, -inf }
0x18b4   :  { %2936 = vmax.xlane.f32.xlu0 %v2935_v23  ;;  %2939 = vmax.xlane.f32.xlu1 %v2938_v3  ;;  %v2908_v37 = vpop.f32.mrf.mxu1 }
0x18b5   :  { %v2919_v44 = vadd.f32 %v2908_v37, %v1882_v54 }
0x18b6   :  { %v5830_v4 = vpop.f32.mrf.mxu1 }
0x18b7   :  { %v2941_v24 = vsel %vm351_vm3, %v2919_v44, -inf }
0x18b8   :  { %2942 = vmax.xlane.f32.xlu0 %v2941_v24 }
0x18c2   :  { %v2922_v30 = vpop.xlane.xlu0 %2921 }
0x18c3   :  { %v2944_v31 = vsub.f32 %v2912_v52, %v2922_v30 }
0x18c5   :  { %3012 = vrot.lane.b32.xlu1 %v7196_v25, %s6470_s21  ;;  %v2952_v32 = vmul.f32 1.442695, %v2944_v31 }
0x18c6   :  { %v2925_v26 = vpop.xlane.xlu1 %2924 }
0x18c7   :  { %v2945_v27 = vsub.f32 %v2913_v59, %v2925_v26 }
0x18c9   :  { %v2954_v28 = vmul.f32 1.442695, %v2945_v27 }
0x18cb   :  { %6319 = vpow2.f32 %v2954_v28 }
0x18cc   :  { %6321 = vpow2.f32 %v2952_v32 }
0x18d8   :  { %v6320_v55 = vpop.eup %6319 }
0x18d9   :  { %v2971_v39 = vsel %vm351_vm3, %v6320_v55, 0.0  ;;  %v6322_v41 = vpop.eup %6321 }
0x18da   :  { %2972 = vadd.xlane.f32.xlu0 %v2971_v39  ;;  %v2968_v42 = vsel %vm351_vm3, %v6322_v41, 0.0 }
0x18e9   :  { %2969 = vadd.xlane.f32.xlu1 %v2968_v42 }
0x1935   :  { %v2934_v45 = vpop.xlane.xlu1 %2933  ;;  %v2928_v48 = vpop.xlane.xlu0 %2927 }
0x1936   :  { %v2948_v49 = vsub.f32 %v2916_v10, %v2934_v45  ;;  %v2946_v29 = vsub.f32 %v2914_v5, %v2928_v48 }
0x1938   :  { %v2956_v33 = vmul.f32 1.442695, %v2946_v29  ;;  %v2960_v56 = vmul.f32 1.442695, %v2948_v49 }
0x1939   :  { %v2931_v9 = vpop.xlane.xlu0 %2930 }
0x193a   :  { %v2947_v51 = vsub.f32 %v2915_v15, %v2931_v9  ;;  %6323 = vpow2.f32 %v2956_v33 }
0x193b   :  { %6325 = vpow2.f32 %v2960_v56 }
0x193c   :  { %v2958_v52 = vmul.f32 1.442695, %v2947_v51 }
0x193d   :  { %v2937_v53 = vpop.xlane.xlu0 %2936  ;;  %v2940_v54 = vpop.xlane.xlu1 %2939 }
0x193e   :  { %6327 = vpow2.f32 %v2958_v52  ;;  %v2949_v57 = vsub.f32 %v2917_v47, %v2937_v53  ;;  %v2950_v58 = vsub.f32 %v2918_v36, %v2940_v54 }
0x1940   :  { %v2962_v59 = vmul.f32 1.442695, %v2949_v57  ;;  %v2964_v60 = vmul.f32 1.442695, %v2950_v58 }
0x1941   :  { %v3013_v62 = vpop.permute.xlu1 %3012  ;;  %v2943_v7 = vpop.xlane.xlu0 %2942 }
0x1942   :  { %6329 = vpow2.f32 %v2962_v59  ;;  %v2951_v0 = vsub.f32 %v2919_v44, %v2943_v7  ;;  %5832 = vmatpush3.bf16.msra.mxu0 %v3013_v62  ;;  %v6175_v62 = vld [vmem:[%s7703_s13 + $0x8] sm:$0xff]  }
0x1943   :  { %6331 = vpow2.f32 %v2964_v60  ;;  %5843 = vmatprep.subr.bf16.mxu0 %v6467_v1 }
0x1944   :  { %v2966_v5 = vmul.f32 1.442695, %v2951_v0 }
0x1946   :  { %6333 = vpow2.f32 %v2966_v5  ;;  %v6176_v5 = vld [vmem:[%s7703_s13] sm:$0xff]  }
0x1947   :  { %v6324_v10 = vpop.eup %6323 }
0x1948   :  { %v2974_v11 = vsel %vm351_vm3, %v6324_v10, 0.0  ;;  %v6326_v12 = vpop.eup %6325 }
0x1949   :  { %2975 = vadd.xlane.f32.xlu1 %v2974_v11  ;;  %v2980_v46 = vsel %vm351_vm3, %v6326_v12, 0.0 }
0x194b   :  { %v6328_v13 = vpop.eup %6327 }
0x194c   :  { %v2977_v14 = vsel %vm351_vm3, %v6328_v13, 0.0 }
0x194d   :  { %2978 = vadd.xlane.f32.xlu0 %v2977_v14  ;;  %2981 = vadd.xlane.f32.xlu1 %v2980_v46 }
0x194f   :  { %v6330_v6 = vpop.eup %6329 }
0x1950   :  { %v6332_v15 = vpop.eup %6331  ;;  %v2983_v2 = vsel %vm351_vm3, %v6330_v6, 0.0 }
0x1951   :  { %v2986_v16 = vsel %vm351_vm3, %v6332_v15, 0.0  ;;  %2984 = vadd.xlane.f32.xlu0 %v2983_v2 }
0x1952   :  { %2987 = vadd.xlane.f32.xlu1 %v2986_v16 }
0x1953   :  { %v6334_v47 = vpop.eup %6333 }
0x1954   :  { %v2989_v21 = vsel %vm351_vm3, %v6334_v47, 0.0 }
0x1955   :  { %2990 = vadd.xlane.f32.xlu0 %v2989_v21 }
0x1963   :  { %3106 = vrot.lane.b32.xlu1 %v7196_v25, %s6469_s20  ;;  %v2973_v20 = vpop.xlane.xlu0 %2972 }
0x1964   :  { %6335 = vrcp.f32 %v2973_v20 }
0x1967   :  { %3153 = vrot.lane.b32.xlu1 %v7196_v25, %s6474_s25 }
0x196b   :  { %3059 = vrot.lane.b32.xlu0 %v7196_v25, %s6472_s23 }
0x1971   :  { %v6336_v22 = vpop.eup %6335 }
0x1972   :  { %v2970_v36 = vpop.xlane.xlu1 %2969  ;;  %v3001_v37 = vmul.f32 %v6336_v22, %v6320_v55 }
0x1973   :  { %6337 = vrcp.f32 %v2970_v36 }
0x1980   :  { %v6338_v23 = vpop.eup %6337 }
0x1981   :  { %v3000_v3 = vmul.f32 %v6338_v23, %v6322_v41 }
0x1983   :  { %v3008_v44 = vpack.c.bf16 %v3001_v37, %v3000_v3 }
0x1985   :  { %5834 = vmatmul.mubr.msk.bf16.vlgmr.msra.gmra.mxu0 %vm351_vm3, %v3008_v44 }
0x1986   :  { %5845 = vmatprep.mubr.msk.bf16.mxu0 %vm6468_vm0, %v6467_v1 }
0x19d2   :  { %v2976_v4 = vpop.xlane.xlu1 %2975 }
0x19d3   :  { %6339 = vrcp.f32 %v2976_v4 }
0x19d6   :  { %v2979_v24 = vpop.xlane.xlu0 %2978  ;;  %v2982_v26 = vpop.xlane.xlu1 %2981 }
0x19d7   :  { %6341 = vrcp.f32 %v2979_v24 }
0x19d8   :  { %6343 = vrcp.f32 %v2982_v26 }
0x19da   :  { %v2985_v25 = vpop.xlane.xlu0 %2984 }
0x19db   :  { %v2988_v27 = vpop.xlane.xlu1 %2987  ;;  %6345 = vrcp.f32 %v2985_v25 }
0x19dc   :  { %6347 = vrcp.f32 %v2988_v27 }
0x19de   :  { %v2991_v28 = vpop.xlane.xlu0 %2990 }
0x19df   :  { %v3107_v30 = vpop.permute.xlu1 %3106  ;;  %6349 = vrcp.f32 %v2991_v28 }
0x19e0   :  { %5844 = vmatpush3.bf16.msra.mxu0 %v3107_v30  ;;  %v6340_v31 = vpop.eup %6339 }
0x19e1   :  { %5855 = vmatprep.subr.bf16.mxu0 %v6467_v1  ;;  %v3002_v39 = vmul.f32 %v6340_v31, %v6324_v10 }
0x19e2   :  { %v3060_v32 = vpop.permute.xlu0 %3059 }
0x19e3   :  { %5838 = vmatpush3.bf16.msra.mxu1 %v3060_v32  ;;  %v3154_v49 = vpop.permute.xlu1 %3153 }
0x19e4   :  { %v6342_v55 = vpop.eup %6341  ;;  %5849 = vmatprep.subr.bf16.mxu1 %v6467_v1 }
0x19e5   :  { %v3003_v41 = vmul.f32 %v6342_v55, %v6328_v13  ;;  %v6344_v42 = vpop.eup %6343 }
0x19e6   :  { %v3004_v29 = vmul.f32 %v6344_v42, %v6326_v12 }
0x19e7   :  { %v3009_v45 = vpack.c.bf16 %v3003_v41, %v3002_v39  ;;  %v7297_v39 = vld [vmem:[%s7706_s16 + $0x10] sm:$0xff] }
0x19e8   :  { %v6346_v48 = vpop.eup %6345  ;;  %v3234_v41 = vrot.slane %v7297_v39, %v6805_v35 }
0x19e9   :  { %5840 = vmatmul.mubr.msk.bf16.vlgmr.msra.gmra.mxu1 %vm351_vm3, %v3009_v45  ;;  %v3005_v33 = vmul.f32 %v6346_v48, %v6330_v6  ;;  %v6348_v56 = vpop.eup %6347 }
0x19ea   :  { %5850 = vmatpush3.bf16.msra.mxu1 %v3154_v49  ;;  %5851 = vmatprep.mubr.msk.bf16.mxu1 %vm6468_vm0, %v6467_v1  ;;  %v3006_v52 = vmul.f32 %v6348_v56, %v6332_v15 }
0x19eb   :  { %v3010_v9 = vpack.c.bf16 %v3005_v33, %v3004_v29  ;;  %5863 = vmatprep.subr.bf16.mxu1 %v6467_v1 }
0x19ec   :  { %v6350_v51 = vpop.eup %6349 }
0x19ed   :  { %5846 = vmatmul.mubr.msk.bf16.vlgmr.msra.gmra.mxu0 %vm351_vm3, %v3010_v9  ;;  %v3007_v53 = vmul.f32 %v6350_v51, %v6334_v47 }
0x19ee   :  { %5859 = vmatprep.mubr.msk.bf16.mxu0 %vm6468_vm0, %v6467_v1  ;;  %5856 = vmatpush3.bf16.msra.mxu0 %v6175_v62 }
0x19ef   :  { %v3011_v54 = vpack.c.bf16 %v3007_v53, %v3006_v52  ;;  %5857 = vmatprep.subr.bf16.mxu0 %v6467_v1 }
0x19f1   :  { %5852 = vmatmul.mubr.msk.bf16.vlgmr.msra.gmra.mxu1 %vm351_vm3, %v3011_v54 }
0x19f2   :  { %5867 = vmatprep.mubr.msk.bf16.mxu1 %vm6468_vm0, %v6467_v1  ;;  %5858 = vmatpush3.bf16.msra.mxu0 %v6176_v5  ;;  %v6178_v5 = vld [vmem:[%s7704_s14] sm:$0xff]  }
0x19f3   :  { %5871 = vmatprep.subr.bf16.mxu0 %v6467_v1 }
0x1a45   :  { %v3052_v57 = vpop.f32.mrf.mxu0 }
0x1a47   :  { %v5835_v58 = vpop.f32.mrf.mxu0 }
0x1a49   :  { %v3055_v59 = vpop.f32.mrf.mxu0 }
0x1a4b   :  { %v5836_v60 = vpop.f32.mrf.mxu0 }
0x1aa9   :  { %v3099_v7 = vpop.f32.mrf.mxu1 }
0x1aab   :  { %v5841_v0 = vpop.f32.mrf.mxu1 }
0x1aad   :  { %v3102_v10 = vpop.f32.mrf.mxu1  ;;  %v3146_v11 = vpop.f32.mrf.mxu0 }
0x1aae   :  { %v6102_v12 = vpack.i.bf16 %v3102_v10, %v3099_v7  ;;  %v6179_v10 = vld [vmem:[%s7705_s15 + $0x18] sm:$0xff]  }
0x1aaf   :  { %v5842_v13 = vpop.f32.mrf.mxu1  ;;  %v5847_v14 = vpop.f32.mrf.mxu0 }
0x1ab0   :  { %6103 = vrot.lane.b32.xlu0 %v6102_v12, %s7727_s5 }
0x1ab1   :  { %v3149_v46 = vpop.f32.mrf.mxu0  ;;  %v3193_v6 = vpop.f32.mrf.mxu1 }
0x1ab2   :  { %v6107_v15 = vpack.i.bf16 %v3149_v46, %v3146_v11 }
0x1ab3   :  { %v5848_v2 = vpop.f32.mrf.mxu0  ;;  %v5853_v16 = vpop.f32.mrf.mxu1 }
0x1ab4   :  { %6108 = vrot.lane.b32.xlu1 %v6107_v15, %s7728_s28  ;;  %v3322_v16 = vrot.slane %v7169_v63, %v6788_v61 }
0x1ab5   :  { %v3196_v47 = vpop.f32.mrf.mxu1 }
0x1ab6   :  { %v6112_v21 = vpack.i.bf16 %v3196_v47, %v3193_v6 }
0x1ab7   :  { %v5854_v20 = vpop.f32.mrf.mxu1 }
0x1ab8   :  { %6113 = vrot.lane.b32.xlu0 %v6112_v21, %s7729_s6 }
0x1b22   :  { %v6104_v36 = vpop.permute.xlu0 %6103 }
0x1b23   :  { %v6106_v23 = vunpack.i.h.bf16 %v6104_v36  ;;  %v6105_v3 = vunpack.i.l.bf16 %v6104_v36  ;;  %v3328_v36 = vrot.slane %v7169_v63, %v6755_v34 }
0x1b25   :  { %v3225_v24 = vsel %vm142_vm2, %v3055_v59, %v6106_v23  ;;  %v3224_v26 = vsel %vm142_vm2, %v3052_v57, %v6105_v3 }
0x1b26   :  { %v6109_v22 = vpop.permute.xlu1 %6108 }
0x1b27   :  { %v6111_v37 = vunpack.i.h.bf16 %v6109_v22  ;;  %v6110_v44 = vunpack.i.l.bf16 %v6109_v22 }
0x1b29   :  { %v3226_v28 = vsel %vm351_vm3, %v3224_v26, %v6110_v44  ;;  %v3227_v30 = vsel %vm351_vm3, %v3225_v24, %v6111_v37  ;;  %v6180_v44 = vld [vmem:[%s7705_s15 + $0x10] sm:$0xff]   ;;  %v6182_v24 = vld [vmem:[%s7705_s15] sm:$0xff]   ;;  %v3339_v26 = vrot.slane %v7297_v39, %v6810_v40 }
0x1b2a   :  { %v6114_v4 = vpop.permute.xlu0 %6113 }
0x1b2b   :  { %v6116_v25 = vunpack.i.h.bf16 %v6114_v4  ;;  %v6115_v27 = vunpack.i.l.bf16 %v6114_v4  ;;  %v6181_v4 = vld [vmem:[%s7705_s15 + $0x8] sm:$0xff]  }
0x1b2d   :  { %v3229_v31 = vsel %vm660_vm4, %v3227_v30, %v6116_v25  ;;  %v3228_v32 = vsel %vm660_vm4, %v3226_v28, %v6115_v27 }
0x1b2e   :  { %v3230_v55 = vpack.c.bf16 %v3229_v31, %v3228_v32 }
0x1b30   :  { %5860 = vmatmul.mubr.msk.bf16.vlgmr.msra.gmra.mxu0 %vm89_vm1, %v3230_v55 }
0x1b31   :  { %5879 = vmatprep.mubr.msk.bf16.mxu0 %vm6468_vm0, %v6467_v1  ;;  %5872 = vmatpush3.bf16.msra.mxu0 %v6179_v10  ;;  %v6184_v10 = vld [vmem:[%s7699_s9 + $0x10] sm:$0xff]  }
0x1b32   :  { %5873 = vmatprep.subr.bf16.mxu0 %v6467_v1 }
0x1b35   :  { %5874 = vmatpush3.bf16.msra.mxu0 %v6180_v44 }
0x1b36   :  { %5875 = vmatprep.subr.bf16.mxu0 %v6467_v1 }
0x1b39   :  { %5876 = vmatpush3.bf16.msra.mxu0 %v6181_v4  ;;  %v3528_v4 = vrot.slane %v7169_v63, %v6810_v40 }
0x1b3a   :  { %5877 = vmatprep.subr.bf16.mxu0 %v6467_v1 }
0x1b3d   :  { %5878 = vmatpush3.bf16.msra.mxu0 %v6182_v24 }
0x1b3e   :  { %5897 = vmatprep.subr.bf16.mxu0 %v6467_v1 }
0x1bf0   :  { %v3284_v42 = vpop.f32.mrf.mxu0 }
0x1bf1   :  { %v3285_v45 = vadd.f32 %v3284_v42, %v3234_v41 }
0x1bf2   :  { %v5861_v48 = vpop.f32.mrf.mxu0 }
0x1bf3   :  { %v3291_v49 = vadd.f32 %v3285_v45, %v7181_v18  ;;  %v3410_v45 = vrot.slane %v7169_v63, %v6607_v8 }
0x1bf4   :  { %v3287_v29 = vpop.f32.mrf.mxu0 }
0x1bf5   :  { %v3288_v33 = vadd.f32 %v3287_v29, %v3234_v41  ;;  %v3293_v56 = vsel %vm89_vm1, %v3291_v49, 0.0 }
0x1bf6   :  { %3294 = vadd.xlane.f32.xlu1 %v3293_v56  ;;  %v5862_v9 = vpop.f32.mrf.mxu0 }
0x1bf7   :  { %v3292_v51 = vadd.f32 %v3288_v33, %v7183_v19  ;;  %v6177_v19 = vld [vmem:[%s7704_s14 + $0x8] sm:$0xff]  }
0x1bf8   :  { %5864 = vmatpush3.bf16.msra.mxu1 %v6177_v19 }
0x1bf9   :  { %v3296_v52 = vsel %vm89_vm1, %v3292_v51, 0.0  ;;  %5865 = vmatprep.subr.bf16.mxu1 %v6467_v1 }
0x1bfa   :  { %3297 = vadd.xlane.f32.xlu0 %v3296_v52 }
0x1bfc   :  { %5866 = vmatpush3.bf16.msra.mxu1 %v6178_v5  ;;  %v6183_v5 = vld [vmem:[%s7699_s9 + $0x18] sm:$0xff]  }
0x1bfd   :  { %5883 = vmatprep.subr.bf16.mxu1 %v6467_v1 }
0x1c7f   :  { %v3295_v53 = vpop.xlane.xlu1 %3294 }
0x1c80   :  { %v3299_v54 = vmul.f32 0.03125, %v3295_v53 }
0x1c82   :  { %v3301_v57 = vsub.f32 %v3291_v49, %v3299_v54 }
0x1c83   :  { %v3298_v58 = vpop.xlane.xlu0 %3297 }
0x1c84   :  { %v3300_v59 = vmul.f32 0.03125, %v3298_v58  ;;  %v3303_v60 = vmul.f32 %v3301_v57, %v3301_v57 }
0x1c86   :  { %v3302_v62 = vsub.f32 %v3292_v51, %v3300_v59  ;;  %v3305_v18 = vsel %vm89_vm1, %v3303_v60, 0.0 }
0x1c87   :  { %3306 = vadd.xlane.f32.xlu0 %v3305_v18 }
0x1c88   :  { %v3304_v7 = vmul.f32 %v3302_v62, %v3302_v62 }
0x1c8a   :  { %v3308_v0 = vsel %vm89_vm1, %v3304_v7, 0.0 }
0x1c8b   :  { %3309 = vadd.xlane.f32.xlu1 %v3308_v0 }
0x1d10   :  { %v3307_v11 = vpop.xlane.xlu0 %3306 }
0x1d11   :  { %v3311_v12 = vmul.f32 0.03125, %v3307_v11 }
0x1d13   :  { %v3313_v13 = vadd.f32 1e-05, %v3311_v12 }
0x1d14   :  { %v3310_v14 = vpop.xlane.xlu1 %3309 }
0x1d15   :  { %6351 = vrsqrt.f32 %v3313_v13  ;;  %v3312_v46 = vmul.f32 0.03125, %v3310_v14 }
0x1d17   :  { %v3314_v6 = vadd.f32 1e-05, %v3312_v46 }
0x1d19   :  { %6353 = vrsqrt.f32 %v3314_v6 }
0x1d22   :  { %v6352_v15 = vpop.eup %6351 }
0x1d23   :  { %v3317_v2 = vmul.f32 %v6352_v15, %v3301_v57 }
0x1d25   :  { %v3323_v20 = vmul.f32 %v3322_v16, %v3317_v2 }
0x1d26   :  { %v6354_v47 = vpop.eup %6353 }
0x1d27   :  { %v3318_v21 = vmul.f32 %v6354_v47, %v3302_v62  ;;  %v3329_v23 = vadd.f32 %v3328_v36, %v3323_v20 }
0x1d29   :  { %v3324_v22 = vmul.f32 %v3322_v16, %v3318_v21  ;;  %v3510_v16 = vrot.slane %v7169_v63, %v6760_v38 }
0x1d2b   :  { %v3330_v3 = vadd.f32 %v3328_v36, %v3324_v22  ;;  %v3516_v36 = vrot.slane %v7169_v63, %v6805_v35 }
0x1d2d   :  { %v3335_v37 = vpack.c.bf16 %v3330_v3, %v3329_v23 }
0x1d2f   :  { %5868 = vmatmul.mubr.msk.bf16.vlgmr.msra.gmra.mxu1 %vm89_vm1, %v3335_v37 }
0x1d30   :  { %5887 = vmatprep.mubr.msk.bf16.mxu1 %vm6468_vm0, %v6467_v1  ;;  %5884 = vmatpush3.bf16.msra.mxu1 %v6183_v5 }
0x1d31   :  { %5885 = vmatprep.subr.bf16.mxu1 %v6467_v1 }
0x1d34   :  { %5886 = vmatpush3.bf16.msra.mxu1 %v6184_v10 }
0x1d35   :  { %5891 = vmatprep.subr.bf16.mxu1 %v6467_v1 }
0x1def   :  { %v3389_v25 = vpop.f32.mrf.mxu1 }
0x1df0   :  { %v3390_v28 = vadd.f32 %v3389_v25, %v3339_v26 }
0x1df1   :  { %v5869_v27 = vpop.f32.mrf.mxu1 }
0x1df2   :  { %v3396_v55 = vmax.f32 %v3390_v28, 0.0 }
0x1df3   :  { %v3392_v30 = vpop.f32.mrf.mxu1 }
0x1df4   :  { %v3393_v31 = vadd.f32 %v3392_v30, %v3339_v26 }
0x1df5   :  { %v5870_v32 = vpop.f32.mrf.mxu1 }
0x1df6   :  { %v3397_v41 = vmax.f32 %v3393_v31, 0.0 }
0x1df8   :  { %v3406_v42 = vpack.c.bf16 %v3397_v41, %v3396_v55 }
0x1dfa   :  { %5880 = vmatmul.mubr.msk.bf16.vlgmr.msra.gmra.mxu0 %vm869_vm5, %v3406_v42 }
0x1dfb   :  { %5899 = vmatprep.mubr.msk.bf16.mxu0 %vm6468_vm0, %v6467_v1 }
0x1eba   :  { %v3472_v48 = vpop.f32.mrf.mxu0 }
0x1ebb   :  { %v3473_v49 = vadd.f32 %v3472_v48, %v3410_v45 }
0x1ebc   :  { %v5881_v39 = vpop.f32.mrf.mxu0 }
0x1ebd   :  { %v3479_v29 = vadd.f32 %v3473_v49, %v3329_v23 }
0x1ebe   :  { %v3475_v33 = vpop.f32.mrf.mxu0 }
0x1ebf   :  { %v3476_v56 = vadd.f32 %v3475_v33, %v3410_v45  ;;  %v3481_v9 = vsel %vm89_vm1, %v3479_v29, 0.0 }
0x1ec0   :  { %3482 = vadd.xlane.f32.xlu0 %v3481_v9  ;;  %v5882_v51 = vpop.f32.mrf.mxu0  ;;  %v6441_v9 = vld [vmem:[%s7693_s3] sm:$0xff] }
0x1ec1   :  { %v3480_v52 = vadd.f32 %v3476_v56, %v3330_v3 }
0x1ec3   :  { %v3484_v53 = vsel %vm89_vm1, %v3480_v52, 0.0 }
0x1ec4   :  { %3485 = vadd.xlane.f32.xlu1 %v3484_v53 }
0x1f49   :  { %v3483_v54 = vpop.xlane.xlu0 %3482 }
0x1f4a   :  { %v3487_v57 = vmul.f32 0.03125, %v3483_v54 }
0x1f4c   :  { %v3489_v58 = vsub.f32 %v3479_v29, %v3487_v57 }
0x1f4d   :  { %v3486_v59 = vpop.xlane.xlu1 %3485 }
0x1f4e   :  { %v3488_v60 = vmul.f32 0.03125, %v3486_v59  ;;  %v3491_v62 = vmul.f32 %v3489_v58, %v3489_v58 }
0x1f50   :  { %v3490_v18 = vsub.f32 %v3480_v52, %v3488_v60  ;;  %v3493_v7 = vsel %vm89_vm1, %v3491_v62, 0.0  ;;  %v6442_v60 = vld [vmem:[%s7693_s3 + $0x8] sm:$0xff]  ;;  %s7733_s3 = smov 56  }
0x1f51   :  { %3494 = vadd.xlane.f32.xlu0 %v3493_v7 }
0x1f52   :  { %v3492_v0 = vmul.f32 %v3490_v18, %v3490_v18 }
0x1f54   :  { %v3496_v19 = vsel %vm89_vm1, %v3492_v0, 0.0 }
0x1f55   :  { %3497 = vadd.xlane.f32.xlu1 %v3496_v19 }
0x1fda   :  { %v3495_v11 = vpop.xlane.xlu0 %3494 }
0x1fdb   :  { %v3499_v12 = vmul.f32 0.03125, %v3495_v11 }
0x1fdd   :  { %v3501_v13 = vadd.f32 1e-05, %v3499_v12 }
0x1fde   :  { %v3498_v14 = vpop.xlane.xlu1 %3497 }
0x1fdf   :  { %6355 = vrsqrt.f32 %v3501_v13  ;;  %v3500_v46 = vmul.f32 0.03125, %v3498_v14 }
0x1fe1   :  { %v3502_v6 = vadd.f32 1e-05, %v3500_v46 }
0x1fe3   :  { %6357 = vrsqrt.f32 %v3502_v6 }
0x1fec   :  { %v6356_v15 = vpop.eup %6355 }
0x1fed   :  { %v3505_v2 = vmul.f32 %v6356_v15, %v3489_v58 }
0x1fef   :  { %v3511_v20 = vmul.f32 %v3510_v16, %v3505_v2 }
0x1ff0   :  { %v6358_v47 = vpop.eup %6357 }
0x1ff1   :  { %v3506_v21 = vmul.f32 %v6358_v47, %v3490_v18  ;;  %v7361_v23 = vadd.f32 %v3516_v36, %v3511_v20 }
0x1ff3   :  { %v3512_v22 = vmul.f32 %v3510_v16, %v3506_v21 }
0x1ff5   :  { %v7363_v3 = vadd.f32 %v3516_v36, %v3512_v22 }
0x1ff7   :  { %v3524_v37 = vpack.c.bf16 %v7363_v3, %v7361_v23 }
0x1ff9   :  { %5888 = vmatmul.mubr.msk.bf16.vlgmr.msra.gmra.mxu1 %vm89_vm1, %v3524_v37 }
0x1ffa   :  { %5893 = vmatprep.mubr.msk.bf16.mxu1 %vm6468_vm0, %v6467_v1 }
0x20b9   :  { %v3578_v44 = vpop.f32.mrf.mxu1 }
0x20ba   :  { %v3579_v25 = vadd.f32 %v3578_v44, %v3528_v4 }
0x20bb   :  { %v5889_v24 = vpop.f32.mrf.mxu1 }
0x20bd   :  { %v3581_v26 = vpop.f32.mrf.mxu1 }
0x20be   :  { %v3582_v27 = vadd.f32 %v3581_v26, %v3528_v4 }
0x20bf   :  { %v5890_v28 = vpop.f32.mrf.mxu1 }
0x20c0   :  { %v7372_v30 = vpack.c.bf16 %v3582_v27, %v3579_v25 }
0x20c2   :  { %3643 = vrot.lane.b32.xlu1 %v7372_v30, %s6472_s23  ;;  %3592 = vrot.lane.b32.xlu0 %v7372_v30, %s6470_s21 }
0x20c6   :  { %3694 = vrot.lane.b32.xlu1 %v7372_v30, %s6469_s20  ;;  %3641 = vrot.lane.b32.xlu0 %v7372_v30, %s6471_s22 }
0x20ca   :  { %3745 = vrot.lane.b32.xlu1 %v7372_v30, %s6474_s25  ;;  %3692 = vrot.lane.b32.xlu0 %v7372_v30, %s6473_s24 }
0x20ce   :  { %3743 = vrot.lane.b32.xlu1 %v7372_v30, %s6475_s26 }
0x2134   :  { %v3644_v63 = vpop.permute.xlu1 %3643  ;;  %v3593_v31 = vpop.permute.xlu0 %3592 }
0x2135   :  { %v3649_v32 = vsel %vm142_vm2, %v3644_v63, 0  ;;  %v3598_v55 = vsel %vm142_vm2, %v3593_v31, 0 }
0x2136   :  { %5892 = vmatpush3.bf16.xpose.msra.mxu1 %v3598_v55  ;;  %5898 = vmatpush3.bf16.xpose.msra.mxu0 %v3649_v32 }
0x2137   :  { %5903 = vmatprep.subr.bf16.mxu1 %v6467_v1  ;;  %5909 = vmatprep.subr.bf16.mxu0 %v6467_v1 }
0x2138   :  { %v3695_v41 = vpop.permute.xlu1 %3694  ;;  %v3642_v42 = vpop.permute.xlu0 %3641 }
0x2139   :  { %v3700_v48 = vsel %vm142_vm2, %v3695_v41, 0 }
0x213c   :  { %v3746_v45 = vpop.permute.xlu1 %3745  ;;  %v3693_v39 = vpop.permute.xlu0 %3692 }
0x213d   :  { %v3751_v49 = vsel %vm142_vm2, %v3746_v45, 0  ;;  %5894 = vmatmul.mubr.msk.bf16.vlgmr.msra.gmra.mxu1 %vm142_vm2, %v7372_v30  ;;  %5900 = vmatmul.mubr.msk.bf16.vlgmr.msra.gmra.mxu0 %vm142_vm2, %v3642_v42 }
0x213e   :  { %5904 = vmatpush3.bf16.xpose.msra.mxu1 %v3700_v48  ;;  %5910 = vmatpush3.bf16.xpose.msra.mxu0 %v3751_v49 }
0x213f   :  { %5905 = vmatprep.mubr.msk.bf16.mxu1 %vm6468_vm0, %v6467_v1  ;;  %5911 = vmatprep.mubr.msk.bf16.mxu0 %vm6468_vm0, %v6467_v1 }
0x2140   :  { %5915 = vmatprep.subr.bf16.mxu1 %v6467_v1  ;;  %5921 = vmatprep.subr.bf16.mxu0 %v6467_v1  ;;  %v3744_v29 = vpop.permute.xlu1 %3743 }
0x2145   :  { %5906 = vmatmul.mubr.msk.bf16.vlgmr.msra.gmra.mxu1 %vm142_vm2, %v3693_v39  ;;  %5912 = vmatmul.mubr.msk.bf16.vlgmr.msra.gmra.mxu0 %vm142_vm2, %v3744_v29 }
0x2146   :  { %5917 = vmatprep.mubr.msk.bf16.mxu1 %vm6468_vm0, %v6467_v1  ;;  %5923 = vmatprep.mubr.msk.bf16.mxu0 %vm6468_vm0, %v6467_v1 }
0x21fd   :  { %v3634_v33 = vpop.f32.mrf.mxu1  ;;  %v3685_v56 = vpop.f32.mrf.mxu0 }
0x21fe   :  { %v3794_v51 = vadd.f32 %v6441_v9, %v3634_v33  ;;  %v3796_v54 = vadd.f32 %v6441_v9, %v3685_v56 }
0x21ff   :  { %v5895_v52 = vpop.f32.mrf.mxu1  ;;  %v5901_v53 = vpop.f32.mrf.mxu0 }
0x2200   :  { %v3802_v57 = vsel %vm351_vm3, %v3794_v51, -inf  ;;  %v3808_v19 = vsel %vm351_vm3, %v3796_v54, -inf }
0x2201   :  { %v3688_v58 = vpop.f32.mrf.mxu0  ;;  %3803 = vmax.xlane.f32.xlu0 %v3802_v57  ;;  %v3637_v59 = vpop.f32.mrf.mxu1 }
0x2202   :  { %v3795_v62 = vadd.f32 %v6442_v60, %v3637_v59  ;;  %v3797_v0 = vadd.f32 %v6442_v60, %v3688_v58 }
0x2203   :  { %v5896_v18 = vpop.f32.mrf.mxu1  ;;  %v5902_v7 = vpop.f32.mrf.mxu0 }
0x2204   :  { %v3805_v5 = vsel %vm351_vm3, %v3795_v62, -inf  ;;  %v3811_v6 = vsel %vm351_vm3, %v3797_v0, -inf }
0x2205   :  { %v3787_v10 = vpop.f32.mrf.mxu0  ;;  %3809 = vmax.xlane.f32.xlu0 %v3808_v19  ;;  %3806 = vmax.xlane.f32.xlu1 %v3805_v5  ;;  %v3736_v11 = vpop.f32.mrf.mxu1 }
0x2206   :  { %v3798_v12 = vadd.f32 %v6441_v9, %v3736_v11  ;;  %v3800_v46 = vadd.f32 %v6441_v9, %v3787_v10 }
0x2207   :  { %v5907_v13 = vpop.f32.mrf.mxu1  ;;  %v5913_v14 = vpop.f32.mrf.mxu0 }
0x2208   :  { %v3814_v15 = vsel %vm351_vm3, %v3798_v12, -inf  ;;  %v3820_v22 = vsel %vm351_vm3, %v3800_v46, -inf }
0x2209   :  { %v3790_v2 = vpop.f32.mrf.mxu0  ;;  %3812 = vmax.xlane.f32.xlu0 %v3811_v6  ;;  %3815 = vmax.xlane.f32.xlu1 %v3814_v15  ;;  %v3739_v16 = vpop.f32.mrf.mxu1 }
0x220a   :  { %v3799_v47 = vadd.f32 %v6442_v60, %v3739_v16  ;;  %v3801_v36 = vadd.f32 %v6442_v60, %v3790_v2 }
0x220b   :  { %v5908_v21 = vpop.f32.mrf.mxu1  ;;  %v5914_v20 = vpop.f32.mrf.mxu0 }
0x220c   :  { %v3817_v37 = vsel %vm351_vm3, %v3799_v47, -inf  ;;  %v3823_v44 = vsel %vm351_vm3, %v3801_v36, -inf }
0x220d   :  { %3821 = vmax.xlane.f32.xlu1 %v3820_v22  ;;  %3818 = vmax.xlane.f32.xlu0 %v3817_v37 }
0x2211   :  { %3824 = vmax.xlane.f32.xlu0 %v3823_v44 }
0x221e   :  { %3894 = vrot.lane.b32.xlu1 %v7372_v30, %s7731_s27 }
0x228a   :  { %v3804_v4 = vpop.xlane.xlu0 %3803 }
0x228b   :  { %v3826_v24 = vsub.f32 %v3794_v51, %v3804_v4 }
0x228d   :  { %v3834_v26 = vmul.f32 1.442695, %v3826_v24 }
0x228e   :  { %v3810_v25 = vpop.xlane.xlu0 %3809  ;;  %v3807_v27 = vpop.xlane.xlu1 %3806 }
0x228f   :  { %6359 = vpow2.f32 %v3834_v26  ;;  %v3828_v28 = vsub.f32 %v3796_v54, %v3810_v25  ;;  %v3827_v63 = vsub.f32 %v3795_v62, %v3807_v27 }
0x2291   :  { %v3838_v31 = vmul.f32 1.442695, %v3828_v28  ;;  %v3836_v32 = vmul.f32 1.442695, %v3827_v63 }
0x2292   :  { %v3813_v55 = vpop.xlane.xlu0 %3812  ;;  %v3816_v41 = vpop.xlane.xlu1 %3815 }
0x2293   :  { %6361 = vpow2.f32 %v3838_v31  ;;  %v3829_v42 = vsub.f32 %v3797_v0, %v3813_v55  ;;  %v3830_v45 = vsub.f32 %v3798_v12, %v3816_v41 }
0x2294   :  { %6363 = vpow2.f32 %v3836_v32 }
0x2295   :  { %v3840_v48 = vmul.f32 1.442695, %v3829_v42  ;;  %v3842_v49 = vmul.f32 1.442695, %v3830_v45 }
0x2296   :  { %v3822_v39 = vpop.xlane.xlu1 %3821  ;;  %v3819_v29 = vpop.xlane.xlu0 %3818 }
0x2297   :  { %6365 = vpow2.f32 %v3840_v48  ;;  %v3832_v33 = vsub.f32 %v3800_v46, %v3822_v39  ;;  %v3831_v56 = vsub.f32 %v3799_v47, %v3819_v29 }
0x2298   :  { %6367 = vpow2.f32 %v3842_v49 }
0x2299   :  { %v3846_v9 = vmul.f32 1.442695, %v3832_v33  ;;  %v3844_v51 = vmul.f32 1.442695, %v3831_v56 }
0x229a   :  { %v3895_v52 = vpop.permute.xlu1 %3894  ;;  %v3825_v53 = vpop.xlane.xlu0 %3824 }
0x229b   :  { %6369 = vpow2.f32 %v3846_v9  ;;  %v3833_v54 = vsub.f32 %v3801_v36, %v3825_v53  ;;  %5916 = vmatpush3.bf16.msra.mxu1 %v3895_v52 }
0x229c   :  { %v6360_v57 = vpop.eup %6359  ;;  %6371 = vpow2.f32 %v3844_v51  ;;  %5927 = vmatprep.subr.bf16.mxu1 %v6467_v1 }
0x229d   :  { %v3848_v58 = vmul.f32 1.442695, %v3833_v54  ;;  %v3850_v59 = vsel %vm351_vm3, %v6360_v57, 0.0  ;;  %v6185_v54 = vld [vmem:[%s7700_s10 + $0x18] sm:$0xff]  }
0x229e   :  { %3851 = vadd.xlane.f32.xlu1 %v3850_v59 }
0x229f   :  { %6373 = vpow2.f32 %v3848_v58 }
0x22a0   :  { %v6362_v60 = vpop.eup %6361 }
0x22a1   :  { %v6364_v62 = vpop.eup %6363  ;;  %v3856_v18 = vsel %vm351_vm3, %v6362_v60, 0.0 }
0x22a2   :  { %3857 = vadd.xlane.f32.xlu1 %v3856_v18  ;;  %v3853_v7 = vsel %vm351_vm3, %v6364_v62, 0.0 }
0x22a3   :  { %3854 = vadd.xlane.f32.xlu0 %v3853_v7 }
0x22a4   :  { %v6366_v0 = vpop.eup %6365 }
0x22a5   :  { %v6368_v19 = vpop.eup %6367  ;;  %v3859_v5 = vsel %vm351_vm3, %v6366_v0, 0.0 }
0x22a6   :  { %v3862_v10 = vsel %vm351_vm3, %v6368_v19, 0.0 }
0x22a7   :  { %3863 = vadd.xlane.f32.xlu1 %v3862_v10  ;;  %3860 = vadd.xlane.f32.xlu0 %v3859_v5 }
0x22a8   :  { %v6370_v11 = vpop.eup %6369 }
0x22a9   :  { %v6372_v12 = vpop.eup %6371  ;;  %v3868_v13 = vsel %vm351_vm3, %v6370_v11, 0.0 }
0x22aa   :  { %v3865_v14 = vsel %vm351_vm3, %v6372_v12, 0.0 }
0x22ab   :  { %3869 = vadd.xlane.f32.xlu1 %v3868_v13  ;;  %3866 = vadd.xlane.f32.xlu0 %v3865_v14 }
0x22ac   :  { %v6374_v46 = vpop.eup %6373 }
0x22ad   :  { %v3871_v6 = vsel %vm351_vm3, %v6374_v46, 0.0 }
0x22af   :  { %3872 = vadd.xlane.f32.xlu0 %v3871_v6 }
0x22bc   :  { %3988 = vrot.lane.b32.xlu1 %v7372_v30, %s7732_s7 }
0x22c0   :  { %4035 = vrot.lane.b32.xlu1 %v7372_v30, %s7726_s29 }
0x22c5   :  { %3941 = vrot.lane.b32.xlu0 %v7372_v30, %s7733_s3 }
0x2327   :  { %v3852_v15 = vpop.xlane.xlu1 %3851 }
0x2328   :  { %6375 = vrcp.f32 %v3852_v15 }
0x232b   :  { %v3858_v2 = vpop.xlane.xlu1 %3857 }
0x232c   :  { %v3855_v16 = vpop.xlane.xlu0 %3854 }
0x232d   :  { %6377 = vrcp.f32 %v3855_v16 }
0x232e   :  { %6379 = vrcp.f32 %v3858_v2 }
0x2330   :  { %v3864_v47 = vpop.xlane.xlu1 %3863  ;;  %v3861_v21 = vpop.xlane.xlu0 %3860 }
0x2331   :  { %6381 = vrcp.f32 %v3861_v21 }
0x2332   :  { %6383 = vrcp.f32 %v3864_v47 }
0x2334   :  { %v3870_v20 = vpop.xlane.xlu1 %3869  ;;  %v3867_v36 = vpop.xlane.xlu0 %3866 }
0x2335   :  { %6385 = vrcp.f32 %v3867_v36  ;;  %v6376_v22 = vpop.eup %6375 }
0x2336   :  { %6387 = vrcp.f32 %v3870_v20  ;;  %v3882_v4 = vmul.f32 %v6376_v22, %v6360_v57 }
0x2338   :  { %v3873_v37 = vpop.xlane.xlu0 %3872  ;;  %v3989_v27 = vpop.permute.xlu1 %3988 }
0x2339   :  { %6389 = vrcp.f32 %v3873_v37 }
0x233a   :  { %v6378_v44 = vpop.eup %6377 }
0x233b   :  { %v3883_v30 = vmul.f32 %v6378_v44, %v6364_v62  ;;  %v6380_v26 = vpop.eup %6379 }
0x233c   :  { %v3942_v24 = vpop.permute.xlu0 %3941  ;;  %v3884_v63 = vmul.f32 %v6380_v26, %v6362_v60  ;;  %v4036_v49 = vpop.permute.xlu1 %4035  ;;  %v6186_v60 = vld [vmem:[%s7700_s10 + $0x10] sm:$0xff]  }
0x233d   :  { %5922 = vmatpush3.bf16.msra.mxu0 %v3942_v24  ;;  %v3890_v25 = vpack.c.bf16 %v3883_v30, %v3882_v4 }
0x233e   :  { %5933 = vmatprep.subr.bf16.mxu0 %v6467_v1  ;;  %v6382_v28 = vpop.eup %6381 }
0x233f   :  { %5918 = vmatmul.mubr.msk.bf16.vlgmr.msra.gmra.mxu1 %vm351_vm3, %v3890_v25  ;;  %v3885_v31 = vmul.f32 %v6382_v28, %v6366_v0  ;;  %v6384_v32 = vpop.eup %6383 }
0x2340   :  { %5928 = vmatpush3.bf16.msra.mxu1 %v3989_v27  ;;  %5929 = vmatprep.mubr.msk.bf16.mxu1 %vm6468_vm0, %v6467_v1  ;;  %v3886_v45 = vmul.f32 %v6384_v32, %v6368_v19  ;;  %v6187_v27 = vld [vmem:[%s7702_s12 + $0x18] sm:$0xff]  }
0x2341   :  { %5939 = vmatprep.subr.bf16.mxu1 %v6467_v1  ;;  %v3891_v55 = vpack.c.bf16 %v3885_v31, %v3884_v63  ;;  %v6188_v63 = vld [vmem:[%s7702_s12 + $0x10] sm:$0xff]   ;;  %v7490_v31 = vld [vmem:[%s7706_s16 + $0x20] sm:$0xff] }
0x2342   :  { %v6386_v41 = vpop.eup %6385  ;;  %v4116_v32 = vrot.slane %v7490_v31, %v6607_v8 }
0x2343   :  { %v6388_v42 = vpop.eup %6387  ;;  %v3887_v48 = vmul.f32 %v6386_v41, %v6372_v12  ;;  %5924 = vmatmul.mubr.msk.bf16.vlgmr.msra.gmra.mxu0 %vm351_vm3, %v3891_v55 }
0x2344   :  { %5934 = vmatpush3.bf16.msra.mxu0 %v4036_v49  ;;  %5935 = vmatprep.mubr.msk.bf16.mxu0 %vm6468_vm0, %v6467_v1  ;;  %v3888_v33 = vmul.f32 %v6388_v42, %v6370_v11 }
0x2345   :  { %v3892_v29 = vpack.c.bf16 %v3887_v48, %v3886_v45  ;;  %5947 = vmatprep.subr.bf16.mxu0 %v6467_v1 }
0x2346   :  { %v6390_v39 = vpop.eup %6389 }
0x2347   :  { %v3889_v56 = vmul.f32 %v6390_v39, %v6374_v46  ;;  %5930 = vmatmul.mubr.msk.bf16.vlgmr.msra.gmra.mxu1 %vm351_vm3, %v3892_v29 }
0x2348   :  { %5943 = vmatprep.mubr.msk.bf16.mxu1 %vm6468_vm0, %v6467_v1  ;;  %5940 = vmatpush3.bf16.msra.mxu1 %v6185_v54 }
0x2349   :  { %v3893_v9 = vpack.c.bf16 %v3889_v56, %v3888_v33  ;;  %5941 = vmatprep.subr.bf16.mxu1 %v6467_v1  ;;  %v4288_v56 = vrot.slane %v7490_v31, %v6780_v50 }
0x234b   :  { %5936 = vmatmul.mubr.msk.bf16.vlgmr.msra.gmra.mxu0 %vm351_vm3, %v3893_v9 }
0x234c   :  { %5951 = vmatprep.mubr.msk.bf16.mxu0 %vm6468_vm0, %v6467_v1  ;;  %5942 = vmatpush3.bf16.msra.mxu1 %v6186_v60 }
0x234d   :  { %5955 = vmatprep.subr.bf16.mxu1 %v6467_v1 }
0x23ff   :  { %v3934_v51 = vpop.f32.mrf.mxu1 }
0x2401   :  { %v5919_v52 = vpop.f32.mrf.mxu1 }
0x2403   :  { %v3937_v53 = vpop.f32.mrf.mxu1  ;;  %v3981_v57 = vpop.f32.mrf.mxu0 }
0x2405   :  { %v5920_v58 = vpop.f32.mrf.mxu1  ;;  %v5925_v59 = vpop.f32.mrf.mxu0 }
0x2407   :  { %v3984_v62 = vpop.f32.mrf.mxu0  ;;  %v4028_v18 = vpop.f32.mrf.mxu1 }
0x2408   :  { %v6117_v7 = vpack.i.bf16 %v3984_v62, %v3981_v57 }
0x2409   :  { %v5926_v0 = vpop.f32.mrf.mxu0  ;;  %v5931_v19 = vpop.f32.mrf.mxu1 }
0x240a   :  { %6118 = vrot.lane.b32.xlu0 %v6117_v7, %s7727_s5 }
0x240b   :  { %v4031_v5 = vpop.f32.mrf.mxu1  ;;  %v4075_v10 = vpop.f32.mrf.mxu0 }
0x240c   :  { %v6122_v11 = vpack.i.bf16 %v4031_v5, %v4028_v18 }
0x240d   :  { %v5932_v12 = vpop.f32.mrf.mxu1  ;;  %v5937_v13 = vpop.f32.mrf.mxu0 }
0x240e   :  { %6123 = vrot.lane.b32.xlu1 %v6122_v11, %s7728_s28  ;;  %v6190_v11 = vld [vmem:[%s7701_s11 + $0x10] sm:$0xff]  }
0x240f   :  { %v4078_v14 = vpop.f32.mrf.mxu0 }
0x2410   :  { %v6127_v46 = vpack.i.bf16 %v4078_v14, %v4075_v10  ;;  %v6189_v10 = vld [vmem:[%s7701_s11 + $0x18] sm:$0xff]  }
0x2411   :  { %v5938_v6 = vpop.f32.mrf.mxu0  ;;  %5948 = vmatpush3.bf16.msra.mxu0 %v6189_v10 }
0x2412   :  { %6128 = vrot.lane.b32.xlu0 %v6127_v46, %s7729_s6  ;;  %5949 = vmatprep.subr.bf16.mxu0 %v6467_v1 }
0x2415   :  { %5950 = vmatpush3.bf16.msra.mxu0 %v6190_v11 }
0x2416   :  { %5963 = vmatprep.subr.bf16.mxu0 %v6467_v1 }
0x247c   :  { %v6119_v15 = vpop.permute.xlu0 %6118 }
0x247d   :  { %v6121_v16 = vunpack.i.h.bf16 %v6119_v15  ;;  %v6120_v47 = vunpack.i.l.bf16 %v6119_v15 }
0x247f   :  { %v4106_v22 = vsel %vm142_vm2, %v3934_v51, %v6120_v47  ;;  %v4107_v37 = vsel %vm142_vm2, %v3937_v53, %v6121_v16 }
0x2480   :  { %v6124_v2 = vpop.permute.xlu1 %6123 }
0x2481   :  { %v6126_v21 = vunpack.i.h.bf16 %v6124_v2  ;;  %v6125_v20 = vunpack.i.l.bf16 %v6124_v2 }
0x2483   :  { %v4109_v30 = vsel %vm351_vm3, %v4107_v37, %v6126_v21  ;;  %v4108_v24 = vsel %vm351_vm3, %v4106_v22, %v6125_v20  ;;  %v4204_v20 = vrot.slane %v7490_v31, %v6805_v35 }
0x2484   :  { %v6129_v36 = vpop.permute.xlu0 %6128 }
0x2485   :  { %v6131_v44 = vunpack.i.h.bf16 %v6129_v36  ;;  %v6130_v4 = vunpack.i.l.bf16 %v6129_v36 }
0x2487   :  { %v4110_v26 = vsel %vm660_vm4, %v4108_v24, %v6130_v4  ;;  %v4111_v25 = vsel %vm660_vm4, %v4109_v30, %v6131_v44  ;;  %v4210_v44 = vrot.slane %v7490_v31, %v6810_v40  ;;  %v4222_v40 = vrot.slane %v7490_v31, %v6732_v17 }
0x2488   :  { %v4112_v28 = vpack.c.bf16 %v4111_v25, %v4110_v26 }
0x248a   :  { %5944 = vmatmul.mubr.msk.bf16.vlgmr.msra.gmra.mxu1 %vm89_vm1, %v4112_v28 }
0x248b   :  { %5956 = vmatpush3.bf16.msra.mxu1 %v6187_v27  ;;  %5959 = vmatprep.mubr.msk.bf16.mxu1 %vm6468_vm0, %v6467_v1 }
0x248c   :  { %5957 = vmatprep.subr.bf16.mxu1 %v6467_v1 }
0x248f   :  { %5958 = vmatpush3.bf16.msra.mxu1 %v6188_v63 }
0x2490   :  { %5969 = vmatprep.subr.bf16.mxu1 %v6467_v1 }
0x2492   :  { %5960 = vmatmul.mubr.msk.bf16.vlgmr.msra.gmra.mxu1 %vm89_vm1, %v7177_v43 }
0x2493   :  { %5971 = vmatprep.mubr.msk.bf16.mxu1 %vm6468_vm0, %v6467_v1 }
0x254a   :  { %v4166_v55 = vpop.f32.mrf.mxu1 }
0x254b   :  { %v4167_v41 = vadd.f32 %v4166_v55, %v4116_v32 }
0x254c   :  { %v5945_v42 = vpop.f32.mrf.mxu1 }
0x254d   :  { %v4173_v45 = vadd.f32 %v4167_v41, %v7361_v23 }
0x254e   :  { %v4169_v48 = vpop.f32.mrf.mxu1 }
0x254f   :  { %v4170_v49 = vadd.f32 %v4169_v48, %v4116_v32  ;;  %v4175_v43 = vsel %vm89_vm1, %v4173_v45, 0.0 }
0x2550   :  { %4176 = vadd.xlane.f32.xlu1 %v4175_v43  ;;  %v5946_v39 = vpop.f32.mrf.mxu1 }
0x2551   :  { %v4174_v29 = vadd.f32 %v4170_v49, %v7363_v3 }
0x2552   :  { %v4335_v33 = vpop.f32.mrf.mxu1 }
0x2553   :  { %v4178_v9 = vsel %vm89_vm1, %v4174_v29, 0.0  ;;  %v4336_v53 = vadd.f32 %v4335_v33, %v4288_v56 }
0x2554   :  { %4179 = vadd.xlane.f32.xlu0 %v4178_v9  ;;  %v5961_v51 = vpop.f32.mrf.mxu1 }
0x2556   :  { %v4338_v52 = vpop.f32.mrf.mxu1 }
0x2557   :  { %v4339_v54 = vadd.f32 %v4338_v52, %v4288_v56  ;;  %v6443_v56 = vld [vmem:[%s7694_s4] sm:$0xff] }
0x2558   :  { %v5962_v23 = vpop.f32.mrf.mxu1 }
0x2559   :  { %v7500_v57 = vpack.c.bf16 %v4339_v54, %v4336_v53  ;;  %v6444_v54 = vld [vmem:[%s7694_s4 + $0x8] sm:$0xff] }
0x255b   :  { %v4352_v25 = vsel %vm142_vm2, %v7500_v57, 0 }
0x25d9   :  { %v4177_v58 = vpop.xlane.xlu1 %4176 }
0x25da   :  { %v4181_v59 = vmul.f32 0.03125, %v4177_v58 }
0x25dc   :  { %v4183_v60 = vsub.f32 %v4173_v45, %v4181_v59 }
0x25dd   :  { %v4180_v62 = vpop.xlane.xlu0 %4179 }
0x25de   :  { %v4182_v18 = vmul.f32 0.03125, %v4180_v62  ;;  %v4185_v3 = vmul.f32 %v4183_v60, %v4183_v60 }
0x25e0   :  { %v4184_v7 = vsub.f32 %v4174_v29, %v4182_v18  ;;  %v4187_v0 = vsel %vm89_vm1, %v4185_v3, 0.0 }
0x25e1   :  { %4188 = vadd.xlane.f32.xlu0 %v4187_v0 }
0x25e2   :  { %v4186_v19 = vmul.f32 %v4184_v7, %v4184_v7 }
0x25e4   :  { %v4190_v5 = vsel %vm89_vm1, %v4186_v19, 0.0 }
0x25e5   :  { %4191 = vadd.xlane.f32.xlu1 %v4190_v5 }
0x25f6   :  { %4450 = vrot.lane.b32.xlu1 %v7500_v57, %s6473_s24 }
0x25f7   :  { %4399 = vrot.lane.b32.xlu0 %v7500_v57, %s6471_s22 }
0x25fb   :  { %4501 = vrot.lane.b32.xlu0 %v7500_v57, %s6475_s26 }
0x266a   :  { %v4189_v12 = vpop.xlane.xlu0 %4188 }
0x266b   :  { %v4193_v13 = vmul.f32 0.03125, %v4189_v12 }
0x266d   :  { %v4195_v14 = vadd.f32 1e-05, %v4193_v13 }
0x266e   :  { %v4192_v46 = vpop.xlane.xlu1 %4191  ;;  %v4400_v6 = vpop.permute.xlu0 %4399 }
0x266f   :  { %6391 = vrsqrt.f32 %v4195_v14  ;;  %v4194_v15 = vmul.f32 0.03125, %v4192_v46  ;;  %v4405_v2 = vsel %vm142_vm2, %v4400_v6, 0 }
0x2670   :  { %5970 = vmatpush3.bf16.xpose.msra.mxu1 %v4405_v2 }
0x2671   :  { %v4196_v16 = vadd.f32 1e-05, %v4194_v15  ;;  %5981 = vmatprep.subr.bf16.mxu1 %v6467_v1 }
0x2672   :  { %v4451_v41 = vpop.permute.xlu1 %4450  ;;  %v4502_v48 = vpop.permute.xlu0 %4501 }
0x2673   :  { %6393 = vrsqrt.f32 %v4196_v16  ;;  %v4456_v45 = vsel %vm142_vm2, %v4451_v41, 0  ;;  %v4507_v43 = vsel %vm142_vm2, %v4502_v48, 0 }
0x267c   :  { %v6392_v47 = vpop.eup %6391 }
0x267d   :  { %v4199_v21 = vmul.f32 %v6392_v47, %v4183_v60 }
0x267f   :  { %v4205_v37 = vmul.f32 %v4204_v20, %v4199_v21 }
0x2680   :  { %v6394_v36 = vpop.eup %6393 }
0x2681   :  { %v4200_v22 = vmul.f32 %v6394_v36, %v4184_v7  ;;  %v7524_v30 = vadd.f32 %v4210_v44, %v4205_v37 }
0x2683   :  { %v4206_v4 = vmul.f32 %v4204_v20, %v4200_v22 }
0x2685   :  { %v7526_v24 = vadd.f32 %v4210_v44, %v4206_v4 }
0x2687   :  { %v4218_v26 = vpack.c.bf16 %v7526_v24, %v7524_v30 }
0x2689   :  { %5952 = vmatmul.mubr.msk.bf16.vlgmr.msra.gmra.mxu0 %vm89_vm1, %v4218_v26 }
0x268a   :  { %5964 = vmatpush3.bf16.xpose.msra.mxu0 %v4352_v25  ;;  %5965 = vmatprep.mubr.msk.bf16.mxu0 %vm6468_vm0, %v6467_v1 }
0x268b   :  { %5975 = vmatprep.subr.bf16.mxu0 %v6467_v1 }
0x2749   :  { %v4272_v35 = vpop.f32.mrf.mxu0 }
0x274a   :  { %v4273_v63 = vadd.f32 %v4272_v35, %v4222_v40 }
0x274b   :  { %v5953_v27 = vpop.f32.mrf.mxu0 }
0x274d   :  { %v4275_v28 = vpop.f32.mrf.mxu0 }
0x274e   :  { %v4276_v32 = vadd.f32 %v4275_v28, %v4222_v40 }
0x274f   :  { %v5954_v55 = vpop.f32.mrf.mxu0 }
0x2750   :  { %v4279_v42 = vpack.c.bf16 %v4276_v32, %v4273_v63 }
0x2752   :  { %4396 = vrot.lane.b32.xlu1 %v4279_v42, %s6471_s22  ;;  %4499 = vrot.lane.b32.xlu0 %v4279_v42, %s6475_s26 }
0x2753   :  { %5966 = vmatmul.mubr.msk.bf16.vlgmr.msra.gmra.mxu0 %vm142_vm2, %v4279_v42 }
0x2754   :  { %5976 = vmatpush3.bf16.xpose.msra.mxu0 %v4456_v45  ;;  %5977 = vmatprep.mubr.msk.bf16.mxu0 %vm6468_vm0, %v6467_v1 }
0x2755   :  { %5987 = vmatprep.subr.bf16.mxu0 %v6467_v1 }
0x2756   :  { %4448 = vrot.lane.b32.xlu1 %v4279_v42, %s6473_s24 }
0x27c4   :  { %v4397_v49 = vpop.permute.xlu1 %4396  ;;  %v4500_v29 = vpop.permute.xlu0 %4499 }
0x27c5   :  { %5972 = vmatmul.mubr.msk.bf16.vlgmr.msra.gmra.mxu1 %vm142_vm2, %v4397_v49 }
0x27c6   :  { %5982 = vmatpush3.bf16.xpose.msra.mxu1 %v4507_v43  ;;  %5983 = vmatprep.mubr.msk.bf16.mxu1 %vm6468_vm0, %v6467_v1 }
0x27c7   :  { %5993 = vmatprep.subr.bf16.mxu1 %v6467_v1 }
0x27c8   :  { %v4449_v39 = vpop.permute.xlu1 %4448 }
0x27c9   :  { %5978 = vmatmul.mubr.msk.bf16.vlgmr.msra.gmra.mxu0 %vm142_vm2, %v4449_v39 }
0x27ca   :  { %5989 = vmatprep.mubr.msk.bf16.mxu0 %vm6468_vm0, %v6467_v1 }
0x27cd   :  { %5984 = vmatmul.mubr.msk.bf16.vlgmr.msra.gmra.mxu1 %vm142_vm2, %v4500_v29 }
0x27ce   :  { %5995 = vmatprep.mubr.msk.bf16.mxu1 %vm6468_vm0, %v6467_v1 }
0x2813   :  { %v4388_v33 = vpop.f32.mrf.mxu0 }
0x2814   :  { %v4550_v9 = vadd.f32 %v6443_v56, %v4388_v33 }
0x2815   :  { %v5967_v51 = vpop.f32.mrf.mxu0 }
0x2816   :  { %v4558_v52 = vsel %vm351_vm3, %v4550_v9, -inf }
0x2817   :  { %4559 = vmax.xlane.f32.xlu1 %v4558_v52  ;;  %v4391_v53 = vpop.f32.mrf.mxu0 }
0x2818   :  { %v4551_v23 = vadd.f32 %v6444_v54, %v4391_v53 }
0x2819   :  { %v5968_v58 = vpop.f32.mrf.mxu0 }
0x281a   :  { %v4561_v59 = vsel %vm351_vm3, %v4551_v23, -inf }
0x281b   :  { %4562 = vmax.xlane.f32.xlu0 %v4561_v59 }
0x2885   :  { %v4441_v60 = vpop.f32.mrf.mxu1 }
0x2886   :  { %v4552_v62 = vadd.f32 %v6443_v56, %v4441_v60 }
0x2887   :  { %v5973_v18 = vpop.f32.mrf.mxu1 }
0x2888   :  { %v4564_v3 = vsel %vm351_vm3, %v4552_v62, -inf }
0x2889   :  { %v4492_v7 = vpop.f32.mrf.mxu0  ;;  %4565 = vmax.xlane.f32.xlu0 %v4564_v3  ;;  %v4444_v0 = vpop.f32.mrf.mxu1 }
0x288a   :  { %v4554_v19 = vadd.f32 %v6443_v56, %v4492_v7  ;;  %v4553_v5 = vadd.f32 %v6444_v54, %v4444_v0 }
0x288b   :  { %v5974_v10 = vpop.f32.mrf.mxu1  ;;  %v5979_v11 = vpop.f32.mrf.mxu0 }
0x288c   :  { %v4570_v12 = vsel %vm351_vm3, %v4554_v19, -inf  ;;  %v4567_v13 = vsel %vm351_vm3, %v4553_v5, -inf }
0x288d   :  { %v4495_v14 = vpop.f32.mrf.mxu0  ;;  %4571 = vmax.xlane.f32.xlu0 %v4570_v12  ;;  %4568 = vmax.xlane.f32.xlu1 %v4567_v13  ;;  %v4543_v46 = vpop.f32.mrf.mxu1 }
0x288e   :  { %v4555_v6 = vadd.f32 %v6444_v54, %v4495_v14  ;;  %v4556_v15 = vadd.f32 %v6443_v56, %v4543_v46 }
0x288f   :  { %v5980_v2 = vpop.f32.mrf.mxu0  ;;  %v5985_v16 = vpop.f32.mrf.mxu1 }
0x2890   :  { %v4573_v47 = vsel %vm351_vm3, %v4555_v6, -inf  ;;  %v4576_v21 = vsel %vm351_vm3, %v4556_v15, -inf }
0x2891   :  { %4574 = vmax.xlane.f32.xlu1 %v4573_v47  ;;  %4577 = vmax.xlane.f32.xlu0 %v4576_v21  ;;  %v4546_v20 = vpop.f32.mrf.mxu1 }
0x2892   :  { %v4557_v36 = vadd.f32 %v6444_v54, %v4546_v20 }
0x2893   :  { %v5986_v22 = vpop.f32.mrf.mxu1 }
0x2894   :  { %v4579_v37 = vsel %vm351_vm3, %v4557_v36, -inf }
0x2895   :  { %4580 = vmax.xlane.f32.xlu1 %v4579_v37 }
0x28a0   :  { %v4560_v44 = vpop.xlane.xlu1 %4559 }
0x28a1   :  { %v4582_v4 = vsub.f32 %v4550_v9, %v4560_v44 }
0x28a3   :  { %v4590_v25 = vmul.f32 1.442695, %v4582_v4 }
0x28a4   :  { %v4563_v26 = vpop.xlane.xlu0 %4562 }
0x28a5   :  { %v4583_v35 = vsub.f32 %v4551_v23, %v4563_v26  ;;  %6395 = vpow2.f32 %v4590_v25 }
0x28a6   :  { %4697 = vrot.lane.b32.xlu1 %v7500_v57, %s6472_s23 }
0x28a7   :  { %4650 = vrot.lane.b32.xlu0 %v7500_v57, %s6470_s21  ;;  %v4592_v40 = vmul.f32 1.442695, %v4583_v35 }
0x28a9   :  { %6397 = vpow2.f32 %v4592_v40 }
0x28b2   :  { %v6396_v27 = vpop.eup %6395 }
0x28b3   :  { %v4606_v28 = vsel %vm351_vm3, %v6396_v27, 0.0 }
0x28b6   :  { %v6398_v63 = vpop.eup %6397 }
0x28b7   :  { %v4609_v32 = vsel %vm351_vm3, %v6398_v63, 0.0 }
0x28c6   :  { %4607 = vadd.xlane.f32.xlu0 %v4606_v28 }
0x28ca   :  { %4610 = vadd.xlane.f32.xlu1 %v4609_v32 }
0x2912   :  { %v4566_v55 = vpop.xlane.xlu0 %4565 }
0x2913   :  { %v4584_v41 = vsub.f32 %v4552_v62, %v4566_v55 }
0x2915   :  { %v4594_v42 = vmul.f32 1.442695, %v4584_v41 }
0x2916   :  { %v4572_v45 = vpop.xlane.xlu0 %4571  ;;  %v4569_v48 = vpop.xlane.xlu1 %4568 }
0x2917   :  { %6399 = vpow2.f32 %v4594_v42  ;;  %v4586_v49 = vsub.f32 %v4554_v19, %v4572_v45  ;;  %v4585_v43 = vsub.f32 %v4553_v5, %v4569_v48 }
0x2919   :  { %v4598_v39 = vmul.f32 1.442695, %v4586_v49  ;;  %v4596_v29 = vmul.f32 1.442695, %v4585_v43 }
0x291a   :  { %v4575_v33 = vpop.xlane.xlu1 %4574  ;;  %v4578_v56 = vpop.xlane.xlu0 %4577 }
0x291b   :  { %6401 = vpow2.f32 %v4598_v39  ;;  %v4587_v9 = vsub.f32 %v4555_v6, %v4575_v33  ;;  %v4588_v51 = vsub.f32 %v4556_v15, %v4578_v56 }
0x291c   :  { %6403 = vpow2.f32 %v4596_v29 }
0x291d   :  { %v4600_v52 = vmul.f32 1.442695, %v4587_v9  ;;  %v4602_v53 = vmul.f32 1.442695, %v4588_v51  ;;  %v6191_v51 = vld [vmem:[%s7703_s13 + $0x18] sm:$0xff]  }
0x291e   :  { %v4651_v54 = vpop.permute.xlu0 %4650  ;;  %v4581_v23 = vpop.xlane.xlu1 %4580 }
0x291f   :  { %6405 = vpow2.f32 %v4600_v52  ;;  %v4589_v58 = vsub.f32 %v4557_v36, %v4581_v23  ;;  %5988 = vmatpush3.bf16.msra.mxu0 %v4651_v54  ;;  %v6192_v54 = vld [vmem:[%s7703_s13 + $0x10] sm:$0xff]  }
0x2920   :  { %6407 = vpow2.f32 %v4602_v53  ;;  %5999 = vmatprep.subr.bf16.mxu0 %v6467_v1 }
0x2921   :  { %v4604_v59 = vmul.f32 1.442695, %v4589_v58 }
0x2922   :  { %v4698_v60 = vpop.permute.xlu1 %4697 }
0x2923   :  { %6409 = vpow2.f32 %v4604_v59  ;;  %5994 = vmatpush3.bf16.msra.mxu1 %v4698_v60 }
0x2924   :  { %v6400_v62 = vpop.eup %6399  ;;  %6005 = vmatprep.subr.bf16.mxu1 %v6467_v1 }
0x2925   :  { %v4612_v18 = vsel %vm351_vm3, %v6400_v62, 0.0 }
0x2926   :  { %4613 = vadd.xlane.f32.xlu0 %v4612_v18 }
0x2928   :  { %v6402_v3 = vpop.eup %6401 }
0x2929   :  { %v6404_v7 = vpop.eup %6403  ;;  %v4618_v0 = vsel %vm351_vm3, %v6402_v3, 0.0 }
0x292a   :  { %4619 = vadd.xlane.f32.xlu0 %v4618_v0  ;;  %v4615_v19 = vsel %vm351_vm3, %v6404_v7, 0.0 }
0x292b   :  { %4616 = vadd.xlane.f32.xlu1 %v4615_v19 }
0x292c   :  { %v6406_v5 = vpop.eup %6405 }
0x292d   :  { %v6408_v10 = vpop.eup %6407  ;;  %v4621_v11 = vsel %vm351_vm3, %v6406_v5, 0.0 }
0x292e   :  { %v4624_v12 = vsel %vm351_vm3, %v6408_v10, 0.0 }
0x292f   :  { %4625 = vadd.xlane.f32.xlu0 %v4624_v12  ;;  %4622 = vadd.xlane.f32.xlu1 %v4621_v11 }
0x2930   :  { %v6410_v13 = vpop.eup %6409 }
0x2931   :  { %v4627_v14 = vsel %vm351_vm3, %v6410_v13, 0.0 }
0x2933   :  { %4628 = vadd.xlane.f32.xlu1 %v4627_v14 }
0x2944   :  { %4744 = vrot.lane.b32.xlu1 %v7500_v57, %s6469_s20 }
0x2945   :  { %4791 = vrot.lane.b32.xlu0 %v7500_v57, %s6474_s25 }
0x294f   :  { %v4608_v46 = vpop.xlane.xlu0 %4607 }
0x2950   :  { %6411 = vrcp.f32 %v4608_v46 }
0x2953   :  { %v4611_v6 = vpop.xlane.xlu1 %4610 }
0x2954   :  { %6413 = vrcp.f32 %v4611_v6 }
0x295d   :  { %v6412_v15 = vpop.eup %6411 }
0x295e   :  { %v4638_v16 = vmul.f32 %v6412_v15, %v6396_v27 }
0x2961   :  { %v6414_v2 = vpop.eup %6413 }
0x2962   :  { %v4639_v47 = vmul.f32 %v6414_v2, %v6398_v63 }
0x2964   :  { %v4646_v21 = vpack.c.bf16 %v4639_v47, %v4638_v16 }
0x2966   :  { %5990 = vmatmul.mubr.msk.bf16.vlgmr.msra.gmra.mxu0 %vm351_vm3, %v4646_v21 }
0x2967   :  { %6001 = vmatprep.mubr.msk.bf16.mxu0 %vm6468_vm0, %v6467_v1 }
0x29af   :  { %v4614_v20 = vpop.xlane.xlu0 %4613 }
0x29b0   :  { %6415 = vrcp.f32 %v4614_v20 }
0x29b3   :  { %v4620_v36 = vpop.xlane.xlu0 %4619 }
0x29b4   :  { %v4617_v22 = vpop.xlane.xlu1 %4616 }
0x29b5   :  { %6417 = vrcp.f32 %v4617_v22 }
0x29b6   :  { %6419 = vrcp.f32 %v4620_v36 }
0x29b8   :  { %v4626_v57 = vpop.xlane.xlu0 %4625  ;;  %v4623_v37 = vpop.xlane.xlu1 %4622 }
0x29b9   :  { %6421 = vrcp.f32 %v4623_v37 }
0x29ba   :  { %6423 = vrcp.f32 %v4626_v57 }
0x29bc   :  { %v4629_v44 = vpop.xlane.xlu1 %4628  ;;  %v4792_v32 = vpop.permute.xlu0 %4791 }
0x29bd   :  { %6425 = vrcp.f32 %v4629_v44  ;;  %v6416_v4 = vpop.eup %6415 }
0x29be   :  { %v4640_v35 = vmul.f32 %v6416_v4, %v6400_v62  ;;  %v4872_v4 = vrot.slane %v7490_v31, %v6788_v61 }
0x29c0   :  { %v4745_v26 = vpop.permute.xlu1 %4744 }
0x29c1   :  { %6000 = vmatpush3.bf16.msra.mxu0 %v4745_v26 }
0x29c2   :  { %v6418_v25 = vpop.eup %6417  ;;  %6011 = vmatprep.subr.bf16.mxu0 %v6467_v1 }
0x29c3   :  { %v4641_v40 = vmul.f32 %v6418_v25, %v6404_v7  ;;  %v6420_v27 = vpop.eup %6419 }
0x29c4   :  { %v4642_v41 = vmul.f32 %v6420_v27, %v6402_v3 }
0x29c5   :  { %v4647_v28 = vpack.c.bf16 %v4641_v40, %v4640_v35 }
0x29c6   :  { %v6422_v63 = vpop.eup %6421 }
0x29c7   :  { %5996 = vmatmul.mubr.msk.bf16.vlgmr.msra.gmra.mxu1 %vm351_vm3, %v4647_v28  ;;  %v6424_v55 = vpop.eup %6423  ;;  %v4643_v42 = vmul.f32 %v6422_v63, %v6406_v5 }
0x29c8   :  { %6006 = vmatpush3.bf16.msra.mxu1 %v4792_v32  ;;  %6007 = vmatprep.mubr.msk.bf16.mxu1 %vm6468_vm0, %v6467_v1  ;;  %v4644_v49 = vmul.f32 %v6424_v55, %v6408_v10 }
0x29c9   :  { %6019 = vmatprep.subr.bf16.mxu1 %v6467_v1  ;;  %v4648_v48 = vpack.c.bf16 %v4643_v42, %v4642_v41 }
0x29ca   :  { %v6426_v45 = vpop.eup %6425 }
0x29cb   :  { %v4645_v43 = vmul.f32 %v6426_v45, %v6410_v13  ;;  %6002 = vmatmul.mubr.msk.bf16.vlgmr.msra.gmra.mxu0 %vm351_vm3, %v4648_v48 }
0x29cc   :  { %6015 = vmatprep.mubr.msk.bf16.mxu0 %vm6468_vm0, %v6467_v1  ;;  %6012 = vmatpush3.bf16.msra.mxu0 %v6191_v51  ;;  %v6195_v51 = vld [vmem:[%s7705_s15 + $0x38] sm:$0xff]  }
0x29cd   :  { %v4649_v39 = vpack.c.bf16 %v4645_v43, %v4644_v49  ;;  %6013 = vmatprep.subr.bf16.mxu0 %v6467_v1 }
0x29cf   :  { %6008 = vmatmul.mubr.msk.bf16.vlgmr.msra.gmra.mxu1 %vm351_vm3, %v4649_v39 }
0x29d0   :  { %6023 = vmatprep.mubr.msk.bf16.mxu1 %vm6468_vm0, %v6467_v1  ;;  %6014 = vmatpush3.bf16.msra.mxu0 %v6192_v54 }
0x29d1   :  { %6027 = vmatprep.subr.bf16.mxu0 %v6467_v1 }
0x2a26   :  { %v4690_v29 = vpop.f32.mrf.mxu0 }
0x2a28   :  { %v5991_v33 = vpop.f32.mrf.mxu0 }
0x2a2a   :  { %v4693_v56 = vpop.f32.mrf.mxu0 }
0x2a2c   :  { %v5992_v9 = vpop.f32.mrf.mxu0 }
0x2a2d   :  { %v6194_v9 = vld [vmem:[%s7704_s14 + $0x10] sm:$0xff]  }
0x2a87   :  { %v4737_v52 = vpop.f32.mrf.mxu1 }
0x2a89   :  { %v5997_v53 = vpop.f32.mrf.mxu1 }
0x2a8b   :  { %v4740_v23 = vpop.f32.mrf.mxu1  ;;  %v4784_v59 = vpop.f32.mrf.mxu0 }
0x2a8c   :  { %v6132_v58 = vpack.i.bf16 %v4740_v23, %v4737_v52 }
0x2a8d   :  { %v5998_v60 = vpop.f32.mrf.mxu1  ;;  %v6003_v62 = vpop.f32.mrf.mxu0 }
0x2a8e   :  { %6133 = vrot.lane.b32.xlu1 %v6132_v58, %s7727_s5  ;;  %v7645_v60 = vld [vmem:[%s7706_s16 + $0x28] sm:$0x3f] }
0x2a8f   :  { %v4831_v18 = vpop.f32.mrf.mxu1  ;;  %v4787_v3 = vpop.f32.mrf.mxu0 }
0x2a90   :  { %v6137_v7 = vpack.i.bf16 %v4787_v3, %v4784_v59 }
0x2a91   :  { %v6009_v0 = vpop.f32.mrf.mxu1  ;;  %v6004_v19 = vpop.f32.mrf.mxu0 }
0x2a92   :  { %6138 = vrot.lane.b32.xlu0 %v6137_v7, %s7728_s28 }
0x2a93   :  { %v4834_v5 = vpop.f32.mrf.mxu1 }
0x2a94   :  { %v6142_v10 = vpack.i.bf16 %v4834_v5, %v4831_v18  ;;  %v4960_v18 = vrot.slane %v7645_v60, %v6607_v8  ;;  %v4966_v5 = vrot.slane %v7645_v60, %v6732_v17  ;;  %v6197_v8 = vld [vmem:[%s7705_s15 + $0x28] sm:$0xff]   ;;  %v6198_v17 = vld [vmem:[%s7705_s15 + $0x20] sm:$0xff]  }
0x2a95   :  { %v6010_v11 = vpop.f32.mrf.mxu1 }
0x2a96   :  { %6143 = vrot.lane.b32.xlu1 %v6142_v10, %s7729_s6 }
0x2b00   :  { %v6134_v12 = vpop.permute.xlu1 %6133 }
0x2b01   :  { %v6136_v13 = vunpack.i.h.bf16 %v6134_v12  ;;  %v6135_v14 = vunpack.i.l.bf16 %v6134_v12 }
0x2b03   :  { %v4863_v16 = vsel %vm142_vm2, %v4693_v56, %v6136_v13  ;;  %v4862_v47 = vsel %vm142_vm2, %v4690_v29, %v6135_v14  ;;  %v6196_v14 = vld [vmem:[%s7705_s15 + $0x30] sm:$0xff]   ;;  %s6483_s15 = smov [#allocation2]  }
0x2b04   :  { %v6139_v46 = vpop.permute.xlu0 %6138  ;;  %s5204_s9 = sshll.u32 %s6483_s15, 4  ;;  %s5205_s9 = int_to_ptr.vmem [resolvable:$true] %s5204_s9 }
0x2b05   :  { %v6141_v6 = vunpack.i.h.bf16 %v6139_v46  ;;  %v6140_v15 = vunpack.i.l.bf16 %v6139_v46  ;;  %v4978_v46 = vrot.slane %v7490_v31, %v6755_v34  ;;  %s6445_s2 = scalar_lea.vmem %s5205_s9, 256  ;;  %p6450_p1 = scmp.lt.s32.totalorder %s5205_s9, %s5205_s9 }
0x2b06   :  { %p6446_p0 = scmp.ne.s32.totalorder %s5205_s9, %s6445_s2  ;;  %p6451_p2 = scmp.lt.s32.totalorder %s6445_s2, %s6445_s2 }
0x2b07   :  { %v4864_v36 = vsel %vm351_vm3, %v4862_v47, %v6140_v15  ;;  %v4865_v22 = vsel %vm351_vm3, %v4863_v16, %v6141_v6 }
0x2b08   :  { %v6144_v2 = vpop.permute.xlu1 %6143  ;;  %p6452_p3 = por %p6451_p2, %p6450_p1 }
0x2b09   :  { %v6146_v21 = vunpack.i.h.bf16 %v6144_v2  ;;  %v6145_v20 = vunpack.i.l.bf16 %v6144_v2 }
0x2b0a   :  { %p6453_p4 = pnand %p6452_p3, %p6446_p0 }
0x2b0b   :  { %v4867_v57 = vsel %vm660_vm4, %v4865_v22, %v6146_v21  ;;  %v4866_v37 = vsel %vm660_vm4, %v4864_v36, %v6145_v20 }
0x2b0c   :  { %v4868_v44 = vpack.c.bf16 %v4867_v57, %v4866_v37 }
0x2b0e   :  { %6016 = vmatmul.mubr.msk.bf16.vlgmr.msra.gmra.mxu0 %vm89_vm1, %v4868_v44 }
0x2b0f   :  { %6035 = vmatprep.mubr.msk.bf16.mxu0 %vm6468_vm0, %v6467_v1  ;;  %6028 = vmatpush3.bf16.msra.mxu0 %v6195_v51 }
0x2b10   :  { %6029 = vmatprep.subr.bf16.mxu0 %v6467_v1 }
0x2b13   :  { %6030 = vmatpush3.bf16.msra.mxu0 %v6196_v14 }
0x2b14   :  { %6031 = vmatprep.subr.bf16.mxu0 %v6467_v1 }
0x2b17   :  { %6032 = vmatpush3.bf16.msra.mxu0 %v6197_v8 }
0x2b18   :  { %6033 = vmatprep.subr.bf16.mxu0 %v6467_v1 }
0x2b1b   :  { %6034 = vmatpush3.bf16.msra.mxu0 %v6198_v17 }
0x2bce   :  { %v4922_v26 = vpop.f32.mrf.mxu0 }
0x2bcf   :  { %v4923_v25 = vadd.f32 %v4922_v26, %v4872_v4 }
0x2bd0   :  { %v6017_v35 = vpop.f32.mrf.mxu0 }
0x2bd1   :  { %v4929_v40 = vadd.f32 %v4923_v25, %v7524_v30 }
0x2bd2   :  { %v4925_v27 = vpop.f32.mrf.mxu0 }
0x2bd3   :  { %v4926_v28 = vadd.f32 %v4925_v27, %v4872_v4  ;;  %v4931_v63 = vsel %vm89_vm1, %v4929_v40, 0.0 }
0x2bd4   :  { %4932 = vadd.xlane.f32.xlu0 %v4931_v63  ;;  %v6018_v32 = vpop.f32.mrf.mxu0 }
0x2bd5   :  { %v4930_v55 = vadd.f32 %v4926_v28, %v7526_v24  ;;  %v6193_v24 = vld [vmem:[%s7704_s14 + $0x18] sm:$0xff]  }
0x2bd6   :  { %6020 = vmatpush3.bf16.msra.mxu1 %v6193_v24 }
0x2bd7   :  { %v4934_v41 = vsel %vm89_vm1, %v4930_v55, 0.0  ;;  %6021 = vmatprep.subr.bf16.mxu1 %v6467_v1  ;;  %v5050_v1 = vrot.slane %v7490_v31, %v6760_v38 }
0x2bd8   :  { %4935 = vadd.xlane.f32.xlu1 %v4934_v41 }
0x2bda   :  { %6022 = vmatpush3.bf16.msra.mxu1 %v6194_v9  ;;  %v5150_v9 = vrot.slane %v7645_v60, %v6780_v50 }
0x2c5d   :  { %v4933_v42 = vpop.xlane.xlu0 %4932 }
0x2c5e   :  { %v4937_v45 = vmul.f32 0.03125, %v4933_v42 }
0x2c60   :  { %v4939_v48 = vsub.f32 %v4929_v40, %v4937_v45 }
0x2c61   :  { %v4936_v49 = vpop.xlane.xlu1 %4935 }
0x2c62   :  { %v4938_v43 = vmul.f32 0.03125, %v4936_v49  ;;  %v4941_v39 = vmul.f32 %v4939_v48, %v4939_v48 }
0x2c64   :  { %v4940_v29 = vsub.f32 %v4930_v55, %v4938_v43  ;;  %v4943_v30 = vsel %vm89_vm1, %v4941_v39, 0.0 }
0x2c65   :  { %4944 = vadd.xlane.f32.xlu0 %v4943_v30 }
0x2c66   :  { %v4942_v33 = vmul.f32 %v4940_v29, %v4940_v29 }
0x2c68   :  { %v4946_v56 = vsel %vm89_vm1, %v4942_v33, 0.0 }
0x2c69   :  { %4947 = vadd.xlane.f32.xlu0 %v4946_v56 }
0x2cee   :  { %v4945_v52 = vpop.xlane.xlu0 %4944 }
0x2cef   :  { %v4949_v53 = vmul.f32 0.03125, %v4945_v52 }
0x2cf1   :  { %v4951_v54 = vadd.f32 1e-05, %v4949_v53  ;;  %v5156_v53 = vrot.slane %v7645_v60, %v6788_v61 }
0x2cf2   :  { %v4948_v23 = vpop.xlane.xlu0 %4947 }
0x2cf3   :  { %6427 = vrsqrt.f32 %v4951_v54  ;;  %v4950_v58 = vmul.f32 0.03125, %v4948_v23 }
0x2cf5   :  { %v4952_v59 = vadd.f32 1e-05, %v4950_v58 }
0x2cf7   :  { %6429 = vrsqrt.f32 %v4952_v59 }
0x2d00   :  { %v6428_v62 = vpop.eup %6427 }
0x2d01   :  { %v4955_v3 = vmul.f32 %v6428_v62, %v4939_v48 }
0x2d03   :  { %v4961_v0 = vmul.f32 %v4960_v18, %v4955_v3 }
0x2d04   :  { %v6430_v7 = vpop.eup %6429 }
0x2d05   :  { %v4956_v19 = vmul.f32 %v6430_v7, %v4940_v29  ;;  %v4967_v11 = vadd.f32 %v4966_v5, %v4961_v0 }
0x2d07   :  { %v4962_v10 = vmul.f32 %v4960_v18, %v4956_v19 }
0x2d09   :  { %v4968_v12 = vadd.f32 %v4966_v5, %v4962_v10 }
0x2d0b   :  { %v4974_v13 = vpack.c.bf16 %v4968_v12, %v4967_v11 }
0x2d0d   :  { %6024 = vmatmul.mubr.msk.bf16.vlgmr.msra.gmra.mxu1 %vm89_vm1, %v4974_v13 }
0x2dcd   :  { %v5028_v6 = vpop.f32.mrf.mxu1 }
0x2dce   :  { %v5029_v2 = vadd.f32 %v5028_v6, %v4978_v46 }
0x2dcf   :  { %v6025_v15 = vpop.f32.mrf.mxu1 }
0x2dd0   :  { %v5035_v20 = vmax.f32 %v5029_v2, 0.0 }
0x2dd1   :  { %v5031_v16 = vpop.f32.mrf.mxu1 }
0x2dd2   :  { %v5032_v47 = vadd.f32 %v5031_v16, %v4978_v46  ;;  %v5188_v16 = vrot.slane %v7645_v60, %v6755_v34 }
0x2dd3   :  { %v6026_v21 = vpop.f32.mrf.mxu1 }
0x2dd4   :  { %v5036_v36 = vmax.f32 %v5032_v47, 0.0 }
0x2dd6   :  { %v5046_v22 = vpack.c.bf16 %v5036_v36, %v5035_v20  ;;  %v5194_v20 = vrot.slane %v7645_v60, %v6760_v38 }
0x2dd8   :  { %6036 = vmatmul.mubr.msk.bf16.vlgmr.msra.gmra.mxu0 %vm869_vm5, %v5046_v22 }
0x2e98   :  { %v5112_v57 = vpop.f32.mrf.mxu0 }
0x2e99   :  { %v5113_v37 = vadd.f32 %v5112_v57, %v5050_v1 }
0x2e9a   :  { %v6037_v44 = vpop.f32.mrf.mxu0 }
0x2e9b   :  { %v5119_v4 = vadd.f32 %v5113_v37, %v4967_v11 }
0x2e9c   :  { %v5115_v26 = vpop.f32.mrf.mxu0 }
0x2e9d   :  { %v5116_v25 = vadd.f32 %v5115_v26, %v5050_v1  ;;  %v5121_v35 = vsel %vm89_vm1, %v5119_v4, 0.0 }
0x2e9e   :  { %5122 = vadd.xlane.f32.xlu1 %v5121_v35  ;;  %v6038_v40 = vpop.f32.mrf.mxu0 }
0x2e9f   :  { %v5120_v27 = vadd.f32 %v5116_v25, %v4968_v12 }
0x2ea1   :  { %v5124_v28 = vsel %vm89_vm1, %v5120_v27, 0.0 }
0x2ea2   :  { %5125 = vadd.xlane.f32.xlu0 %v5124_v28 }
0x2f27   :  { %v5123_v63 = vpop.xlane.xlu1 %5122 }
0x2f28   :  { %v5127_v32 = vmul.f32 0.03125, %v5123_v63 }
0x2f2a   :  { %v5129_v55 = vsub.f32 %v5119_v4, %v5127_v32 }
0x2f2b   :  { %v5126_v41 = vpop.xlane.xlu0 %5125 }
0x2f2c   :  { %v5128_v42 = vmul.f32 0.03125, %v5126_v41  ;;  %v5131_v31 = vmul.f32 %v5129_v55, %v5129_v55 }
0x2f2e   :  { %v5130_v45 = vsub.f32 %v5120_v27, %v5128_v42  ;;  %v5133_v48 = vsel %vm89_vm1, %v5131_v31, 0.0 }
0x2f2f   :  { %5134 = vadd.xlane.f32.xlu1 %v5133_v48 }
0x2f30   :  { %v5132_v49 = vmul.f32 %v5130_v45, %v5130_v45 }
0x2f32   :  { %v5136_v43 = vsel %vm89_vm1, %v5132_v49, 0.0 }
0x2f33   :  { %5137 = vadd.xlane.f32.xlu0 %v5136_v43 }
0x2fb8   :  { %v5135_v39 = vpop.xlane.xlu1 %5134 }
0x2fb9   :  { %v5139_v29 = vmul.f32 0.03125, %v5135_v39 }
0x2fbb   :  { %v5141_v30 = vadd.f32 1e-05, %v5139_v29 }
0x2fbc   :  { %v5138_v33 = vpop.xlane.xlu0 %5137 }
0x2fbd   :  { %6431 = vrsqrt.f32 %v5141_v30  ;;  %v5140_v56 = vmul.f32 0.03125, %v5138_v33 }
0x2fbf   :  { %v5142_v24 = vadd.f32 1e-05, %v5140_v56 }
0x2fc1   :  { %6433 = vrsqrt.f32 %v5142_v24 }
0x2fca   :  { %v6432_v51 = vpop.eup %6431 }
0x2fcb   :  { %v5145_v52 = vmul.f32 %v6432_v51, %v5129_v55 }
0x2fcd   :  { %v5151_v54 = vmul.f32 %v5150_v9, %v5145_v52 }
0x2fce   :  { %v6434_v23 = vpop.eup %6433 }
0x2fcf   :  { %v5157_v58 = vadd.f32 %v5156_v53, %v5151_v54  ;;  %v5146_v59 = vmul.f32 %v6434_v23, %v5130_v45 }
0x2fd1   :  { %v5159_v62 = vsel %vm89_vm1, %v5157_v58, 0.0  ;;  %v5152_v18 = vmul.f32 %v5150_v9, %v5146_v59 }
0x2fd2   :  { %5160 = vadd.xlane.f32.xlu1 %v5159_v62 }
0x2fd3   :  { %v5158_v3 = vadd.f32 %v5156_v53, %v5152_v18 }
0x2fd5   :  { %v5162_v7 = vsel %vm89_vm1, %v5158_v3, 0.0 }
0x2fd6   :  { %5163 = vadd.xlane.f32.xlu0 %v5162_v7 }
0x305b   :  { %v5161_v0 = vpop.xlane.xlu1 %5160 }
0x305c   :  { %v5165_v19 = vmul.f32 0.03125, %v5161_v0 }
0x305e   :  { %v5167_v50 = vsub.f32 %v5157_v58, %v5165_v19 }
0x305f   :  { %v5164_v5 = vpop.xlane.xlu0 %5163 }
0x3060   :  { %v5166_v10 = vmul.f32 0.03125, %v5164_v5  ;;  %v5169_v11 = vmul.f32 %v5167_v50, %v5167_v50 }
0x3062   :  { %v5168_v12 = vsub.f32 %v5158_v3, %v5166_v10  ;;  %v5171_v61 = vsel %vm89_vm1, %v5169_v11, 0.0 }
0x3063   :  { %5172 = vadd.xlane.f32.xlu1 %v5171_v61 }
0x3064   :  { %v5170_v13 = vmul.f32 %v5168_v12, %v5168_v12 }
0x3066   :  { %v5174_v14 = vsel %vm89_vm1, %v5170_v13, 0.0 }
0x3067   :  { %5175 = vadd.xlane.f32.xlu0 %v5174_v14 }
0x30ec   :  { %v5173_v8 = vpop.xlane.xlu1 %5172 }
0x30ed   :  { %v5177_v17 = vmul.f32 0.03125, %v5173_v8 }
0x30ef   :  { %v5179_v46 = vadd.f32 1e-05, %v5177_v17 }
0x30f0   :  { %v5176_v6 = vpop.xlane.xlu0 %5175 }
0x30f1   :  { %6435 = vrsqrt.f32 %v5179_v46  ;;  %v5178_v15 = vmul.f32 0.03125, %v5176_v6 }
0x30f3   :  { %v5180_v2 = vadd.f32 1e-05, %v5178_v15 }
0x30f5   :  { %6437 = vrsqrt.f32 %v5180_v2 }
0x30fe   :  { %v6436_v47 = vpop.eup %6435 }
0x30ff   :  { %v5183_v21 = vmul.f32 %v6436_v47, %v5167_v50 }
0x3101   :  { %v5189_v36 = vmul.f32 %v5188_v16, %v5183_v21 }
0x3102   :  { %v6438_v22 = vpop.eup %6437 }
0x3103   :  { %v5184_v1 = vmul.f32 %v6438_v22, %v5168_v12  ;;  %v5195_v57 = vadd.f32 %v5194_v20, %v5189_v36 }
0x3105   :  { %v5190_v37 = vmul.f32 %v5188_v16, %v5184_v1  ;;  %5197 = vst.msk [vmem:[#allocation2] sm:$0xff] %vm89_vm1, %v5195_v57 }
0x3107   :  { %v5196_v44 = vadd.f32 %v5194_v20, %v5190_v37 }
0x3109   :  { %5198 = vst.msk [vmem:[#allocation2 + $0x8] sm:$0xff] %vm89_vm1, %v5196_v44 }
0x310a   :  { %6456 = shalt.err (!%p6453_p4)
}
0x310b   :  { %s6484_s12 = smov 128  }
0x310c   :  { %5210 = dma.vmem_to_hbm [thread:$0]  %s5205_s9, 256, %s7707_s17, [#allocation3], %s6484_s12, %s6484_s12, %s7727_s5  }
0x310d   :  { %6465 = dma.done.wait [#allocation3], 256  }
0x310e   :  { %6466 = vsyncadd [#allocation3], 4294967040 }
0x310f   :  { %5214 = vsyncpa [#allocation3], 1 }

</bundles_post_ra>
